<compile_context>
chip_gen: v5e
topology: v5e:2x2
jax: 0.10.0
libtpu: 0.0.40
codegen_flags: <defaults>
</compile_context>

<pallas_src>
import jax
import jax.numpy as jnp
from jax.experimental import pallas as pl
from jax.experimental.pallas import tpu as pltpu

H = W = 32        # forced by fc1 input dim 64*32*32
C_IN, C1, C2 = 3, 32, 64
K1, K2 = 7, 5
FC1_OUT, FC2_OUT = 128, 2


# ----------------------------------------------------------------------------
# Kernel 1: out = relu(p @ w + b) for the im2col'd conv layers.
# Grid tiles the spatial rows (M); K and N are small and kept whole.
# ----------------------------------------------------------------------------
def _conv_relu_kernel(p_ref, w_ref, b_ref, o_ref):
    y = jnp.dot(p_ref[...], w_ref[...], preferred_element_type=jnp.float32)
    o_ref[...] = jnp.maximum(y + b_ref[...], 0.0).astype(o_ref.dtype)


def conv_relu(p, w, b, *, out_dtype, tm=256):
    M, K = p.shape
    Kw, N = w.shape
    assert K == Kw and M % tm == 0
    return pl.pallas_call(
        _conv_relu_kernel,
        out_shape=jax.ShapeDtypeStruct((M, N), out_dtype),
        grid_spec=pltpu.PrefetchScalarGridSpec(
            num_scalar_prefetch=0,
            grid=(M // tm,),
            in_specs=[
                pl.BlockSpec((tm, K), lambda i: (i, 0)),
                pl.BlockSpec((K, N), lambda i: (0, 0)),
                pl.BlockSpec((1, N), lambda i: (0, 0)),
            ],
            out_specs=pl.BlockSpec((tm, N), lambda i: (i, 0)),
        ),
        compiler_params=pltpu.CompilerParams(
            dimension_semantics=("parallel",)),
    )(p, w, b)


# ----------------------------------------------------------------------------
# Kernel 2: fc1 with the reduction axis streamed from HBM in bf16 and an f32
# VMEM accumulator; fc2 is fused into the final grid step's epilogue.
# ----------------------------------------------------------------------------
def _fc1_fc2_kernel(x_ref, w1_ref, b1_ref, w2_ref, b2_ref, o_ref, acc_ref):
    @pl.when(pl.program_id(0) == 0)
    def _():
        acc_ref[...] = jnp.zeros_like(acc_ref)

    acc_ref[...] += jnp.dot(
        x_ref[...], w1_ref[...], preferred_element_type=jnp.float32)

    @pl.when(pl.program_id(0) == pl.num_programs(0) - 1)
    def _():
        h = jnp.maximum(acc_ref[...] + b1_ref[...], 0.0)          # (1, 128) f32
        o_ref[...] = (jnp.dot(h, w2_ref[...],
                              preferred_element_type=jnp.float32)
                      + b2_ref[...]).astype(o_ref.dtype)


def fc1_fc2(flat, w1, b1, w2, b2, *, tk=8192):
    M, K = flat.shape
    Kw, N1 = w1.shape
    N1b, N2 = w2.shape
    assert M == 1 and K == Kw and N1 == N1b and K % tk == 0
    nk = K // tk
    return pl.pallas_call(
        _fc1_fc2_kernel,
        out_shape=jax.ShapeDtypeStruct((1, N2), jnp.float32),
        grid_spec=pltpu.PrefetchScalarGridSpec(
            num_scalar_prefetch=0,
            grid=(nk,),
            in_specs=[
                pl.BlockSpec((1, tk), lambda k: (0, k)),       # flat (bf16)
                pl.BlockSpec((tk, N1), lambda k: (k, 0)),      # fc1_w (bf16)
                pl.BlockSpec((1, N1), lambda k: (0, 0)),       # fc1_b (f32)
                pl.BlockSpec((N1, N2), lambda k: (0, 0)),      # fc2_w (f32)
                pl.BlockSpec((1, N2), lambda k: (0, 0)),       # fc2_b (f32)
            ],
            out_specs=pl.BlockSpec((1, N2), lambda k: (0, 0)),
            scratch_shapes=[pltpu.VMEM((1, N1), jnp.float32)],
        ),
        compiler_params=pltpu.CompilerParams(
            dimension_semantics=("arbitrary",)),
    )(flat, w1, b1, w2, b2)


# ----------------------------------------------------------------------------
# Glue: im2col patch extraction (pure data rearrangement, no FLOPs).
# ----------------------------------------------------------------------------
def im2col(x_hwc, k, pad):
    Hh, Ww, C = x_hwc.shape
    xp = jnp.pad(x_hwc, ((pad, pad), (pad, pad), (0, 0)))
    cols = [xp[dy:dy + Hh, dx:dx + Ww, :] for dy in range(k) for dx in range(k)]
    patches = jnp.stack(cols, axis=2)               # (H, W, k*k, C)
    return patches.reshape(Hh * Ww, k * k * C)      # K order: (dy, dx, cin)


# ----------------------------------------------------------------------------
# One-time parameter repacking (outside jit) from PyTorch layouts.
# ----------------------------------------------------------------------------
def prepare_params(raw):
    w1 = jnp.transpose(raw["conv1_w"], (2, 3, 1, 0)).reshape(K1 * K1 * C_IN, C1)
    w2 = jnp.transpose(raw["conv2_w"], (2, 3, 1, 0)).reshape(K2 * K2 * C1, C2)
    # PyTorch flattens the conv2 output in (C, H, W) order; our activations are
    # flattened in (H, W, C) order -> permute the fc1 weight rows once here,
    # store pre-transposed (K, N), and cast to bf16 (dominant HBM stream).
    w3 = jnp.transpose(raw["fc1_w"].reshape(FC1_OUT, C2, H, W), (2, 3, 1, 0))
    w3 = w3.reshape(C2 * H * W, FC1_OUT).astype(jnp.bfloat16)
    return {
        "w1": w1, "b1": raw["conv1_b"].reshape(1, C1),
        "w2": w2, "b2": raw["conv2_b"].reshape(1, C2),
        "w3": w3, "b3": raw["fc1_b"].reshape(1, FC1_OUT),
        "w4": raw["fc2_w"].T, "b4": raw["fc2_b"].reshape(1, FC2_OUT),
    }


# ----------------------------------------------------------------------------
# Full CNN forward (matches the PyTorch module semantics, batch = 1).
# ----------------------------------------------------------------------------
def cnn_forward(x_nchw, p):
    assert x_nchw.shape == (1, C_IN, H, W), "torch.flatten + fc1 imply 1x3x32x32"
    x = jnp.transpose(x_nchw[0], (1, 2, 0))                       # (H, W, 3)

    # conv1: 3 -> 32, 7x7, pad 3, + ReLU
    p1 = im2col(x, K1, 3)                                         # (1024, 147)
    y1 = conv_relu(p1, p["w1"], p["b1"], out_dtype=jnp.float32)   # (1024, 32)

    # conv2: 32 -> 64, 5x5, pad 2, + ReLU (bf16 output feeds fc1 directly)
    p2 = im2col(y1.reshape(H, W, C1), K2, 2)                      # (1024, 800)
    y2 = conv_relu(p2, p["w2"], p["b2"], out_dtype=jnp.bfloat16)  # (1024, 64)

    # (h, w, c) row-major flatten; fc1 weight rows were permuted to match.
    flat = y2.reshape(1, C2 * H * W)                              # (1, 65536)

    # fc1 (+ReLU) with fc2 fused into the kernel epilogue.
    out = fc1_fc2(flat, p["w3"], p["b3"], p["w4"], p["b4"])       # (1, 2)
    return out[0]                                                 # (2,), like torch


# ----------------------------------------------------------------------------
# Deterministic parameter init in PyTorch layouts (conv (Cout,Cin,KH,KW),
# linear (out,in)); values synthetic.
# ----------------------------------------------------------------------------
def init_params(key):
    ks = jax.random.split(key, 8)
    s = 0.05
    return {
        "conv1_w": jax.random.normal(ks[0], (C1, C_IN, K1, K1), jnp.float32) * s,
        "conv1_b": jax.random.normal(ks[1], (C1,), jnp.float32) * s,
        "conv2_w": jax.random.normal(ks[2], (C2, C1, K2, K2), jnp.float32) * s,
        "conv2_b": jax.random.normal(ks[3], (C2,), jnp.float32) * s,
        "fc1_w": jax.random.normal(ks[4], (FC1_OUT, C2 * H * W), jnp.float32) * (s * 0.1),
        "fc1_b": jax.random.normal(ks[5], (FC1_OUT,), jnp.float32) * s,
        "fc2_w": jax.random.normal(ks[6], (FC2_OUT, FC1_OUT), jnp.float32) * s,
        "fc2_b": jax.random.normal(ks[7], (FC2_OUT,), jnp.float32) * s,
    }


if __name__ == "__main__":
    key = jax.random.PRNGKey(0)
    kp, kx = jax.random.split(key)
    raw = init_params(kp)
    params = prepare_params(raw)          # one-time weight repacking, outside jit

    x = jax.random.normal(kx, (1, C_IN, H, W), jnp.float32)

    fwd = jax.jit(cnn_forward)
    out = jax.block_until_ready(fwd(x, params))
    assert out.shape == (FC2_OUT,) and out.dtype == jnp.float32
    print("KERNEL_OK")
</pallas_src>

<mosaic_0001>
module attributes {stable_mosaic.version = 11 : i64} {
  func.func @_conv_relu_kernel(%arg0: i32, %arg1: memref<256x147xf32, #tpu.memory_space<vmem>>, %arg2: memref<147x32xf32, #tpu.memory_space<vmem>>, %arg3: memref<1x32xf32, #tpu.memory_space<vmem>>, %arg4: memref<256x32xf32, #tpu.memory_space<vmem>>) attributes {dimension_semantics = [#tpu.dimension_semantics<parallel>], iteration_bounds = array<i64: 4>, scalar_prefetch = 0 : i64, scratch_operands = 0 : i64, tpu.core_type = #tpu.core_type<tc>, window_params = [{transform_indices = @transform_0, window_bounds = array<i64: 256, 147>}, {pipeline_mode = #tpu.pipeline_mode<synchronous>, transform_indices = @transform_1, window_bounds = array<i64: 147, 32>}, {pipeline_mode = #tpu.pipeline_mode<synchronous>, transform_indices = @transform_2, window_bounds = array<i64: 1, 32>}, {transform_indices = @transform_3, window_bounds = array<i64: 256, 32>}]} {
    %c0 = arith.constant 0 : index
    %c0_0 = arith.constant 0 : index
    %0 = vector.load %arg1[%c0, %c0_0] : memref<256x147xf32, #tpu.memory_space<vmem>>, vector<256x147xf32>
    %c0_1 = arith.constant 0 : index
    %c0_2 = arith.constant 0 : index
    %1 = vector.load %arg2[%c0_1, %c0_2] : memref<147x32xf32, #tpu.memory_space<vmem>>, vector<147x32xf32>
    %cst = arith.constant dense<0.000000e+00> : vector<256x32xf32>
    %2 = tpu.matmul %0, %1, %cst {dimension_numbers = #tpu.dot_dimension_numbers<[1], [0], [0], [1], [0, 0, 1, 1], [], []>} : vector<256x147xf32>, vector<147x32xf32>, vector<256x32xf32> -> vector<256x32xf32>
    %c0_3 = arith.constant 0 : index
    %c0_4 = arith.constant 0 : index
    %3 = vector.load %arg3[%c0_3, %c0_4] : memref<1x32xf32, #tpu.memory_space<vmem>>, vector<1x32xf32>
    %4 = vector.broadcast %3 : vector<1x32xf32> to vector<256x32xf32>
    %5 = arith.addf %2, %4 : vector<256x32xf32>
    %cst_5 = arith.constant 0.000000e+00 : f32
    %6 = vector.broadcast %cst_5 : f32 to vector<256x32xf32>
    %7 = arith.maximumf %5, %6 : vector<256x32xf32>
    %c0_6 = arith.constant 0 : index
    %c0_7 = arith.constant 0 : index
    %8 = vector.load %arg4[%c0_6, %c0_7] : memref<256x32xf32, #tpu.memory_space<vmem>>, vector<256x32xf32>
    tpu.vector_store %arg4[%c0_6, %c0_7], %7 {strides = array<i32>} : memref<256x32xf32, #tpu.memory_space<vmem>>, vector<256x32xf32>,
    return
  }
  func.func @transform_0(%arg0: i32) -> (i32, i32) {
    %c0_i32 = arith.constant 0 : i32
    %c0_i32_0 = arith.constant 0 : i32
    return %arg0, %c0_i32 : i32, i32
  }
  func.func @transform_1(%arg0: i32) -> (i32, i32) {
    %c0_i32 = arith.constant 0 : i32
    %c0_i32_0 = arith.constant 0 : i32
    %c0_i32_1 = arith.constant 0 : i32
    return %c0_i32, %c0_i32_0 : i32, i32
  }
  func.func @transform_2(%arg0: i32) -> (i32, i32) {
    %c0_i32 = arith.constant 0 : i32
    %c0_i32_0 = arith.constant 0 : i32
    %c0_i32_1 = arith.constant 0 : i32
    return %c0_i32, %c0_i32_0 : i32, i32
  }
  func.func @transform_3(%arg0: i32) -> (i32, i32) {
    %c0_i32 = arith.constant 0 : i32
    %c0_i32_0 = arith.constant 0 : i32
    return %arg0, %c0_i32 : i32, i32
  }
}

module attributes {stable_mosaic.version = 11 : i64} {
  func.func @_conv_relu_kernel(%arg0: i32, %arg1: memref<256x800xf32, #tpu.memory_space<vmem>>, %arg2: memref<800x64xf32, #tpu.memory_space<vmem>>, %arg3: memref<1x64xf32, #tpu.memory_space<vmem>>, %arg4: memref<256x64xbf16, #tpu.memory_space<vmem>>) attributes {dimension_semantics = [#tpu.dimension_semantics<parallel>], iteration_bounds = array<i64: 4>, scalar_prefetch = 0 : i64, scratch_operands = 0 : i64, tpu.core_type = #tpu.core_type<tc>, window_params = [{transform_indices = @transform_0, window_bounds = array<i64: 256, 800>}, {pipeline_mode = #tpu.pipeline_mode<synchronous>, transform_indices = @transform_1, window_bounds = array<i64: 800, 64>}, {pipeline_mode = #tpu.pipeline_mode<synchronous>, transform_indices = @transform_2, window_bounds = array<i64: 1, 64>}, {transform_indices = @transform_3, window_bounds = array<i64: 256, 64>}]} {
    %c0 = arith.constant 0 : index
    %c0_0 = arith.constant 0 : index
    %0 = vector.load %arg1[%c0, %c0_0] : memref<256x800xf32, #tpu.memory_space<vmem>>, vector<256x800xf32>
    %c0_1 = arith.constant 0 : index
    %c0_2 = arith.constant 0 : index
    %1 = vector.load %arg2[%c0_1, %c0_2] : memref<800x64xf32, #tpu.memory_space<vmem>>, vector<800x64xf32>
    %cst = arith.constant dense<0.000000e+00> : vector<256x64xf32>
    %2 = tpu.matmul %0, %1, %cst {dimension_numbers = #tpu.dot_dimension_numbers<[1], [0], [0], [1], [0, 0, 1, 1], [], []>} : vector<256x800xf32>, vector<800x64xf32>, vector<256x64xf32> -> vector<256x64xf32>
    %c0_3 = arith.constant 0 : index
    %c0_4 = arith.constant 0 : index
    %3 = vector.load %arg3[%c0_3, %c0_4] : memref<1x64xf32, #tpu.memory_space<vmem>>, vector<1x64xf32>
    %4 = vector.broadcast %3 : vector<1x64xf32> to vector<256x64xf32>
    %5 = arith.addf %2, %4 : vector<256x64xf32>
    %cst_5 = arith.constant 0.000000e+00 : f32
    %6 = vector.broadcast %cst_5 : f32 to vector<256x64xf32>
    %7 = arith.maximumf %5, %6 : vector<256x64xf32>
    %8 = arith.truncf %7 : vector<256x64xf32> to vector<256x64xbf16>
    %c0_6 = arith.constant 0 : index
    %c0_7 = arith.constant 0 : index
    %9 = vector.load %arg4[%c0_6, %c0_7] : memref<256x64xbf16, #tpu.memory_space<vmem>>, vector<256x64xbf16>
    tpu.vector_store %arg4[%c0_6, %c0_7], %8 {strides = array<i32>} : memref<256x64xbf16, #tpu.memory_space<vmem>>, vector<256x64xbf16>,
    return
  }
  func.func @transform_0(%arg0: i32) -> (i32, i32) {
    %c0_i32 = arith.constant 0 : i32
    %c0_i32_0 = arith.constant 0 : i32
    return %arg0, %c0_i32 : i32, i32
  }
  func.func @transform_1(%arg0: i32) -> (i32, i32) {
    %c0_i32 = arith.constant 0 : i32
    %c0_i32_0 = arith.constant 0 : i32
    %c0_i32_1 = arith.constant 0 : i32
    return %c0_i32, %c0_i32_0 : i32, i32
  }
  func.func @transform_2(%arg0: i32) -> (i32, i32) {
    %c0_i32 = arith.constant 0 : i32
    %c0_i32_0 = arith.constant 0 : i32
    %c0_i32_1 = arith.constant 0 : i32
    return %c0_i32, %c0_i32_0 : i32, i32
  }
  func.func @transform_3(%arg0: i32) -> (i32, i32) {
    %c0_i32 = arith.constant 0 : i32
    %c0_i32_0 = arith.constant 0 : i32
    return %arg0, %c0_i32 : i32, i32
  }
}

module attributes {stable_mosaic.version = 11 : i64} {
  func.func @_fc1_fc2_kernel(%arg0: i32, %arg1: memref<1x8192xbf16, #tpu.memory_space<vmem>>, %arg2: memref<8192x128xbf16, #tpu.memory_space<vmem>>, %arg3: memref<1x128xf32, #tpu.memory_space<vmem>>, %arg4: memref<128x2xf32, #tpu.memory_space<vmem>>, %arg5: memref<1x2xf32, #tpu.memory_space<vmem>>, %arg6: memref<1x2xf32, #tpu.memory_space<vmem>>, %arg7: memref<1x128xf32, #tpu.memory_space<vmem>>) attributes {dimension_semantics = [#tpu.dimension_semantics<arbitrary>], iteration_bounds = array<i64: 8>, scalar_prefetch = 0 : i64, scratch_operands = 1 : i64, tpu.core_type = #tpu.core_type<tc>, window_params = [{transform_indices = @transform_0, window_bounds = array<i64: 1, 8192>}, {transform_indices = @transform_1, window_bounds = array<i64: 8192, 128>}, {pipeline_mode = #tpu.pipeline_mode<synchronous>, transform_indices = @transform_2, window_bounds = array<i64: 1, 128>}, {pipeline_mode = #tpu.pipeline_mode<synchronous>, transform_indices = @transform_3, window_bounds = array<i64: 128, 2>}, {pipeline_mode = #tpu.pipeline_mode<synchronous>, transform_indices = @transform_4, window_bounds = array<i64: 1, 2>}, {pipeline_mode = #tpu.pipeline_mode<synchronous>, transform_indices = @transform_5, window_bounds = array<i64: 1, 2>}]} {
    %c0_i32 = arith.constant 0 : i32
    %0 = arith.cmpi eq, %arg0, %c0_i32 : i32
    %1 = arith.extui %0 : i1 to i32
    %c0_i32_0 = arith.constant 0 : i32
    %2 = arith.cmpi ne, %1, %c0_i32_0 : i32
    scf.if %2 {
      %cst_9 = arith.constant 0.000000e+00 : f32
      %12 = vector.broadcast %cst_9 : f32 to vector<1x128xf32>
      %c0_10 = arith.constant 0 : index
      %c0_11 = arith.constant 0 : index
      %13 = vector.load %arg7[%c0_10, %c0_11] : memref<1x128xf32, #tpu.memory_space<vmem>>, vector<1x128xf32>
      tpu.vector_store %arg7[%c0_10, %c0_11], %12 {strides = array<i32>} : memref<1x128xf32, #tpu.memory_space<vmem>>, vector<1x128xf32>,
    } else {
    }
    %c0 = arith.constant 0 : index
    %c0_1 = arith.constant 0 : index
    %3 = vector.load %arg7[%c0, %c0_1] : memref<1x128xf32, #tpu.memory_space<vmem>>, vector<1x128xf32>
    %c0_2 = arith.constant 0 : index
    %c0_3 = arith.constant 0 : index
    %4 = vector.load %arg1[%c0_2, %c0_3] : memref<1x8192xbf16, #tpu.memory_space<vmem>>, vector<1x8192xbf16>
    %c0_4 = arith.constant 0 : index
    %c0_5 = arith.constant 0 : index
    %5 = vector.load %arg2[%c0_4, %c0_5] : memref<8192x128xbf16, #tpu.memory_space<vmem>>, vector<8192x128xbf16>
    %cst = arith.constant dense<0.000000e+00> : vector<1x128xf32>
    %6 = tpu.matmul %4, %5, %cst {dimension_numbers = #tpu.dot_dimension_numbers<[1], [0], [0], [1], [0, 0, 1, 1], [], []>} : vector<1x8192xbf16>, vector<8192x128xbf16>, vector<1x128xf32> -> vector<1x128xf32>
    %7 = arith.addf %3, %6 : vector<1x128xf32>
    %c0_6 = arith.constant 0 : index
    %c0_7 = arith.constant 0 : index
    %8 = vector.load %arg7[%c0_6, %c0_7] : memref<1x128xf32, #tpu.memory_space<vmem>>, vector<1x128xf32>
    tpu.vector_store %arg7[%c0_6, %c0_7], %7 {strides = array<i32>} : memref<1x128xf32, #tpu.memory_space<vmem>>, vector<1x128xf32>,
    %c7_i32 = arith.constant 7 : i32
    %9 = arith.cmpi eq, %arg0, %c7_i32 : i32
    %10 = arith.extui %9 : i1 to i32
    %c0_i32_8 = arith.constant 0 : i32
    %11 = arith.cmpi ne, %10, %c0_i32_8 : i32
    scf.if %11 {
      %c0_9 = arith.constant 0 : index
      %c0_10 = arith.constant 0 : index
      %12 = vector.load %arg7[%c0_9, %c0_10] : memref<1x128xf32, #tpu.memory_space<vmem>>, vector<1x128xf32>
      %c0_11 = arith.constant 0 : index
      %c0_12 = arith.constant 0 : index
      %13 = vector.load %arg3[%c0_11, %c0_12] : memref<1x128xf32, #tpu.memory_space<vmem>>, vector<1x128xf32>
      %14 = arith.addf %12, %13 : vector<1x128xf32>
      %cst_13 = arith.constant 0.000000e+00 : f32
      %15 = vector.broadcast %cst_13 : f32 to vector<1x128xf32>
      %16 = arith.maximumf %14, %15 : vector<1x128xf32>
      %c0_14 = arith.constant 0 : index
      %c0_15 = arith.constant 0 : index
      %17 = vector.load %arg4[%c0_14, %c0_15] : memref<128x2xf32, #tpu.memory_space<vmem>>, vector<128x2xf32>
      %cst_16 = arith.constant dense<0.000000e+00> : vector<1x2xf32>
      %18 = tpu.matmul %16, %17, %cst_16 {dimension_numbers = #tpu.dot_dimension_numbers<[1], [0], [0], [1], [0, 0, 1, 1], [], []>} : vector<1x128xf32>, vector<128x2xf32>, vector<1x2xf32> -> vector<1x2xf32>
      %c0_17 = arith.constant 0 : index
      %c0_18 = arith.constant 0 : index
      %19 = vector.load %arg5[%c0_17, %c0_18] : memref<1x2xf32, #tpu.memory_space<vmem>>, vector<1x2xf32>
      %20 = arith.addf %18, %19 : vector<1x2xf32>
      %c0_19 = arith.constant 0 : index
      %c0_20 = arith.constant 0 : index
      %21 = vector.load %arg6[%c0_19, %c0_20] : memref<1x2xf32, #tpu.memory_space<vmem>>, vector<1x2xf32>
      tpu.vector_store %arg6[%c0_19, %c0_20], %20 {strides = array<i32>} : memref<1x2xf32, #tpu.memory_space<vmem>>, vector<1x2xf32>,
    } else {
    }
    return
  }
  func.func @transform_0(%arg0: i32) -> (i32, i32) {
    %c0_i32 = arith.constant 0 : i32
    %c0_i32_0 = arith.constant 0 : i32
    return %c0_i32, %arg0 : i32, i32
  }
  func.func @transform_1(%arg0: i32) -> (i32, i32) {
    %c0_i32 = arith.constant 0 : i32
    %c0_i32_0 = arith.constant 0 : i32
    return %arg0, %c0_i32 : i32, i32
  }
  func.func @transform_2(%arg0: i32) -> (i32, i32) {
    %c0_i32 = arith.constant 0 : i32
    %c0_i32_0 = arith.constant 0 : i32
    %c0_i32_1 = arith.constant 0 : i32
    return %c0_i32, %c0_i32_0 : i32, i32
  }
  func.func @transform_3(%arg0: i32) -> (i32, i32) {
    %c0_i32 = arith.constant 0 : i32
    %c0_i32_0 = arith.constant 0 : i32
    %c0_i32_1 = arith.constant 0 : i32
    return %c0_i32, %c0_i32_0 : i32, i32
  }
  func.func @transform_4(%arg0: i32) -> (i32, i32) {
    %c0_i32 = arith.constant 0 : i32
    %c0_i32_0 = arith.constant 0 : i32
    %c0_i32_1 = arith.constant 0 : i32
    return %c0_i32, %c0_i32_0 : i32, i32
  }
  func.func @transform_5(%arg0: i32) -> (i32, i32) {
    %c0_i32 = arith.constant 0 : i32
    %c0_i32_0 = arith.constant 0 : i32
    %c0_i32_1 = arith.constant 0 : i32
    return %c0_i32, %c0_i32_0 : i32, i32
  }
}

</mosaic_0001>

<bundles_post_ra>
// kernel: cnn_forward.3
= control target key start
LH: loop header
LB: loop body
LE: loop exit
PB: predicated region body
PF: predicated region fallthrough
CT: control target
= control target key end

     0   :  { %s830_s12 = smov 0   ;;  %s1135_s0 = inlined_call_operand.vmem [shape: f32[1024,147], index: 0, kind: input, shape index: {}]   ;;  %s1136_s1 = inlined_call_operand.vmem [shape: f32[147,32], index: 1, kind: input, shape index: {}]   ;;  %s1137_s2 = inlined_call_operand.vmem [shape: f32[1,32], index: 2, kind: input, shape index: {}]   ;;  %s1138_s3 = inlined_call_operand.vmem [shape: f32[1024,32], index: 3, kind: output, shape index: {}]  }
   0x1 LB: > { %s712_s13 = sadd.s32 4294967295, %s808_s12   ;;  %p716_p0 = scmp.ge.s32.totalorder %s808_s12, 1  ;;  %s808_s12 = sphi %s830_s12, %s13_s12  }
   0x2   : > { %p139_p1 = scmp.lt.s32.totalorder %s808_s12, 5 }
   0x4   : > { %p140_p2 = pnand %p716_p0, %p139_p1 }
   0x5   : > { %s717_s20 = sshll.u32 (!%p140_p2), %s712_s13, 5 }
   0x6   : > { %143 = sbr.rel (%p140_p2) target bundleno = 303 (0x12f), region = 32  ;;  %p165_p3 = scmp.lt.s32.totalorder (!%p140_p2), %s717_s20, 127 }
   0xb   : > { %v256_v0 = vld [vmem:[%s1136_s1 + $0x78] sm:$0xff]  ;;  %v255_v1 = vld [vmem:[%s1136_s1 + $0x70] sm:$0xff]  ;;  %vm361_vm0 = vcmask 1042432   ;;  %v852_v3 = vld [vmem:[%s1136_s1 + $0x88] sm:$0xff]  ;;  %s1140_s20 = smov (!%p165_p3, %s717_s20), 127  ;;  %vm264_vm1 = vcmask 154624  }
   0xc   : > { %v847_v2 = vld [vmem:[%s1136_s1 + $0x90] sm:$0x7]  ;;  %365 = vmatpush.msra.mxu0 %v256_v0  ;;  %758 = vmatpush.msra.mxu2 %v256_v0  ;;  %v254_v4 = vld [vmem:[%s1136_s1 + $0x68] sm:$0xff]  ;;  %v862_v5 = vld [vmem:[%s1136_s1 + $0x80] sm:$0xff]  ;;  %s757_s29 = sshll.u32 %s1140_s20, 4  ;;  %s721_s8 = sshll.u32 %s1140_s20, 3 }
   0xd   : > { %759 = vmatpush.msra.mxu3 %v256_v0  ;;  %722 = vmatpush.msk.msra.mxu1 %vm361_vm0, %v847_v2  ;;  %v253_v6 = vld [vmem:[%s1136_s1 + $0x60] sm:$0xff]  ;;  %s875_s5 = scalar_lea.vmem %s1135_s0, %s757_s29  ;;  %v252_v7 = vld [vmem:[%s1136_s1 + $0x58] sm:$0xff]  ;;  %v251_v9 = vld [vmem:[%s1136_s1 + $0x50] sm:$0xff]  ;;  %s1023_s11 = scalar_lea.vmem %s1138_s3, %s721_s8  ;;  %vm623_vm2 = vcmask 261120  }
   0xe   : > { %366 = vmatpush.msra.mxu0 %v255_v1  ;;  %760 = vmatpush.msra.mxu2 %v255_v1  ;;  %v178_v8 = vld [vmem:[%s875_s5 + $0x8] sm:$0xff]  ;;  %v249_v11 = vld [vmem:[%s1136_s1 + $0x40] sm:$0xff]  ;;  %v180_v12 = vld [vmem:[%s875_s5 + $0x18] sm:$0xff] }
   0xf   : > { %761 = vmatpush.msra.mxu3 %v255_v1  ;;  %492 = vmatpush.msra.mxu1 %v852_v3  ;;  %v250_v10 = vld [vmem:[%s1136_s1 + $0x48] sm:$0xff]  ;;  %v248_v13 = vld [vmem:[%s1136_s1 + $0x38] sm:$0xff]  ;;  %v247_v14 = vld [vmem:[%s1136_s1 + $0x30] sm:$0xff] }
  0x10   : > { %367 = vmatpush.msra.mxu0 %v254_v4  ;;  %762 = vmatpush.msra.mxu2 %v254_v4  ;;  %v246_v15 = vld [vmem:[%s1136_s1 + $0x28] sm:$0xff]  ;;  %v245_v16 = vld [vmem:[%s1136_s1 + $0x20] sm:$0xff]  ;;  %v244_v18 = vld [vmem:[%s1136_s1 + $0x18] sm:$0xff] }
  0x11   : > { %763 = vmatpush.msra.mxu3 %v254_v4  ;;  %493 = vmatpush.msra.mxu1 %v862_v5  ;;  %v182_v17 = vld [vmem:[%s875_s5 + $0x28] sm:$0xff]  ;;  %v243_v19 = vld [vmem:[%s1136_s1 + $0x10] sm:$0xff]  ;;  %v241_v21 = vld [vmem:[%s1136_s1] sm:$0xff] }
  0x12   : > { %368 = vmatpush.msra.mxu0 %v253_v6  ;;  %764 = vmatpush.msra.mxu2 %v253_v6  ;;  %v242_v20 = vld [vmem:[%s1136_s1 + $0x8] sm:$0xff]  ;;  %v177_v22 = vld [vmem:[%s875_s5] sm:$0xff]  ;;  %v207_v23 = vld [vmem:[%s875_s5 + $0xf0] sm:$0xff] }
  0x13   : > { %765 = vmatpush.msra.mxu3 %v253_v6  ;;  %723 = vmatmul.msk.f32.vlgmr.msra.gmra.mxu1 %vm264_vm1, %v178_v8  ;;  %v239_v24 = vld [vmem:[%s875_s5 + $0x1f0] sm:$0xff]  ;;  %v184_v25 = vld [vmem:[%s875_s5 + $0x38] sm:$0xff]  ;;  %v209_v27 = vld [vmem:[%s875_s5 + $0x100] sm:$0xff] }
  0x14   : > { %369 = vmatpush.msra.mxu0 %v252_v7  ;;  %766 = vmatpush.msra.mxu2 %v252_v7  ;;  %v179_v26 = vld [vmem:[%s875_s5 + $0x10] sm:$0xff]  ;;  %v214_v28 = vld [vmem:[%s875_s5 + $0x128] sm:$0xff]  ;;  %v181_v30 = vld [vmem:[%s875_s5 + $0x20] sm:$0xff] }
  0x15   : > { %767 = vmatpush.msra.mxu3 %v252_v7  ;;  %v186_v29 = vld [vmem:[%s875_s5 + $0x48] sm:$0xff]  ;;  %v211_v31 = vld [vmem:[%s875_s5 + $0x110] sm:$0xff]  ;;  %v216_v32 = vld [vmem:[%s875_s5 + $0x138] sm:$0xff] }
  0x16   : > { %370 = vmatpush.msra.mxu0 %v251_v9  ;;  %768 = vmatpush.msra.mxu2 %v251_v9  ;;  %v188_v33 = vld [vmem:[%s875_s5 + $0x58] sm:$0xff]  ;;  %v183_v34 = vld [vmem:[%s875_s5 + $0x30] sm:$0xff]  ;;  %v213_v35 = vld [vmem:[%s875_s5 + $0x120] sm:$0xff] }
  0x17   : > { %769 = vmatpush.msra.mxu3 %v251_v9  ;;  %v218_v36 = vld [vmem:[%s875_s5 + $0x148] sm:$0xff]  ;;  %v185_v38 = vld [vmem:[%s875_s5 + $0x40] sm:$0xff]  ;;  %v215_v39 = vld [vmem:[%s875_s5 + $0x130] sm:$0xff] }
  0x18   : > { %371 = vmatpush.msra.mxu0 %v250_v10  ;;  %770 = vmatpush.msra.mxu2 %v250_v10  ;;  %v190_v37 = vld [vmem:[%s875_s5 + $0x68] sm:$0xff]  ;;  %v220_v40 = vld [vmem:[%s875_s5 + $0x158] sm:$0xff]  ;;  %v187_v42 = vld [vmem:[%s875_s5 + $0x50] sm:$0xff] }
  0x19   : > { %771 = vmatpush.msra.mxu3 %v250_v10  ;;  %v192_v41 = vld [vmem:[%s875_s5 + $0x78] sm:$0xff]  ;;  %v217_v43 = vld [vmem:[%s875_s5 + $0x140] sm:$0xff]  ;;  %v222_v44 = vld [vmem:[%s875_s5 + $0x168] sm:$0xff] }
  0x1a   : > { %372 = vmatpush.msra.mxu0 %v249_v11  ;;  %772 = vmatpush.msra.mxu2 %v249_v11  ;;  %v194_v45 = vld [vmem:[%s875_s5 + $0x88] sm:$0xff]  ;;  %v189_v46 = vld [vmem:[%s875_s5 + $0x60] sm:$0xff]  ;;  %v219_v47 = vld [vmem:[%s875_s5 + $0x150] sm:$0xff] }
  0x1b   : > { %773 = vmatpush.msra.mxu3 %v249_v11  ;;  %724 = vmatmul.msk.f32.gmra.mxu1 %vm264_vm1, %v180_v12  ;;  %v224_v48 = vld [vmem:[%s875_s5 + $0x178] sm:$0xff]  ;;  %v191_v50 = vld [vmem:[%s875_s5 + $0x70] sm:$0xff]  ;;  %v221_v51 = vld [vmem:[%s875_s5 + $0x160] sm:$0xff] }
  0x1c   : > { %373 = vmatpush.msra.mxu0 %v248_v13  ;;  %774 = vmatpush.msra.mxu2 %v248_v13  ;;  %v196_v49 = vld [vmem:[%s875_s5 + $0x98] sm:$0xff]  ;;  %v226_v52 = vld [vmem:[%s875_s5 + $0x188] sm:$0xff]  ;;  %v193_v54 = vld [vmem:[%s875_s5 + $0x80] sm:$0xff] }
  0x1d   : > { %775 = vmatpush.msra.mxu3 %v248_v13  ;;  %v198_v53 = vld [vmem:[%s875_s5 + $0xa8] sm:$0xff]  ;;  %v223_v55 = vld [vmem:[%s875_s5 + $0x170] sm:$0xff]  ;;  %v228_v56 = vld [vmem:[%s875_s5 + $0x198] sm:$0xff] }
  0x1e   : > { %374 = vmatpush.msra.mxu0 %v247_v14  ;;  %776 = vmatpush.msra.mxu2 %v247_v14  ;;  %v200_v57 = vld [vmem:[%s875_s5 + $0xb8] sm:$0xff]  ;;  %v195_v58 = vld [vmem:[%s875_s5 + $0x90] sm:$0xff]  ;;  %v225_v59 = vld [vmem:[%s875_s5 + $0x180] sm:$0xff] }
  0x1f   : > { %777 = vmatpush.msra.mxu3 %v247_v14  ;;  %v230_v60 = vld [vmem:[%s875_s5 + $0x1a8] sm:$0xff]  ;;  %v197_v62 = vld [vmem:[%s875_s5 + $0xa0] sm:$0xff]  ;;  %v227_v63 = vld [vmem:[%s875_s5 + $0x190] sm:$0xff] }
  0x20   : > { %375 = vmatpush.msra.mxu0 %v246_v15  ;;  %778 = vmatpush.msra.mxu2 %v246_v15  ;;  %v202_v61 = vld [vmem:[%s875_s5 + $0xc8] sm:$0xff]  ;;  %v232_v0 = vld [vmem:[%s875_s5 + $0x1b8] sm:$0xff]  ;;  %v201_v6 = vld [vmem:[%s875_s5 + $0xc0] sm:$0xff] }
  0x21   : > { %779 = vmatpush.msra.mxu3 %v246_v15  ;;  %v204_v1 = vld [vmem:[%s875_s5 + $0xd8] sm:$0xff]  ;;  %v234_v4 = vld [vmem:[%s875_s5 + $0x1c8] sm:$0xff]  ;;  %v231_v7 = vld [vmem:[%s875_s5 + $0x1b0] sm:$0xff] }
  0x22   : > { %376 = vmatpush.msra.mxu0 %v245_v16  ;;  %780 = vmatpush.msra.mxu2 %v245_v16  ;;  %v236_v8 = vld [vmem:[%s875_s5 + $0x1d8] sm:$0xff]  ;;  %v203_v11 = vld [vmem:[%s875_s5 + $0xd0] sm:$0xff]  ;;  %v233_v12 = vld [vmem:[%s875_s5 + $0x1c0] sm:$0xff] }
  0x23   : > { %781 = vmatpush.msra.mxu3 %v245_v16  ;;  %725 = vmatmul.msk.f32.gmra.mxu1 %vm264_vm1, %v182_v17  ;;  %v208_v9 = vld [vmem:[%s875_s5 + $0xf8] sm:$0xff]  ;;  %v238_v13 = vld [vmem:[%s875_s5 + $0x1e8] sm:$0xff]  ;;  %v205_v16 = vld [vmem:[%s875_s5 + $0xe0] sm:$0xff] }
  0x24   : > { %377 = vmatpush.msra.mxu0 %v244_v18  ;;  %782 = vmatpush.msra.mxu2 %v244_v18  ;;  %v210_v14 = vld [vmem:[%s875_s5 + $0x108] sm:$0xff]  ;;  %v235_v17 = vld [vmem:[%s875_s5 + $0x1d0] sm:$0xff] }
  0x25   : > { %783 = vmatpush.msra.mxu3 %v244_v18  ;;  %v240_v18 = vld [vmem:[%s875_s5 + $0x1f8] sm:$0xff] }
  0x26   : > { %378 = vmatpush.msra.mxu0 %v243_v19  ;;  %784 = vmatpush.msra.mxu2 %v243_v19 }
  0x27   : > { %785 = vmatpush.msra.mxu3 %v243_v19  ;;  %v212_v19 = vld [vmem:[%s875_s5 + $0x118] sm:$0xff] }
  0x28   : > { %379 = vmatpush.msra.mxu0 %v242_v20  ;;  %786 = vmatpush.msra.mxu2 %v242_v20 }
  0x29   : > { %787 = vmatpush.msra.mxu3 %v242_v20 }
  0x2a   : > { %380 = vmatpush.msra.mxu0 %v241_v21  ;;  %788 = vmatpush.msra.mxu2 %v241_v21 }
  0x2b   : > { %789 = vmatpush.msra.mxu3 %v241_v21  ;;  %381 = vmatmul.f32.vlgmr.msra.gmra.mxu0 %v177_v22  ;;  %v237_v21 = vld [vmem:[%s875_s5 + $0x1e0] sm:$0xff] }
  0x2c   : > { %426 = vmatmul.f32.vlgmr.msra.gmra.mxu2 %v207_v23  ;;  %474 = vmatmul.f32.vlgmr.msra.gmra.mxu3 %v239_v24  ;;  %v1016_v22 = vld [vmem:[%s1137_s2] ss:$0 sm:$0xff] }
  0x2d   : > { %726 = vmatmul.msk.f32.gmra.mxu1 %vm264_vm1, %v184_v25  ;;  %790 = vmatpush.msk.msrb.mxu3 %vm361_vm0, %v847_v2  ;;  %v199_v2 = vld [vmem:[%s875_s5 + $0xb0] sm:$0xff] }
  0x2f   : > { %791 = vmatpush.msrb.mxu3 %v852_v3  ;;  %v229_v3 = vld [vmem:[%s875_s5 + $0x1a0] sm:$0xff] }
  0x31   : > { %792 = vmatpush.msrb.mxu3 %v862_v5  ;;  %v206_v5 = vld [vmem:[%s875_s5 + $0xe8] sm:$0xff] }
  0x33   : > { %384 = vmatmul.f32.gmra.mxu0 %v179_v26 }
  0x34   : > { %429 = vmatmul.f32.gmra.mxu2 %v209_v27  ;;  %741 = vmatmul.msk.f32.vlgmr.msrb.gmra.mxu3 %vm264_vm1, %v214_v28 }
  0x35   : > { %727 = vmatmul.msk.f32.gmra.mxu1 %vm264_vm1, %v186_v29 }
  0x3b   : > { %387 = vmatmul.f32.gmra.mxu0 %v181_v30 }
  0x3c   : > { %432 = vmatmul.f32.gmra.mxu2 %v211_v31  ;;  %742 = vmatmul.msk.f32.gmra.mxu3 %vm264_vm1, %v216_v32 }
  0x3d   : > { %728 = vmatmul.msk.f32.gmra.mxu1 %vm264_vm1, %v188_v33 }
  0x43   : > { %390 = vmatmul.f32.gmra.mxu0 %v183_v34 }
  0x44   : > { %435 = vmatmul.f32.gmra.mxu2 %v213_v35  ;;  %743 = vmatmul.msk.f32.gmra.mxu3 %vm264_vm1, %v218_v36 }
  0x45   : > { %729 = vmatmul.msk.f32.gmra.mxu1 %vm264_vm1, %v190_v37 }
  0x4b   : > { %393 = vmatmul.f32.gmra.mxu0 %v185_v38 }
  0x4c   : > { %438 = vmatmul.f32.gmra.mxu2 %v215_v39  ;;  %744 = vmatmul.msk.f32.gmra.mxu3 %vm264_vm1, %v220_v40 }
  0x4d   : > { %730 = vmatmul.msk.f32.gmra.mxu1 %vm264_vm1, %v192_v41 }
  0x53   : > { %396 = vmatmul.f32.gmra.mxu0 %v187_v42 }
  0x54   : > { %441 = vmatmul.f32.gmra.mxu2 %v217_v43  ;;  %745 = vmatmul.msk.f32.gmra.mxu3 %vm264_vm1, %v222_v44 }
  0x55   : > { %731 = vmatmul.msk.f32.gmra.mxu1 %vm264_vm1, %v194_v45 }
  0x5b   : > { %399 = vmatmul.f32.gmra.mxu0 %v189_v46 }
  0x5c   : > { %444 = vmatmul.f32.gmra.mxu2 %v219_v47  ;;  %746 = vmatmul.msk.f32.gmra.mxu3 %vm264_vm1, %v224_v48 }
  0x5d   : > { %732 = vmatmul.msk.f32.gmra.mxu1 %vm264_vm1, %v196_v49 }
  0x63   : > { %402 = vmatmul.f32.gmra.mxu0 %v191_v50 }
  0x64   : > { %447 = vmatmul.f32.gmra.mxu2 %v221_v51  ;;  %747 = vmatmul.msk.f32.gmra.mxu3 %vm264_vm1, %v226_v52 }
  0x65   : > { %733 = vmatmul.msk.f32.gmra.mxu1 %vm264_vm1, %v198_v53 }
  0x6b   : > { %405 = vmatmul.f32.gmra.mxu0 %v193_v54 }
  0x6c   : > { %450 = vmatmul.f32.gmra.mxu2 %v223_v55  ;;  %748 = vmatmul.msk.f32.gmra.mxu3 %vm264_vm1, %v228_v56 }
  0x6d   : > { %734 = vmatmul.msk.f32.gmra.mxu1 %vm264_vm1, %v200_v57 }
  0x73   : > { %408 = vmatmul.f32.gmra.mxu0 %v195_v58 }
  0x74   : > { %453 = vmatmul.f32.gmra.mxu2 %v225_v59  ;;  %749 = vmatmul.msk.f32.gmra.mxu3 %vm264_vm1, %v230_v60 }
  0x75   : > { %735 = vmatmul.msk.f32.gmra.mxu1 %vm264_vm1, %v202_v61 }
  0x7b   : > { %411 = vmatmul.f32.gmra.mxu0 %v197_v62 }
  0x7c   : > { %456 = vmatmul.f32.gmra.mxu2 %v227_v63  ;;  %750 = vmatmul.msk.f32.gmra.mxu3 %vm264_vm1, %v232_v0 }
  0x7d   : > { %736 = vmatmul.msk.f32.gmra.mxu1 %vm264_vm1, %v204_v1 }
  0x83   : > { %414 = vmatmul.f32.gmra.mxu0 %v199_v2 }
  0x84   : > { %459 = vmatmul.f32.gmra.mxu2 %v229_v3  ;;  %751 = vmatmul.msk.f32.gmra.mxu3 %vm264_vm1, %v234_v4 }
  0x85   : > { %737 = vmatmul.msk.f32.gmra.mxu1 %vm264_vm1, %v206_v5 }
  0x8b   : > { %417 = vmatmul.f32.gmra.mxu0 %v201_v6 }
  0x8c   : > { %462 = vmatmul.f32.gmra.mxu2 %v231_v7  ;;  %752 = vmatmul.msk.f32.gmra.mxu3 %vm264_vm1, %v236_v8 }
  0x8d   : > { %738 = vmatmul.msk.f32.gmra.mxu1 %vm264_vm1, %v208_v9 }
  0x90   : > { %v495_v10 = vpop.f32.mrf.mxu1 }
  0x93   : > { %420 = vmatmul.f32.gmra.mxu0 %v203_v11 }
  0x94   : > { %465 = vmatmul.f32.gmra.mxu2 %v233_v12  ;;  %753 = vmatmul.msk.f32.gmra.mxu3 %vm264_vm1, %v238_v13 }
  0x95   : > { %739 = vmatmul.msk.f32.gmra.mxu1 %vm264_vm1, %v210_v14 }
  0x98   : > { %v498_v15 = vpop.f32.mrf.mxu1 }
  0x9b   : > { %423 = vmatmul.f32.gmra.mxu0 %v205_v16 }
  0x9c   : > { %468 = vmatmul.f32.gmra.mxu2 %v235_v17  ;;  %754 = vmatmul.msk.f32.gmra.mxu3 %vm264_vm1, %v240_v18 }
  0x9d   : > { %740 = vmatmul.msk.f32.gmra.mxu1 %vm264_vm1, %v212_v19 }
  0xa0   : > { %v501_v20 = vpop.f32.mrf.mxu1 }
  0xa4   : > { %471 = vmatmul.f32.gmra.mxu2 %v237_v21 }
  0xa8   : > { %v382_v23 = vpop.f32.mrf.mxu0 }
  0xa9   : > { %v383_v24 = vadd.f32 %v1016_v22, %v382_v23 }
  0xaa   : > { %v504_v25 = vpop.f32.mrf.mxu1 }
  0xab   : > { %v496_v26 = vadd.f32 %v495_v10, %v383_v24 }
  0xad   : > { %v591_v27 = vmax.f32 %v496_v26, 0.0 }
  0xaf   : > { %624 = vst.msk [vmem:[%s1023_s11] sm:$0xff] %vm623_vm2, %v591_v27  ;;  %v1027_v28 = vpop.f32.mrf.mxu2  ;;  %v1029_v29 = vpop.f32.mrf.mxu3 }
  0xb0   : > { %v385_v30 = vpop.f32.mrf.mxu0 }
  0xb1   : > { %v386_v31 = vadd.f32 %v1016_v22, %v385_v30 }
  0xb2   : > { %v507_v32 = vpop.f32.mrf.mxu1 }
  0xb3   : > { %v499_v33 = vadd.f32 %v498_v15, %v386_v31 }
  0xb5   : > { %v592_v34 = vmax.f32 %v499_v33, 0.0 }
  0xb7   : > { %625 = vst.msk [vmem:[%s1023_s11 + $0x8] sm:$0xff] %vm623_vm2, %v592_v34  ;;  %v1034_v35 = vpop.f32.mrf.mxu2  ;;  %v549_v36 = vpop.f32.mrf.mxu3 }
  0xb8   : > { %v388_v37 = vpop.f32.mrf.mxu0 }
  0xb9   : > { %v389_v38 = vadd.f32 %v1016_v22, %v388_v37 }
  0xba   : > { %v510_v39 = vpop.f32.mrf.mxu1 }
  0xbb   : > { %v502_v40 = vadd.f32 %v501_v20, %v389_v38 }
  0xbd   : > { %v593_v41 = vmax.f32 %v502_v40, 0.0 }
  0xbf   : > { %626 = vst.msk [vmem:[%s1023_s11 + $0x10] sm:$0xff] %vm623_vm2, %v593_v41  ;;  %v1039_v42 = vpop.f32.mrf.mxu2  ;;  %v552_v43 = vpop.f32.mrf.mxu3 }
  0xc0   : > { %v391_v44 = vpop.f32.mrf.mxu0 }
  0xc1   : > { %v392_v45 = vadd.f32 %v1016_v22, %v391_v44 }
  0xc2   : > { %v513_v46 = vpop.f32.mrf.mxu1 }
  0xc3   : > { %v505_v47 = vadd.f32 %v504_v25, %v392_v45 }
  0xc5   : > { %v594_v48 = vmax.f32 %v505_v47, 0.0 }
  0xc7   : > { %627 = vst.msk [vmem:[%s1023_s11 + $0x18] sm:$0xff] %vm623_vm2, %v594_v48  ;;  %v436_v49 = vpop.f32.mrf.mxu2  ;;  %v555_v50 = vpop.f32.mrf.mxu3 }
  0xc8   : > { %v437_v51 = vadd.f32 %v1016_v22, %v436_v49  ;;  %v394_v52 = vpop.f32.mrf.mxu0 }
  0xc9   : > { %v395_v53 = vadd.f32 %v1016_v22, %v394_v52 }
  0xca   : > { %v550_v54 = vadd.f32 %v549_v36, %v437_v51  ;;  %v516_v55 = vpop.f32.mrf.mxu1 }
  0xcb   : > { %v508_v56 = vadd.f32 %v507_v32, %v395_v53 }
  0xcc   : > { %v609_v57 = vmax.f32 %v550_v54, 0.0 }
  0xcd   : > { %v595_v58 = vmax.f32 %v508_v56, 0.0 }
  0xce   : > { %642 = vst.msk [vmem:[%s1023_s11 + $0x90] sm:$0xff] %vm623_vm2, %v609_v57 }
  0xcf   : > { %628 = vst.msk [vmem:[%s1023_s11 + $0x20] sm:$0xff] %vm623_vm2, %v595_v58  ;;  %v439_v59 = vpop.f32.mrf.mxu2  ;;  %v558_v60 = vpop.f32.mrf.mxu3 }
  0xd0   : > { %v440_v61 = vadd.f32 %v1016_v22, %v439_v59  ;;  %v397_v62 = vpop.f32.mrf.mxu0 }
  0xd1   : > { %v398_v63 = vadd.f32 %v1016_v22, %v397_v62 }
  0xd2   : > { %v553_v0 = vadd.f32 %v552_v43, %v440_v61  ;;  %v519_v1 = vpop.f32.mrf.mxu1 }
  0xd3   : > { %v511_v2 = vadd.f32 %v510_v39, %v398_v63 }
  0xd4   : > { %v610_v3 = vmax.f32 %v553_v0, 0.0 }
  0xd5   : > { %v596_v4 = vmax.f32 %v511_v2, 0.0 }
  0xd6   : > { %643 = vst.msk [vmem:[%s1023_s11 + $0x98] sm:$0xff] %vm623_vm2, %v610_v3 }
  0xd7   : > { %629 = vst.msk [vmem:[%s1023_s11 + $0x28] sm:$0xff] %vm623_vm2, %v596_v4  ;;  %v442_v5 = vpop.f32.mrf.mxu2  ;;  %v561_v6 = vpop.f32.mrf.mxu3 }
  0xd8   : > { %v443_v7 = vadd.f32 %v1016_v22, %v442_v5  ;;  %v400_v8 = vpop.f32.mrf.mxu0 }
  0xd9   : > { %v401_v9 = vadd.f32 %v1016_v22, %v400_v8 }
  0xda   : > { %v556_v10 = vadd.f32 %v555_v50, %v443_v7  ;;  %v522_v11 = vpop.f32.mrf.mxu1 }
  0xdb   : > { %v514_v12 = vadd.f32 %v513_v46, %v401_v9 }
  0xdc   : > { %v611_v13 = vmax.f32 %v556_v10, 0.0  ;;  %v428_v10 = vadd.f32 %v1016_v22, %v1027_v28 }
  0xdd   : > { %v597_v14 = vmax.f32 %v514_v12, 0.0 }
  0xde   : > { %644 = vst.msk [vmem:[%s1023_s11 + $0xa0] sm:$0xff] %vm623_vm2, %v611_v13 }
  0xdf   : > { %630 = vst.msk [vmem:[%s1023_s11 + $0x30] sm:$0xff] %vm623_vm2, %v597_v14  ;;  %v445_v15 = vpop.f32.mrf.mxu2  ;;  %v564_v16 = vpop.f32.mrf.mxu3 }
  0xe0   : > { %v446_v17 = vadd.f32 %v1016_v22, %v445_v15  ;;  %v403_v18 = vpop.f32.mrf.mxu0 }
  0xe1   : > { %v404_v19 = vadd.f32 %v1016_v22, %v403_v18 }
  0xe2   : > { %v559_v20 = vadd.f32 %v558_v60, %v446_v17  ;;  %v525_v21 = vpop.f32.mrf.mxu1 }
  0xe3   : > { %v517_v23 = vadd.f32 %v516_v55, %v404_v19 }
  0xe4   : > { %v612_v24 = vmax.f32 %v559_v20, 0.0 }
  0xe5   : > { %v598_v25 = vmax.f32 %v517_v23, 0.0  ;;  %v431_v23 = vadd.f32 %v1016_v22, %v1034_v35 }
  0xe6   : > { %645 = vst.msk [vmem:[%s1023_s11 + $0xa8] sm:$0xff] %vm623_vm2, %v612_v24 }
  0xe7   : > { %631 = vst.msk [vmem:[%s1023_s11 + $0x38] sm:$0xff] %vm623_vm2, %v598_v25  ;;  %v448_v26 = vpop.f32.mrf.mxu2  ;;  %v567_v27 = vpop.f32.mrf.mxu3 }
  0xe8   : > { %v449_v30 = vadd.f32 %v1016_v22, %v448_v26  ;;  %v406_v31 = vpop.f32.mrf.mxu0 }
  0xe9   : > { %v407_v32 = vadd.f32 %v1016_v22, %v406_v31 }
  0xea   : > { %v562_v33 = vadd.f32 %v561_v6, %v449_v30  ;;  %v528_v34 = vpop.f32.mrf.mxu1 }
  0xeb   : > { %v520_v36 = vadd.f32 %v519_v1, %v407_v32 }
  0xec   : > { %v613_v37 = vmax.f32 %v562_v33, 0.0 }
  0xed   : > { %v599_v38 = vmax.f32 %v520_v36, 0.0 }
  0xee   : > { %646 = vst.msk [vmem:[%s1023_s11 + $0xb0] sm:$0xff] %vm623_vm2, %v613_v37 }
  0xef   : > { %632 = vst.msk [vmem:[%s1023_s11 + $0x40] sm:$0xff] %vm623_vm2, %v599_v38  ;;  %v451_v39 = vpop.f32.mrf.mxu2  ;;  %v570_v40 = vpop.f32.mrf.mxu3  ;;  %v434_v38 = vadd.f32 %v1016_v22, %v1039_v42 }
  0xf0   : > { %v452_v41 = vadd.f32 %v1016_v22, %v451_v39  ;;  %v409_v43 = vpop.f32.mrf.mxu0 }
  0xf1   : > { %v410_v44 = vadd.f32 %v1016_v22, %v409_v43 }
  0xf2   : > { %v565_v45 = vadd.f32 %v564_v16, %v452_v41  ;;  %v531_v46 = vpop.f32.mrf.mxu1 }
  0xf3   : > { %v523_v47 = vadd.f32 %v522_v11, %v410_v44 }
  0xf4   : > { %v614_v48 = vmax.f32 %v565_v45, 0.0 }
  0xf5   : > { %v600_v49 = vmax.f32 %v523_v47, 0.0 }
  0xf6   : > { %647 = vst.msk [vmem:[%s1023_s11 + $0xb8] sm:$0xff] %vm623_vm2, %v614_v48  ;;  %v476_v48 = vadd.f32 %v1016_v22, %v1029_v29 }
  0xf7   : > { %633 = vst.msk [vmem:[%s1023_s11 + $0x48] sm:$0xff] %vm623_vm2, %v600_v49  ;;  %v454_v50 = vpop.f32.mrf.mxu2  ;;  %v573_v51 = vpop.f32.mrf.mxu3 }
  0xf8   : > { %v455_v52 = vadd.f32 %v1016_v22, %v454_v50  ;;  %v412_v53 = vpop.f32.mrf.mxu0 }
  0xf9   : > { %v413_v54 = vadd.f32 %v1016_v22, %v412_v53 }
  0xfa   : > { %v568_v55 = vadd.f32 %v567_v27, %v455_v52  ;;  %v534_v56 = vpop.f32.mrf.mxu1 }
  0xfb   : > { %v526_v57 = vadd.f32 %v525_v21, %v413_v54 }
  0xfc   : > { %v615_v58 = vmax.f32 %v568_v55, 0.0 }
  0xfd   : > { %v601_v59 = vmax.f32 %v526_v57, 0.0 }
  0xfe   : > { %648 = vst.msk [vmem:[%s1023_s11 + $0xc0] sm:$0xff] %vm623_vm2, %v615_v58 }
  0xff   : > { %634 = vst.msk [vmem:[%s1023_s11 + $0x50] sm:$0xff] %vm623_vm2, %v601_v59  ;;  %v457_v60 = vpop.f32.mrf.mxu2  ;;  %v576_v61 = vpop.f32.mrf.mxu3 }
 0x100   : > { %v458_v62 = vadd.f32 %v1016_v22, %v457_v60  ;;  %v415_v63 = vpop.f32.mrf.mxu0 }
 0x101   : > { %v416_v0 = vadd.f32 %v1016_v22, %v415_v63 }
 0x102   : > { %v571_v1 = vadd.f32 %v570_v40, %v458_v62  ;;  %v537_v2 = vpop.f32.mrf.mxu1 }
 0x103   : > { %v529_v3 = vadd.f32 %v528_v34, %v416_v0 }
 0x104   : > { %v616_v4 = vmax.f32 %v571_v1, 0.0 }
 0x105   : > { %v602_v5 = vmax.f32 %v529_v3, 0.0 }
 0x106   : > { %649 = vst.msk [vmem:[%s1023_s11 + $0xc8] sm:$0xff] %vm623_vm2, %v616_v4 }
 0x107   : > { %635 = vst.msk [vmem:[%s1023_s11 + $0x58] sm:$0xff] %vm623_vm2, %v602_v5  ;;  %v460_v6 = vpop.f32.mrf.mxu2  ;;  %v579_v7 = vpop.f32.mrf.mxu3 }
 0x108   : > { %v461_v8 = vadd.f32 %v1016_v22, %v460_v6  ;;  %v418_v9 = vpop.f32.mrf.mxu0 }
 0x109   : > { %v419_v11 = vadd.f32 %v1016_v22, %v418_v9 }
 0x10a   : > { %v574_v12 = vadd.f32 %v573_v51, %v461_v8  ;;  %v540_v13 = vpop.f32.mrf.mxu1 }
 0x10b   : > { %v532_v14 = vadd.f32 %v531_v46, %v419_v11  ;;  %v541_v15 = vadd.f32 %v540_v13, %v428_v10 }
 0x10c   : > { %v617_v16 = vmax.f32 %v574_v12, 0.0 }
 0x10d   : > { %v603_v17 = vmax.f32 %v532_v14, 0.0  ;;  %v606_v18 = vmax.f32 %v541_v15, 0.0 }
 0x10e   : > { %650 = vst.msk [vmem:[%s1023_s11 + $0xd0] sm:$0xff] %vm623_vm2, %v617_v16 }
 0x10f   : > { %636 = vst.msk [vmem:[%s1023_s11 + $0x60] sm:$0xff] %vm623_vm2, %v603_v17  ;;  %v463_v19 = vpop.f32.mrf.mxu2  ;;  %v582_v20 = vpop.f32.mrf.mxu3 }
 0x110   : > { %639 = vst.msk [vmem:[%s1023_s11 + $0x78] sm:$0xff] %vm623_vm2, %v606_v18  ;;  %v464_v28 = vadd.f32 %v1016_v22, %v463_v19  ;;  %v421_v21 = vpop.f32.mrf.mxu0 }
 0x111   : > { %v422_v24 = vadd.f32 %v1016_v22, %v421_v21 }
 0x112   : > { %v577_v25 = vadd.f32 %v576_v61, %v464_v28  ;;  %v543_v26 = vpop.f32.mrf.mxu1 }
 0x113   : > { %v535_v27 = vadd.f32 %v534_v56, %v422_v24  ;;  %v544_v30 = vadd.f32 %v543_v26, %v431_v23 }
 0x114   : > { %v618_v31 = vmax.f32 %v577_v25, 0.0 }
 0x115   : > { %v604_v32 = vmax.f32 %v535_v27, 0.0  ;;  %v607_v33 = vmax.f32 %v544_v30, 0.0 }
 0x116   : > { %651 = vst.msk [vmem:[%s1023_s11 + $0xd8] sm:$0xff] %vm623_vm2, %v618_v31 }
 0x117   : > { %637 = vst.msk [vmem:[%s1023_s11 + $0x68] sm:$0xff] %vm623_vm2, %v604_v32  ;;  %v466_v34 = vpop.f32.mrf.mxu2  ;;  %v585_v36 = vpop.f32.mrf.mxu3 }
 0x118   : > { %640 = vst.msk [vmem:[%s1023_s11 + $0x80] sm:$0xff] %vm623_vm2, %v607_v33  ;;  %v467_v35 = vadd.f32 %v1016_v22, %v466_v34  ;;  %v424_v37 = vpop.f32.mrf.mxu0 }
 0x119   : > { %v425_v39 = vadd.f32 %v1016_v22, %v424_v37 }
 0x11a   : > { %v580_v40 = vadd.f32 %v579_v7, %v467_v35  ;;  %v546_v41 = vpop.f32.mrf.mxu1 }
 0x11b   : > { %v538_v43 = vadd.f32 %v537_v2, %v425_v39  ;;  %v547_v44 = vadd.f32 %v546_v41, %v434_v38 }
 0x11c   : > { %v619_v45 = vmax.f32 %v580_v40, 0.0 }
 0x11d   : > { %v605_v46 = vmax.f32 %v538_v43, 0.0  ;;  %v608_v47 = vmax.f32 %v547_v44, 0.0 }
 0x11e   : > { %652 = vst.msk [vmem:[%s1023_s11 + $0xe0] sm:$0xff] %vm623_vm2, %v619_v45 }
 0x11f   : > { %638 = vst.msk [vmem:[%s1023_s11 + $0x70] sm:$0xff] %vm623_vm2, %v605_v46  ;;  %v469_v42 = vpop.f32.mrf.mxu2  ;;  %v588_v49 = vpop.f32.mrf.mxu3 }
 0x120   : > { %641 = vst.msk [vmem:[%s1023_s11 + $0x88] sm:$0xff] %vm623_vm2, %v608_v47  ;;  %v470_v50 = vadd.f32 %v1016_v22, %v469_v42  ;;  %v589_v51 = vadd.f32 %v588_v49, %v476_v48 }
 0x122   : > { %v583_v52 = vadd.f32 %v582_v20, %v470_v50  ;;  %v622_v53 = vmax.f32 %v589_v51, 0.0 }
 0x124   : > { %v620_v54 = vmax.f32 %v583_v52, 0.0  ;;  %655 = vst.msk [vmem:[%s1023_s11 + $0xf8] sm:$0xff] %vm623_vm2, %v622_v53 }
 0x126   : > { %653 = vst.msk [vmem:[%s1023_s11 + $0xe8] sm:$0xff] %vm623_vm2, %v620_v54 }
 0x127   : > { %v472_v29 = vpop.f32.mrf.mxu2 }
 0x128   : > { %v473_v55 = vadd.f32 %v1016_v22, %v472_v29 }
 0x12a   : > { %v586_v56 = vadd.f32 %v585_v36, %v473_v55 }
 0x12c   : > { %v621_v57 = vmax.f32 %v586_v56, 0.0 }
 0x12e   : > { %654 = vst.msk [vmem:[%s1023_s11 + $0xf0] sm:$0xff] %vm623_vm2, %v621_v57 }
 0x12f PF: > { %s13_s12 = sadd.s32 1, %s808_s12  }
 0x130   : > { %p10_p4 = scmp.ge.s32.totalorder %s13_s12, 6  }
 0x132   :  { %12 = sbr.rel (!%p10_p4) target bundleno = 1 (0x1), region = 62 }

// kernel: cnn_forward.4
= control target key start
LH: loop header
LB: loop body
LE: loop exit
PB: predicated region body
PF: predicated region fallthrough
CT: control target
= control target key end

     0   :  { %s1676_s12 = smov 0   ;;  %s2782_s0 = inlined_call_operand.vmem [shape: f32[1024,800], index: 0, kind: input, shape index: {}]   ;;  %s2783_s1 = inlined_call_operand.vmem [shape: f32[800,64], index: 1, kind: input, shape index: {}]   ;;  %s2784_s2 = inlined_call_operand.vmem [shape: f32[1,64], index: 2, kind: input, shape index: {}]   ;;  %s2785_s3 = inlined_call_operand.vmem [shape: bf16[1024,64], index: 3, kind: output, shape index: {}]  }
   0x1 LB: > { %s1546_s13 = sadd.s32 4294967295, %s1654_s12   ;;  %p1550_p0 = scmp.ge.s32.totalorder %s1654_s12, 1  ;;  %s1654_s12 = sphi %s1676_s12, %s13_s12  }
   0x2   : > { %p139_p1 = scmp.lt.s32.totalorder %s1654_s12, 5 }
   0x4   : > { %p140_p2 = pnand %p1550_p0, %p139_p1 }
   0x6   : > { %143 = sbr.rel (%p140_p2) target bundleno = 628 (0x274), region = 32 }
   0xb   : > { %v416_v0 = vld [vmem:[%s2783_s1 + $0x78] sm:$0xff]  ;;  %v415_v1 = vld [vmem:[%s2783_s1 + $0x70] sm:$0xff]  ;;  %v414_v3 = vld [vmem:[%s2783_s1 + $0x68] sm:$0xff]  ;;  %s1551_s29 = sshll.u32 %s1546_s13, 5  ;;  %vm505_vm0 = vcmask 261120   ;;  %vm1457_vm1 = vcmask 519168  }
   0xc   : > { %1589 = vmatpush.msra.mxu3 %v416_v0  ;;  %v1693_v2 = vld [vmem:[%s2783_s1 + $0x178] sm:$0xff]  ;;  %602 = vmatpush.msra.mxu0 %v416_v0  ;;  %v1702_v4 = vld [vmem:[%s2783_s1 + $0x170] sm:$0xff]  ;;  %v1712_v6 = vld [vmem:[%s2783_s1 + $0x168] sm:$0xff]  ;;  %p165_p3 = scmp.lt.s32.totalorder %s1551_s29, 127 }
   0xd   : > { %828 = vmatpush.msra.mxu2 %v1693_v2  ;;  %v1707_v5 = vld [vmem:[%s2783_s1 + $0xf8] sm:$0xff]  ;;  %v1717_v7 = vld [vmem:[%s2783_s1 + $0xf0] sm:$0xff]  ;;  %v413_v8 = vld [vmem:[%s2783_s1 + $0x60] sm:$0xff] }
   0xe   : > { %1590 = vmatpush.msra.mxu3 %v415_v1  ;;  %603 = vmatpush.msra.mxu0 %v415_v1  ;;  %v1727_v9 = vld [vmem:[%s2783_s1 + $0x160] sm:$0xff]  ;;  %v1732_v10 = vld [vmem:[%s2783_s1 + $0xe8] sm:$0xff]  ;;  %v412_v11 = vld [vmem:[%s2783_s1 + $0x58] sm:$0xff]  ;;  %s2847_s29 = smov (!%p165_p3, %s1551_s29), 127 }
   0xf   : > { %829 = vmatpush.msra.mxu2 %v1702_v4  ;;  %715 = vmatpush.msra.mxu1 %v1707_v5  ;;  %v1742_v12 = vld [vmem:[%s2783_s1 + $0x158] sm:$0xff]  ;;  %v1747_v13 = vld [vmem:[%s2783_s1 + $0xe0] sm:$0xff]  ;;  %v411_v14 = vld [vmem:[%s2783_s1 + $0x50] sm:$0xff]  ;;  %s1637_s9 = smul.u32 56, %s2847_s29  ;;  %s1554_s24 = sshll.u32 %s2847_s29, 2 }
  0x10   : > { %1591 = vmatpush.msra.mxu3 %v414_v3  ;;  %604 = vmatpush.msra.mxu0 %v414_v3  ;;  %v1757_v15 = vld [vmem:[%s2783_s1 + $0x150] sm:$0xff]  ;;  %v1762_v16 = vld [vmem:[%s2783_s1 + $0xd8] sm:$0xff]  ;;  %v410_v17 = vld [vmem:[%s2783_s1 + $0x48] sm:$0xff]  ;;  %s2544_s28 = scalar_lea.vmem %s2785_s3, %s1554_s24 }
  0x11   : > { %830 = vmatpush.msra.mxu2 %v1712_v6  ;;  %716 = vmatpush.msra.mxu1 %v1717_v7  ;;  %v1772_v18 = vld [vmem:[%s2783_s1 + $0x148] sm:$0xff]  ;;  %v1777_v19 = vld [vmem:[%s2783_s1 + $0xd0] sm:$0xff]  ;;  %v409_v20 = vld [vmem:[%s2783_s1 + $0x40] sm:$0xff]  ;;  %s1897_s26 = scalar_lea.vmem %s2782_s0, %s1637_s9 }
  0x12   : > { %1592 = vmatpush.msra.mxu3 %v413_v8  ;;  %605 = vmatpush.msra.mxu0 %v413_v8  ;;  %v1789_v21 = vld [vmem:[%s2783_s1 + $0x140] sm:$0xff]  ;;  %v1794_v22 = vld [vmem:[%s2783_s1 + $0xc8] sm:$0xff]  ;;  %v408_v23 = vld [vmem:[%s2783_s1 + $0x38] sm:$0xff] }
  0x13   : > { %831 = vmatpush.msra.mxu2 %v1727_v9  ;;  %717 = vmatpush.msra.mxu1 %v1732_v10  ;;  %v1804_v24 = vld [vmem:[%s2783_s1 + $0x138] sm:$0xff]  ;;  %v1809_v25 = vld [vmem:[%s2783_s1 + $0xc0] sm:$0xff]  ;;  %v407_v26 = vld [vmem:[%s2783_s1 + $0x30] sm:$0xff] }
  0x14   : > { %1593 = vmatpush.msra.mxu3 %v412_v11  ;;  %606 = vmatpush.msra.mxu0 %v412_v11  ;;  %v1819_v27 = vld [vmem:[%s2783_s1 + $0x130] sm:$0xff]  ;;  %v1824_v28 = vld [vmem:[%s2783_s1 + $0xb8] sm:$0xff]  ;;  %v406_v29 = vld [vmem:[%s2783_s1 + $0x28] sm:$0xff] }
  0x15   : > { %832 = vmatpush.msra.mxu2 %v1742_v12  ;;  %718 = vmatpush.msra.mxu1 %v1747_v13  ;;  %v1837_v30 = vld [vmem:[%s2783_s1 + $0x128] sm:$0xff]  ;;  %v1842_v31 = vld [vmem:[%s2783_s1 + $0xb0] sm:$0xff]  ;;  %v405_v32 = vld [vmem:[%s2783_s1 + $0x20] sm:$0xff] }
  0x16   : > { %1594 = vmatpush.msra.mxu3 %v411_v14  ;;  %607 = vmatpush.msra.mxu0 %v411_v14  ;;  %v1852_v33 = vld [vmem:[%s2783_s1 + $0x120] sm:$0xff]  ;;  %v1857_v34 = vld [vmem:[%s2783_s1 + $0xa8] sm:$0xff]  ;;  %v404_v35 = vld [vmem:[%s2783_s1 + $0x18] sm:$0xff] }
  0x17   : > { %833 = vmatpush.msra.mxu2 %v1757_v15  ;;  %719 = vmatpush.msra.mxu1 %v1762_v16  ;;  %v1868_v36 = vld [vmem:[%s2783_s1 + $0x118] sm:$0xff]  ;;  %v1873_v37 = vld [vmem:[%s2783_s1 + $0xa0] sm:$0xff]  ;;  %v403_v38 = vld [vmem:[%s2783_s1 + $0x10] sm:$0xff] }
  0x18   : > { %1595 = vmatpush.msra.mxu3 %v410_v17  ;;  %608 = vmatpush.msra.mxu0 %v410_v17  ;;  %v1883_v39 = vld [vmem:[%s2783_s1 + $0x110] sm:$0xff]  ;;  %v1888_v40 = vld [vmem:[%s2783_s1 + $0x98] sm:$0xff]  ;;  %v402_v41 = vld [vmem:[%s2783_s1 + $0x8] sm:$0xff] }
  0x19   : > { %834 = vmatpush.msra.mxu2 %v1772_v18  ;;  %720 = vmatpush.msra.mxu1 %v1777_v19  ;;  %v1903_v42 = vld [vmem:[%s2783_s1 + $0x108] sm:$0xff]  ;;  %v1908_v43 = vld [vmem:[%s2783_s1 + $0x90] sm:$0xff]  ;;  %v401_v44 = vld [vmem:[%s2783_s1] sm:$0xff] }
  0x1a   : > { %1596 = vmatpush.msra.mxu3 %v409_v20  ;;  %609 = vmatpush.msra.mxu0 %v409_v20  ;;  %v345_v45 = vld [vmem:[%s1897_s26 + $0x540] sm:$0xff]  ;;  %v179_v47 = vld [vmem:[%s1897_s26 + $0x10] sm:$0xff]  ;;  %v500_v48 = vld [vmem:[%s2783_s1 + $0x318] sm:$0xff] }
  0x1b   : > { %835 = vmatpush.msra.mxu2 %v1789_v21  ;;  %721 = vmatpush.msra.mxu1 %v1794_v22  ;;  %v1919_v46 = vld [vmem:[%s2783_s1 + $0x100] sm:$0xff]  ;;  %v1930_v49 = vld [vmem:[%s2783_s1 + $0x88] sm:$0xff]  ;;  %v480_v51 = vld [vmem:[%s2783_s1 + $0x278] sm:$0xff] }
  0x1c   : > { %1597 = vmatpush.msra.mxu3 %v408_v23  ;;  %610 = vmatpush.msra.mxu0 %v408_v23  ;;  %v177_v50 = vld [vmem:[%s1897_s26] sm:$0xff]  ;;  %v178_v53 = vld [vmem:[%s1897_s26 + $0x8] sm:$0xff]  ;;  %v496_v54 = vld [vmem:[%s2783_s1 + $0x2f8] sm:$0xff] }
  0x1d   : > { %836 = vmatpush.msra.mxu2 %v1804_v24  ;;  %722 = vmatpush.msra.mxu1 %v1809_v25  ;;  %v1941_v52 = vld [vmem:[%s2783_s1 + $0x80] sm:$0xff]  ;;  %v479_v55 = vld [vmem:[%s2783_s1 + $0x270] sm:$0xff]  ;;  %v352_v56 = vld [vmem:[%s1897_s26 + $0x578] sm:$0xff] }
  0x1e   : > { %1598 = vmatpush.msra.mxu3 %v407_v26  ;;  %611 = vmatpush.msra.mxu0 %v407_v26  ;;  %v495_v57 = vld [vmem:[%s2783_s1 + $0x2f0] sm:$0xff]  ;;  %v186_v58 = vld [vmem:[%s1897_s26 + $0x48] sm:$0xff]  ;;  %v184_v61 = vld [vmem:[%s1897_s26 + $0x38] sm:$0xff] }
  0x1f   : > { %837 = vmatpush.msra.mxu2 %v1819_v27  ;;  %723 = vmatpush.msra.mxu1 %v1824_v28  ;;  %v478_v59 = vld [vmem:[%s2783_s1 + $0x268] sm:$0xff]  ;;  %v477_v62 = vld [vmem:[%s2783_s1 + $0x260] sm:$0xff]  ;;  %v359_v1 = vld [vmem:[%s1897_s26 + $0x5b0] sm:$0xff] }
  0x20   : > { %1599 = vmatpush.msra.mxu3 %v406_v29  ;;  %612 = vmatpush.msra.mxu0 %v406_v29  ;;  %v494_v60 = vld [vmem:[%s2783_s1 + $0x2e8] sm:$0xff]  ;;  %v493_v63 = vld [vmem:[%s2783_s1 + $0x2e0] sm:$0xff]  ;;  %v192_v8 = vld [vmem:[%s1897_s26 + $0x78] sm:$0xff] }
  0x21   : > { %838 = vmatpush.msra.mxu2 %v1837_v30  ;;  %724 = vmatpush.msra.mxu1 %v1842_v31  ;;  %v185_v0 = vld [vmem:[%s1897_s26 + $0x40] sm:$0xff]  ;;  %v200_v11 = vld [vmem:[%s1897_s26 + $0xb8] sm:$0xff]  ;;  %v199_v17 = vld [vmem:[%s1897_s26 + $0xb0] sm:$0xff] }
  0x22   : > { %1600 = vmatpush.msra.mxu3 %v405_v32  ;;  %613 = vmatpush.msra.mxu0 %v405_v32  ;;  %v193_v3 = vld [vmem:[%s1897_s26 + $0x80] sm:$0xff]  ;;  %v476_v14 = vld [vmem:[%s2783_s1 + $0x258] sm:$0xff]  ;;  %v207_v20 = vld [vmem:[%s1897_s26 + $0xf0] sm:$0xff] }
  0x23   : > { %839 = vmatpush.msra.mxu2 %v1852_v33  ;;  %725 = vmatpush.msra.mxu1 %v1857_v34  ;;  %v475_v23 = vld [vmem:[%s2783_s1 + $0x250] sm:$0xff]  ;;  %v206_v26 = vld [vmem:[%s1897_s26 + $0xe8] sm:$0xff]  ;;  %v220_v32 = vld [vmem:[%s1897_s26 + $0x158] sm:$0xff] }
  0x24   : > { %1601 = vmatpush.msra.mxu3 %v404_v35  ;;  %614 = vmatpush.msra.mxu0 %v404_v35  ;;  %v214_v29 = vld [vmem:[%s1897_s26 + $0x128] sm:$0xff]  ;;  %v473_v35 = vld [vmem:[%s2783_s1 + $0x240] sm:$0xff] }
  0x25   : > { %840 = vmatpush.msra.mxu2 %v1868_v36  ;;  %726 = vmatpush.msra.mxu1 %v1873_v37 }
  0x26   : > { %1602 = vmatpush.msra.mxu3 %v403_v38  ;;  %615 = vmatpush.msra.mxu0 %v403_v38  ;;  %v233_v38 = vld [vmem:[%s1897_s26 + $0x1c0] sm:$0xff] }
  0x27   : > { %841 = vmatpush.msra.mxu2 %v1883_v39  ;;  %727 = vmatpush.msra.mxu1 %v1888_v40 }
  0x28   : > { %1603 = vmatpush.msra.mxu3 %v402_v41  ;;  %616 = vmatpush.msra.mxu0 %v402_v41  ;;  %v240_v41 = vld [vmem:[%s1897_s26 + $0x1f8] sm:$0xff] }
  0x29   : > { %842 = vmatpush.msra.mxu2 %v1903_v42  ;;  %728 = vmatpush.msra.mxu1 %v1908_v43 }
  0x2a   : > { %1604 = vmatpush.msra.mxu3 %v401_v44  ;;  %617 = vmatpush.msra.mxu0 %v401_v44  ;;  %v241_v44 = vld [vmem:[%s1897_s26 + $0x200] sm:$0xff] }
  0x2b   : > { %690 = vmatmul.f32.vlgmr.msra.gmra.mxu3 %v345_v45  ;;  %843 = vmatpush.msra.mxu2 %v1919_v46  ;;  %v360_v45 = vld [vmem:[%s1897_s26 + $0x5b8] sm:$0xff] }
  0x2c   : > { %1605 = vmatpush.msrb.mxu3 %v1707_v5  ;;  %844 = vmatmul.f32.vlgmr.msra.gmra.mxu2 %v179_v47  ;;  %v191_v5 = vld [vmem:[%s1897_s26 + $0x70] sm:$0xff] }
  0x2d   : > { %1292 = vmatpush.msrb.mxu2 %v500_v48  ;;  %729 = vmatpush.msra.mxu1 %v1930_v49  ;;  %v247_v47 = vld [vmem:[%s1897_s26 + $0x230] sm:$0xff] }
  0x2e   : > { %1606 = vmatpush.msrb.mxu3 %v1717_v7  ;;  %618 = vmatmul.f32.vlgmr.msra.gmra.mxu0 %v177_v50  ;;  %v499_v7 = vld [vmem:[%s2783_s1 + $0x310] sm:$0xff]  ;;  %v248_v50 = vld [vmem:[%s1897_s26 + $0x238] sm:$0xff] }
  0x2f   : > { %1054 = vmatpush.msrb.mxu0 %v480_v51  ;;  %730 = vmatpush.msra.mxu1 %v1941_v52  ;;  %v471_v48 = vld [vmem:[%s2783_s1 + $0x230] sm:$0xff] }
  0x30   : > { %1607 = vmatpush.msrb.mxu3 %v1732_v10  ;;  %731 = vmatmul.f32.vlgmr.msra.gmra.mxu1 %v178_v53  ;;  %v366_v10 = vld [vmem:[%s1897_s26 + $0x5e8] sm:$0xff]  ;;  %v367_v51 = vld [vmem:[%s1897_s26 + $0x5f0] sm:$0xff] }
  0x31   : > { %1167 = vmatpush.msrb.mxu1 %v496_v54  ;;  %1055 = vmatpush.msrb.mxu0 %v479_v55  ;;  %v254_v53 = vld [vmem:[%s1897_s26 + $0x268] sm:$0xff]  ;;  %v255_v54 = vld [vmem:[%s1897_s26 + $0x270] sm:$0xff] }
  0x32   : > { %1608 = vmatpush.msrb.mxu3 %v1747_v13  ;;  %1293 = vmatpush.msrb.mxu2 %v499_v7  ;;  %v198_v13 = vld [vmem:[%s1897_s26 + $0xa8] sm:$0xff]  ;;  %v461_v7 = vld [vmem:[%s2783_s1 + $0x1e0] sm:$0xff] }
  0x33   : > { %693 = vmatmul.f32.gmra.mxu3 %v352_v56  ;;  %1168 = vmatpush.msrb.mxu1 %v495_v57  ;;  %v374_v55 = vld [vmem:[%s1897_s26 + $0x628] sm:$0xff]  ;;  %v263_v56 = vld [vmem:[%s1897_s26 + $0x2b0] sm:$0xff]  ;;  %v261_v57 = vld [vmem:[%s1897_s26 + $0x2a0] sm:$0xff] }
  0x34   : > { %847 = vmatmul.f32.gmra.mxu2 %v186_v58  ;;  %1609 = vmatpush.msrb.mxu3 %v1762_v16  ;;  %v492_v16 = vld [vmem:[%s2783_s1 + $0x2d8] sm:$0xff] }
  0x35   : > { %1056 = vmatpush.msrb.mxu0 %v478_v59  ;;  %1169 = vmatpush.msrb.mxu1 %v494_v60  ;;  %v464_v58 = vld [vmem:[%s2783_s1 + $0x1f8] sm:$0xff]  ;;  %v470_v59 = vld [vmem:[%s2783_s1 + $0x228] sm:$0xff] }
  0x36   : > { %621 = vmatmul.f32.gmra.mxu0 %v184_v61  ;;  %1610 = vmatpush.msrb.mxu3 %v1777_v19  ;;  %v373_v19 = vld [vmem:[%s1897_s26 + $0x620] sm:$0xff]  ;;  %v486_v60 = vld [vmem:[%s2783_s1 + $0x2a8] sm:$0xff] }
  0x37   : > { %1057 = vmatpush.msrb.mxu0 %v477_v62  ;;  %1170 = vmatpush.msrb.mxu1 %v493_v63  ;;  %v262_v61 = vld [vmem:[%s1897_s26 + $0x2a8] sm:$0xff]  ;;  %v463_v62 = vld [vmem:[%s2783_s1 + $0x1f0] sm:$0xff]  ;;  %v381_v63 = vld [vmem:[%s1897_s26 + $0x660] sm:$0xff] }
  0x38   : > { %734 = vmatmul.f32.gmra.mxu1 %v185_v0  ;;  %1611 = vmatpush.msrb.mxu3 %v1794_v22  ;;  %v205_v22 = vld [vmem:[%s1897_s26 + $0xe0] sm:$0xff]  ;;  %v270_v0 = vld [vmem:[%s1897_s26 + $0x2e8] sm:$0xff] }
  0x39   : > { %1058 = vmatpush.msrb.mxu0 %v476_v14  ;;  %1171 = vmatpush.msrb.mxu1 %v492_v16  ;;  %v275_v14 = vld [vmem:[%s1897_s26 + $0x310] sm:$0xff]  ;;  %v460_v16 = vld [vmem:[%s2783_s1 + $0x1d8] sm:$0xff] }
  0x3a   : > { %1612 = vmatpush.msrb.mxu3 %v1809_v25  ;;  %v491_v25 = vld [vmem:[%s2783_s1 + $0x2d0] sm:$0xff] }
  0x3b   : > { %696 = vmatmul.f32.gmra.mxu3 %v359_v1  ;;  %1059 = vmatpush.msrb.mxu0 %v475_v23  ;;  %v268_v1 = vld [vmem:[%s1897_s26 + $0x2d8] sm:$0xff] }
  0x3c   : > { %850 = vmatmul.f32.gmra.mxu2 %v193_v3  ;;  %1613 = vmatpush.msrb.mxu3 %v1824_v28  ;;  %v380_v28 = vld [vmem:[%s1897_s26 + $0x658] sm:$0xff]  ;;  %v462_v3 = vld [vmem:[%s2783_s1 + $0x1e8] sm:$0xff] }
  0x3d   : > { %1172 = vmatpush.msrb.mxu1 %v491_v25  ;;  %v284_v23 = vld [vmem:[%s1897_s26 + $0x358] sm:$0xff]  ;;  %v282_v25 = vld [vmem:[%s1897_s26 + $0x348] sm:$0xff] }
  0x3e   : > { %624 = vmatmul.f32.gmra.mxu0 %v191_v5  ;;  %1614 = vmatpush.msrb.mxu3 %v1842_v31  ;;  %v213_v31 = vld [vmem:[%s1897_s26 + $0x120] sm:$0xff] }
  0x3f   : > { %v269_v5 = vld [vmem:[%s1897_s26 + $0x2e0] sm:$0xff] }
  0x40   : > { %737 = vmatmul.f32.gmra.mxu1 %v192_v8  ;;  %1615 = vmatpush.msrb.mxu3 %v1857_v34  ;;  %v226_v34 = vld [vmem:[%s1897_s26 + $0x188] sm:$0xff]  ;;  %v469_v8 = vld [vmem:[%s2783_s1 + $0x220] sm:$0xff] }
  0x42   : > { %1616 = vmatpush.msrb.mxu3 %v1873_v37  ;;  %v235_v37 = vld [vmem:[%s1897_s26 + $0x1d0] sm:$0xff] }
  0x43   : > { %699 = vmatmul.f32.gmra.mxu3 %v366_v10  ;;  %v388_v10 = vld [vmem:[%s1897_s26 + $0x698] sm:$0xff] }
  0x44   : > { %853 = vmatmul.f32.gmra.mxu2 %v200_v11  ;;  %1617 = vmatpush.msrb.mxu3 %v1888_v40  ;;  %v498_v40 = vld [vmem:[%s2783_s1 + $0x308] sm:$0xff]  ;;  %v485_v11 = vld [vmem:[%s2783_s1 + $0x2a0] sm:$0xff] }
  0x45   : > { %1294 = vmatpush.msrb.mxu2 %v498_v40  ;;  %v296_v40 = vld [vmem:[%s1897_s26 + $0x3b8] sm:$0xff] }
  0x46   : > { %627 = vmatmul.f32.gmra.mxu0 %v198_v13  ;;  %1618 = vmatpush.msrb.mxu3 %v1908_v43  ;;  %v472_v43 = vld [vmem:[%s2783_s1 + $0x238] sm:$0xff]  ;;  %v277_v13 = vld [vmem:[%s1897_s26 + $0x320] sm:$0xff] }
  0x48   : > { %740 = vmatmul.f32.gmra.mxu1 %v199_v17  ;;  %1619 = vmatpush.msrb.mxu3 %v1930_v49  ;;  %v487_v49 = vld [vmem:[%s2783_s1 + $0x2b0] sm:$0xff]  ;;  %v276_v17 = vld [vmem:[%s1897_s26 + $0x318] sm:$0xff] }
  0x4a   : > { %1620 = vmatpush.msrb.mxu3 %v1941_v52  ;;  %v256_v52 = vld [vmem:[%s1897_s26 + $0x278] sm:$0xff] }
  0x4b   : > { %702 = vmatmul.f32.gmra.mxu3 %v373_v19  ;;  %v459_v19 = vld [vmem:[%s2783_s1 + $0x1d0] sm:$0xff] }
  0x4c   : > { %856 = vmatmul.f32.gmra.mxu2 %v207_v20  ;;  %1621 = vmatpush.msra.mxu3 %v1693_v2  ;;  %v212_v2 = vld [vmem:[%s1897_s26 + $0x118] sm:$0xff]  ;;  %v497_v20 = vld [vmem:[%s2783_s1 + $0x300] sm:$0xff] }
  0x4d   : > { %1295 = vmatpush.msrb.mxu2 %v497_v20  ;;  %v326_v20 = vld [vmem:[%s1897_s26 + $0x4a8] sm:$0xff] }
  0x4e   : > { %630 = vmatmul.f32.gmra.mxu0 %v205_v22  ;;  %1622 = vmatpush.msra.mxu3 %v1702_v4  ;;  %v387_v4 = vld [vmem:[%s1897_s26 + $0x690] sm:$0xff] }
  0x4f   : > { %v395_v22 = vld [vmem:[%s1897_s26 + $0x6d0] sm:$0xff] }
  0x50   : > { %743 = vmatmul.f32.gmra.mxu1 %v206_v26  ;;  %1623 = vmatpush.msra.mxu3 %v1712_v6  ;;  %v221_v6 = vld [vmem:[%s1897_s26 + $0x160] sm:$0xff]  ;;  %v458_v26 = vld [vmem:[%s2783_s1 + $0x1c8] sm:$0xff] }
  0x52   : > { %1624 = vmatpush.msra.mxu3 %v1727_v9  ;;  %v219_v9 = vld [vmem:[%s1897_s26 + $0x150] sm:$0xff] }
  0x53   : > { %705 = vmatmul.f32.gmra.mxu3 %v380_v28  ;;  %v468_v28 = vld [vmem:[%s2783_s1 + $0x218] sm:$0xff] }
  0x54   : > { %859 = vmatmul.f32.gmra.mxu2 %v214_v29  ;;  %1625 = vmatpush.msra.mxu3 %v1742_v12  ;;  %v474_v12 = vld [vmem:[%s2783_s1 + $0x248] sm:$0xff]  ;;  %v484_v29 = vld [vmem:[%s2783_s1 + $0x298] sm:$0xff] }
  0x55   : > { %1060 = vmatpush.msrb.mxu0 %v474_v12  ;;  %v289_v12 = vld [vmem:[%s1897_s26 + $0x380] sm:$0xff] }
  0x56   : > { %633 = vmatmul.f32.gmra.mxu0 %v212_v2  ;;  %1626 = vmatpush.msra.mxu3 %v1757_v15  ;;  %v490_v15 = vld [vmem:[%s2783_s1 + $0x2c8] sm:$0xff]  ;;  %v283_v2 = vld [vmem:[%s1897_s26 + $0x350] sm:$0xff] }
  0x57   : > { %1173 = vmatpush.msrb.mxu1 %v490_v15  ;;  %1061 = vmatpush.msrb.mxu0 %v473_v35  ;;  %v456_v15 = vld [vmem:[%s2783_s1 + $0x1b8] sm:$0xff]  ;;  %v455_v35 = vld [vmem:[%s2783_s1 + $0x1b0] sm:$0xff] }
  0x58   : > { %746 = vmatmul.f32.gmra.mxu1 %v213_v31  ;;  %1627 = vmatpush.msra.mxu3 %v1772_v18  ;;  %v394_v18 = vld [vmem:[%s1897_s26 + $0x6c8] sm:$0xff]  ;;  %v457_v31 = vld [vmem:[%s2783_s1 + $0x1c0] sm:$0xff] }
  0x59   : > { %1062 = vmatpush.msrb.mxu0 %v472_v43 }
  0x5a   : > { %1628 = vmatpush.msra.mxu3 %v1789_v21  ;;  %v228_v21 = vld [vmem:[%s1897_s26 + $0x198] sm:$0xff] }
  0x5b   : > { %708 = vmatmul.f32.gmra.mxu3 %v387_v4  ;;  %1063 = vmatpush.msrb.mxu0 %v471_v48  ;;  %v347_v4 = vld [vmem:[%s1897_s26 + $0x550] sm:$0xff]  ;;  %v452_v48 = vld [vmem:[%s2783_s1 + $0x198] sm:$0xff] }
  0x5c   : > { %862 = vmatmul.f32.gmra.mxu2 %v221_v6  ;;  %1629 = vmatpush.msra.mxu3 %v1804_v24  ;;  %v489_v24 = vld [vmem:[%s2783_s1 + $0x2c0] sm:$0xff]  ;;  %v291_v6 = vld [vmem:[%s1897_s26 + $0x390] sm:$0xff] }
  0x5d   : > { %1174 = vmatpush.msrb.mxu1 %v489_v24  ;;  %1064 = vmatpush.msrb.mxu0 %v470_v59  ;;  %v467_v24 = vld [vmem:[%s2783_s1 + $0x210] sm:$0xff]  ;;  %v310_v59 = vld [vmem:[%s1897_s26 + $0x428] sm:$0xff] }
  0x5e   : > { %636 = vmatmul.f32.gmra.mxu0 %v219_v9  ;;  %1630 = vmatpush.msra.mxu3 %v1819_v27  ;;  %v227_v27 = vld [vmem:[%s1897_s26 + $0x190] sm:$0xff] }
  0x5f   : > { %1065 = vmatpush.msrb.mxu0 %v469_v8  ;;  %v319_v8 = vld [vmem:[%s1897_s26 + $0x470] sm:$0xff] }
  0x60   : > { %749 = vmatmul.f32.gmra.mxu1 %v220_v32  ;;  %1631 = vmatpush.msra.mxu3 %v1837_v30  ;;  %v346_v30 = vld [vmem:[%s1897_s26 + $0x548] sm:$0xff] }
  0x61   : > { %1066 = vmatpush.msrb.mxu0 %v468_v28 }
  0x62   : > { %1632 = vmatpush.msra.mxu3 %v1852_v33  ;;  %v234_v33 = vld [vmem:[%s1897_s26 + $0x1c8] sm:$0xff] }
  0x63   : > { %711 = vmatmul.f32.gmra.mxu3 %v394_v18  ;;  %v290_v18 = vld [vmem:[%s1897_s26 + $0x388] sm:$0xff]  ;;  %1067 = vmatpush.msrb.mxu0 %v467_v24  ;;  %v396_v24 = vld [vmem:[%s1897_s26 + $0x6d8] sm:$0xff] }
  0x64   : > { %865 = vmatmul.f32.gmra.mxu2 %v228_v21  ;;  %1633 = vmatpush.msra.mxu3 %v1868_v36  ;;  %v353_v36 = vld [vmem:[%s1897_s26 + $0x580] sm:$0xff] }
  0x66   : > { %639 = vmatmul.f32.gmra.mxu0 %v226_v34  ;;  %1634 = vmatpush.msra.mxu3 %v1883_v39  ;;  %v242_v39 = vld [vmem:[%s1897_s26 + $0x208] sm:$0xff] }
  0x68   : > { %752 = vmatmul.f32.gmra.mxu1 %v227_v27  ;;  %1635 = vmatpush.msra.mxu3 %v1903_v42  ;;  %v488_v42 = vld [vmem:[%s2783_s1 + $0x2b8] sm:$0xff]  ;;  %v354_v27 = vld [vmem:[%s1897_s26 + $0x588] sm:$0xff] }
  0x69   : > { %1175 = vmatpush.msrb.mxu1 %v488_v42  ;;  %v453_v42 = vld [vmem:[%s2783_s1 + $0x1a0] sm:$0xff] }
  0x6a   : > { %1636 = vmatpush.msra.mxu3 %v1919_v46  ;;  %v249_v46 = vld [vmem:[%s1897_s26 + $0x240] sm:$0xff] }
  0x6b   : > { %803 = vmatmul.f32.vlgmr.msrb.gmra.mxu3 %v346_v30  ;;  %1176 = vmatpush.msrb.mxu1 %v487_v49  ;;  %v483_v30 = vld [vmem:[%s2783_s1 + $0x290] sm:$0xff]  ;;  %v466_v49 = vld [vmem:[%s2783_s1 + $0x208] sm:$0xff] }
  0x6c   : > { %868 = vmatmul.f32.gmra.mxu2 %v235_v37  ;;  %941 = vmatpush.msrb.mxu3 %v464_v58  ;;  %v298_v37 = vld [vmem:[%s1897_s26 + $0x3c8] sm:$0xff] }
  0x6d   : > { %1177 = vmatpush.msrb.mxu1 %v486_v60  ;;  %1068 = vmatpush.msrb.mxu0 %v466_v49  ;;  %v450_v60 = vld [vmem:[%s2783_s1 + $0x188] sm:$0xff]  ;;  %v181_v49 = vld [vmem:[%s1897_s26 + $0x20] sm:$0xff] }
  0x6e   : > { %642 = vmatmul.f32.gmra.mxu0 %v233_v38  ;;  %942 = vmatpush.msrb.mxu3 %v463_v62  ;;  %v311_v62 = vld [vmem:[%s1897_s26 + $0x430] sm:$0xff] }
  0x6f   : > { %1178 = vmatpush.msrb.mxu1 %v485_v11  ;;  %v317_v11 = vld [vmem:[%s1897_s26 + $0x460] sm:$0xff] }
  0x70   : > { %755 = vmatmul.f32.gmra.mxu1 %v234_v33  ;;  %943 = vmatpush.msrb.mxu3 %v462_v3  ;;  %v454_v33 = vld [vmem:[%s2783_s1 + $0x1a8] sm:$0xff]  ;;  %v465_v3 = vld [vmem:[%s2783_s1 + $0x200] sm:$0xff] }
  0x71   : > { %1179 = vmatpush.msrb.mxu1 %v484_v29  ;;  %1069 = vmatpush.msrb.mxu0 %v465_v3 }
  0x72   : > { %944 = vmatpush.msrb.mxu3 %v461_v7  ;;  %v481_v7 = vld [vmem:[%s2783_s1 + $0x280] sm:$0xff] }
  0x73   : > { %806 = vmatmul.f32.gmra.mxu3 %v353_v36  ;;  %1180 = vmatpush.msrb.mxu1 %v483_v30 }
  0x74   : > { %871 = vmatmul.f32.gmra.mxu2 %v242_v39  ;;  %945 = vmatpush.msrb.mxu3 %v460_v16  ;;  %v297_v39 = vld [vmem:[%s1897_s26 + $0x3c0] sm:$0xff] }
  0x76   : > { %645 = vmatmul.f32.gmra.mxu0 %v240_v41  ;;  %946 = vmatpush.msrb.mxu3 %v459_v19  ;;  %v382_v19 = vld [vmem:[%s1897_s26 + $0x668] sm:$0xff] }
  0x78   : > { %758 = vmatmul.f32.gmra.mxu1 %v241_v44  ;;  %947 = vmatpush.msrb.mxu3 %v458_v26  ;;  %v361_v44 = vld [vmem:[%s1897_s26 + $0x5c0] sm:$0xff] }
  0x79   : > { %v325_v26 = vld [vmem:[%s1897_s26 + $0x4a0] sm:$0xff] }
  0x7a   : > { %948 = vmatpush.msrb.mxu3 %v457_v31  ;;  %v333_v31 = vld [vmem:[%s1897_s26 + $0x4e0] sm:$0xff] }
  0x7b   : > { %809 = vmatmul.f32.gmra.mxu3 %v360_v45  ;;  %v305_v45 = vld [vmem:[%s1897_s26 + $0x400] sm:$0xff] }
  0x7c   : > { %874 = vmatmul.f32.gmra.mxu2 %v249_v46  ;;  %949 = vmatpush.msrb.mxu3 %v456_v15  ;;  %v332_v15 = vld [vmem:[%s1897_s26 + $0x4d8] sm:$0xff] }
  0x7e   : > { %648 = vmatmul.f32.gmra.mxu0 %v247_v47  ;;  %950 = vmatpush.msrb.mxu3 %v455_v35  ;;  %v303_v47 = vld [vmem:[%s1897_s26 + $0x3f0] sm:$0xff] }
  0x80   : > { %761 = vmatmul.f32.gmra.mxu1 %v248_v50  ;;  %951 = vmatpush.msrb.mxu3 %v454_v33  ;;  %v482_v50 = vld [vmem:[%s2783_s1 + $0x288] sm:$0xff]  ;;  %v339_v33 = vld [vmem:[%s1897_s26 + $0x510] sm:$0xff] }
  0x81   : > { %1181 = vmatpush.msrb.mxu1 %v482_v50 }
  0x82   : > { %952 = vmatpush.msrb.mxu3 %v453_v42 }
  0x83   : > { %812 = vmatmul.f32.gmra.mxu3 %v367_v51  ;;  %1182 = vmatpush.msrb.mxu1 %v481_v7  ;;  %v189_v7 = vld [vmem:[%s1897_s26 + $0x60] sm:$0xff] }
  0x84   : > { %877 = vmatmul.f32.gmra.mxu2 %v256_v52  ;;  %953 = vmatpush.msrb.mxu3 %v452_v48  ;;  %v304_v52 = vld [vmem:[%s1897_s26 + $0x3f8] sm:$0xff] }
  0x86   : > { %651 = vmatmul.f32.gmra.mxu0 %v254_v53 }
  0x88   : > { %764 = vmatmul.f32.gmra.mxu1 %v255_v54 }
  0x8b   : > { %815 = vmatmul.f32.gmra.mxu3 %v374_v55  ;;  %v451_v55 = vld [vmem:[%s2783_s1 + $0x190] sm:$0xff] }
  0x8c   : > { %880 = vmatmul.f32.gmra.mxu2 %v263_v56  ;;  %v368_v56 = vld [vmem:[%s1897_s26 + $0x5f8] sm:$0xff]  ;;  %954 = vmatpush.msrb.mxu3 %v451_v55  ;;  %v182_v55 = vld [vmem:[%s1897_s26 + $0x28] sm:$0xff] }
  0x8e   : > { %654 = vmatmul.f32.gmra.mxu0 %v261_v57  ;;  %v312_v57 = vld [vmem:[%s1897_s26 + $0x438] sm:$0xff]  ;;  %955 = vmatpush.msrb.mxu3 %v450_v60  ;;  %v187_v60 = vld [vmem:[%s1897_s26 + $0x50] sm:$0xff] }
  0x90   : > { %767 = vmatmul.f32.gmra.mxu1 %v262_v61 }
  0x93   : > { %818 = vmatmul.f32.gmra.mxu3 %v381_v63 }
  0x94   : > { %883 = vmatmul.f32.gmra.mxu2 %v270_v0 }
  0x96   : > { %657 = vmatmul.f32.gmra.mxu0 %v268_v1  ;;  %v449_v1 = vld [vmem:[%s2783_s1 + $0x180] sm:$0xff] }
  0x97   : > { %956 = vmatpush.msrb.mxu3 %v449_v1 }
  0x98   : > { %770 = vmatmul.f32.gmra.mxu1 %v269_v5  ;;  %v375_v5 = vld [vmem:[%s1897_s26 + $0x630] sm:$0xff] }
  0x9b   : > { %821 = vmatmul.f32.gmra.mxu3 %v388_v10 }
  0x9c   : > { %886 = vmatmul.f32.gmra.mxu2 %v277_v13 }
  0x9e   : > { %660 = vmatmul.f32.gmra.mxu0 %v275_v14  ;;  %v318_v14 = vld [vmem:[%s1897_s26 + $0x468] sm:$0xff] }
  0xa0   : > { %773 = vmatmul.f32.gmra.mxu1 %v276_v17 }
  0xa3   : > { %824 = vmatmul.f32.gmra.mxu3 %v395_v22 }
  0xa4   : > { %889 = vmatmul.f32.gmra.mxu2 %v284_v23  ;;  %v324_v23 = vld [vmem:[%s1897_s26 + $0x498] sm:$0xff] }
  0xa6   : > { %663 = vmatmul.f32.gmra.mxu0 %v282_v25 }
  0xa8   : > { %776 = vmatmul.f32.gmra.mxu1 %v283_v2  ;;  %v389_v2 = vld [vmem:[%s1897_s26 + $0x6a0] sm:$0xff] }
  0xab   : > { %916 = vmatmul.f32.vlgmr.msra.gmra.mxu3 %v347_v4  ;;  %v2147_v9 = vpop.f32.mrf.mxu0 }
  0xac   : > { %892 = vmatmul.f32.gmra.mxu2 %v291_v6  ;;  %v331_v6 = vld [vmem:[%s1897_s26 + $0x4d0] sm:$0xff] }
  0xad   : > { %v2153_v32 = vpop.f32.mrf.mxu1 }
  0xae   : > { %v2156_v21 = vpop.f32.mrf.mxu3  ;;  %666 = vmatmul.f32.gmra.mxu0 %v289_v12 }
  0xaf   : > { %v2158_v34 = vpop.f32.mrf.mxu2 }
  0xb0   : > { %779 = vmatmul.f32.gmra.mxu1 %v290_v18 }
  0xb3   : > { %919 = vmatmul.f32.gmra.mxu3 %v354_v27  ;;  %v2171_v38 = vpop.f32.mrf.mxu0  ;;  %v340_v27 = vld [vmem:[%s1897_s26 + $0x518] sm:$0xff] }
  0xb4   : > { %895 = vmatmul.f32.gmra.mxu2 %v298_v37  ;;  %v338_v37 = vld [vmem:[%s1897_s26 + $0x508] sm:$0xff] }
  0xb5   : > { %v2177_v36 = vpop.f32.mrf.mxu1 }
  0xb6   : > { %v2180_v41 = vpop.f32.mrf.mxu3  ;;  %669 = vmatmul.f32.gmra.mxu0 %v296_v40 }
  0xb7   : > { %v2182_v43 = vpop.f32.mrf.mxu2 }
  0xb8   : > { %782 = vmatmul.f32.gmra.mxu1 %v297_v39 }
  0xbb   : > { %922 = vmatmul.f32.gmra.mxu3 %v361_v44  ;;  %v2189_v46 = vpop.f32.mrf.mxu0  ;;  %v180_v44 = vld [vmem:[%s1897_s26 + $0x18] sm:$0xff] }
  0xbc   : > { %898 = vmatmul.f32.gmra.mxu2 %v305_v45  ;;  %v2287_v45 = vld [vmem:[%s2784_s2] ss:$0 sm:$0xff] }
  0xbd   : > { %v2201_v51 = vpop.f32.mrf.mxu1  ;;  %v692_v50 = vadd.f32 %v2287_v45, %v2156_v21  ;;  %v188_v21 = vld [vmem:[%s1897_s26 + $0x58] sm:$0xff]  ;;  %v695_v3 = vadd.f32 %v2287_v45, %v2180_v41  ;;  %v195_v41 = vld [vmem:[%s1897_s26 + $0x90] sm:$0xff] }
  0xbe   : > { %v2204_v53 = vpop.f32.mrf.mxu3  ;;  %672 = vmatmul.f32.gmra.mxu0 %v303_v47  ;;  %v183_v47 = vld [vmem:[%s1897_s26 + $0x30] sm:$0xff] }
  0xbf   : > { %v2206_v54 = vpop.f32.mrf.mxu2 }
  0xc0   : > { %785 = vmatmul.f32.gmra.mxu1 %v304_v52 }
  0xc3   : > { %925 = vmatmul.f32.gmra.mxu3 %v368_v56  ;;  %v2213_v58 = vpop.f32.mrf.mxu0 }
  0xc4   : > { %901 = vmatmul.f32.gmra.mxu2 %v312_v57 }
  0xc5   : > { %v2219_v61 = vpop.f32.mrf.mxu1 }
  0xc6   : > { %v2222_v63 = vpop.f32.mrf.mxu3  ;;  %675 = vmatmul.f32.gmra.mxu0 %v310_v59 }
  0xc7   : > { %v2224_v0 = vpop.f32.mrf.mxu2 }
  0xc8   : > { %788 = vmatmul.f32.gmra.mxu1 %v311_v62  ;;  %v190_v62 = vld [vmem:[%s1897_s26 + $0x68] sm:$0xff] }
  0xcb   : > { %928 = vmatmul.f32.gmra.mxu3 %v375_v5  ;;  %v2237_v10 = vpop.f32.mrf.mxu0 }
  0xcc   : > { %904 = vmatmul.f32.gmra.mxu2 %v319_v8 }
  0xcd   : > { %v2240_v13 = vpop.f32.mrf.mxu1 }
  0xce   : > { %v2243_v16 = vpop.f32.mrf.mxu3  ;;  %678 = vmatmul.f32.gmra.mxu0 %v317_v11 }
  0xcf   : > { %v2245_v17 = vpop.f32.mrf.mxu2 }
  0xd0   : > { %791 = vmatmul.f32.gmra.mxu1 %v318_v14 }
  0xd3   : > { %931 = vmatmul.f32.gmra.mxu3 %v382_v19  ;;  %v2249_v22 = vpop.f32.mrf.mxu0  ;;  %v194_v19 = vld [vmem:[%s1897_s26 + $0x88] sm:$0xff] }
  0xd4   : > { %907 = vmatmul.f32.gmra.mxu2 %v326_v20  ;;  %v197_v20 = vld [vmem:[%s1897_s26 + $0xa0] sm:$0xff] }
  0xd5   : > { %v2252_v25 = vpop.f32.mrf.mxu1 }
  0xd6   : > { %v2255_v28 = vpop.f32.mrf.mxu3  ;;  %681 = vmatmul.f32.gmra.mxu0 %v324_v23 }
  0xd7   : > { %v2257_v29 = vpop.f32.mrf.mxu2 }
  0xd8   : > { %794 = vmatmul.f32.gmra.mxu1 %v325_v26  ;;  %v698_v26 = vadd.f32 %v2287_v45, %v2204_v53  ;;  %v202_v53 = vld [vmem:[%s1897_s26 + $0xc8] sm:$0xff] }
  0xdb   : > { %934 = vmatmul.f32.gmra.mxu3 %v389_v2  ;;  %v2261_v4 = vpop.f32.mrf.mxu0 }
  0xdc   : > { %910 = vmatmul.f32.gmra.mxu2 %v333_v31  ;;  %v196_v31 = vld [vmem:[%s1897_s26 + $0x98] sm:$0xff] }
  0xdd   : > { %v2264_v12 = vpop.f32.mrf.mxu1 }
  0xde   : > { %v2267_v18 = vpop.f32.mrf.mxu3  ;;  %684 = vmatmul.f32.gmra.mxu0 %v331_v6 }
  0xdf   : > { %v2269_v35 = vpop.f32.mrf.mxu2 }
  0xe0   : > { %797 = vmatmul.f32.gmra.mxu1 %v332_v15 }
  0xe3   : > { %937 = vmatmul.f32.gmra.mxu3 %v396_v24  ;;  %v2273_v30 = vpop.f32.mrf.mxu0 }
  0xe4   : > { %913 = vmatmul.f32.gmra.mxu2 %v340_v27  ;;  %v201_v27 = vld [vmem:[%s1897_s26 + $0xc0] sm:$0xff] }
  0xe5   : > { %v2276_v40 = vpop.f32.mrf.mxu1 }
  0xe6   : > { %v2279_v39 = vpop.f32.mrf.mxu3  ;;  %687 = vmatmul.f32.gmra.mxu0 %v338_v37  ;;  %v204_v37 = vld [vmem:[%s1897_s26 + $0xd8] sm:$0xff] }
  0xe7   : > { %v2281_v42 = vpop.f32.mrf.mxu2 }
  0xe8   : > { %800 = vmatmul.f32.gmra.mxu1 %v339_v33 }
  0xeb   : > { %957 = vmatmul.f32.vlgmr.msrb.gmra.mxu3 %v180_v44  ;;  %v2290_v48 = vpop.f32.mrf.mxu0  ;;  %v701_v44 = vadd.f32 %v2287_v45, %v2222_v63  ;;  %v209_v63 = vld [vmem:[%s1897_s26 + $0x100] sm:$0xff] }
  0xec   : > { %1555 = vmatmul.msk.f32.vlgmr.msrb.gmra.mxu2 %vm505_vm0, %v183_v47 }
  0xed   : > { %v2296_v52 = vpop.f32.mrf.mxu1 }
  0xee   : > { %v804_v56 = vpop.f32.mrf.mxu3  ;;  %1070 = vmatmul.f32.vlgmr.msrb.gmra.mxu0 %v181_v49  ;;  %v203_v49 = vld [vmem:[%s1897_s26 + $0xd0] sm:$0xff] }
  0xef   : > { %v2299_v57 = vadd.f32 %v804_v56, %v692_v50  ;;  %v2301_v59 = vpop.f32.mrf.mxu2 }
  0xf0   : > { %1183 = vmatmul.f32.vlgmr.msrb.gmra.mxu1 %v182_v55 }
  0xf3   : > { %960 = vmatmul.f32.gmra.mxu3 %v187_v60  ;;  %v2305_v1 = vpop.f32.mrf.mxu0  ;;  %v208_v60 = vld [vmem:[%s1897_s26 + $0xf8] sm:$0xff] }
  0xf4   : > { %1556 = vmatmul.msk.f32.gmra.mxu2 %vm505_vm0, %v190_v62  ;;  %v211_v62 = vld [vmem:[%s1897_s26 + $0x110] sm:$0xff] }
  0xf5   : > { %v2311_v5 = vpop.f32.mrf.mxu1 }
  0xf6   : > { %v807_v8 = vpop.f32.mrf.mxu3  ;;  %1073 = vmatmul.f32.gmra.mxu0 %v188_v21 }
  0xf7   : > { %v2314_v11 = vadd.f32 %v807_v8, %v695_v3  ;;  %v2316_v14 = vpop.f32.mrf.mxu2  ;;  %v704_v3 = vadd.f32 %v2287_v45, %v2243_v16  ;;  %v210_v8 = vld [vmem:[%s1897_s26 + $0x108] sm:$0xff]  ;;  %v216_v16 = vld [vmem:[%s1897_s26 + $0x138] sm:$0xff] }
  0xf8   : > { %1186 = vmatmul.f32.gmra.mxu1 %v189_v7 }
  0xfb   : > { %963 = vmatmul.f32.gmra.mxu3 %v194_v19  ;;  %v2320_v23 = vpop.f32.mrf.mxu0 }
  0xfc   : > { %1557 = vmatmul.msk.f32.gmra.mxu2 %vm505_vm0, %v197_v20 }
  0xfd   : > { %v2326_v2 = vpop.f32.mrf.mxu1 }
  0xfe   : > { %v810_v6 = vpop.f32.mrf.mxu3  ;;  %1076 = vmatmul.f32.gmra.mxu0 %v195_v41 }
  0xff   : > { %v2329_v15 = vadd.f32 %v810_v6, %v698_v26  ;;  %v2331_v24 = vpop.f32.mrf.mxu2  ;;  %v215_v26 = vld [vmem:[%s1897_s26 + $0x130] sm:$0xff] }
 0x100   : > { %1189 = vmatmul.f32.gmra.mxu1 %v196_v31  ;;  %v218_v31 = vld [vmem:[%s1897_s26 + $0x148] sm:$0xff] }
 0x103   : > { %966 = vmatmul.f32.gmra.mxu3 %v201_v27  ;;  %v2335_v33 = vpop.f32.mrf.mxu0  ;;  %v707_v27 = vadd.f32 %v2287_v45, %v2255_v28  ;;  %v223_v28 = vld [vmem:[%s1897_s26 + $0x170] sm:$0xff] }
 0x104   : > { %1558 = vmatmul.msk.f32.gmra.mxu2 %vm505_vm0, %v204_v37 }
 0x105   : > { %v2341_v47 = vpop.f32.mrf.mxu1 }
 0x106   : > { %v813_v50 = vpop.f32.mrf.mxu3  ;;  %1079 = vmatmul.f32.gmra.mxu0 %v202_v53  ;;  %v217_v53 = vld [vmem:[%s1897_s26 + $0x140] sm:$0xff] }
 0x107   : > { %v2344_v55 = vadd.f32 %v813_v50, %v701_v44  ;;  %v2346_v56 = vpop.f32.mrf.mxu2 }
 0x108   : > { %1192 = vmatmul.f32.gmra.mxu1 %v203_v49 }
 0x10b   : > { %969 = vmatmul.f32.gmra.mxu3 %v208_v60  ;;  %v2350_v21 = vpop.f32.mrf.mxu0  ;;  %v222_v60 = vld [vmem:[%s1897_s26 + $0x168] sm:$0xff] }
 0x10c   : > { %1559 = vmatmul.msk.f32.gmra.mxu2 %vm505_vm0, %v211_v62  ;;  %v225_v62 = vld [vmem:[%s1897_s26 + $0x180] sm:$0xff] }
 0x10d   : > { %v2356_v7 = vpop.f32.mrf.mxu1 }
 0x10e   : > { %v816_v19 = vpop.f32.mrf.mxu3  ;;  %1082 = vmatmul.f32.gmra.mxu0 %v209_v63 }
 0x10f   : > { %v2359_v20 = vadd.f32 %v816_v19, %v704_v3  ;;  %v2361_v41 = vpop.f32.mrf.mxu2  ;;  %v710_v3 = vadd.f32 %v2287_v45, %v2267_v18  ;;  %v224_v19 = vld [vmem:[%s1897_s26 + $0x178] sm:$0xff]  ;;  %v230_v18 = vld [vmem:[%s1897_s26 + $0x1a8] sm:$0xff] }
 0x110   : > { %1195 = vmatmul.f32.gmra.mxu1 %v210_v8 }
 0x113   : > { %972 = vmatmul.f32.gmra.mxu3 %v215_v26  ;;  %v2365_v6 = vpop.f32.mrf.mxu0 }
 0x114   : > { %1560 = vmatmul.msk.f32.gmra.mxu2 %vm505_vm0, %v218_v31 }
 0x115   : > { %v2371_v37 = vpop.f32.mrf.mxu1 }
 0x116   : > { %v819_v44 = vpop.f32.mrf.mxu3  ;;  %1085 = vmatmul.f32.gmra.mxu0 %v216_v16 }
 0x117   : > { %v2374_v49 = vadd.f32 %v819_v44, %v707_v27  ;;  %v2376_v50 = vpop.f32.mrf.mxu2  ;;  %v229_v27 = vld [vmem:[%s1897_s26 + $0x1a0] sm:$0xff] }
 0x118   : > { %1198 = vmatmul.f32.gmra.mxu1 %v217_v53  ;;  %v232_v53 = vld [vmem:[%s1897_s26 + $0x1b8] sm:$0xff] }
 0x11b   : > { %975 = vmatmul.f32.gmra.mxu3 %v222_v60  ;;  %v2380_v63 = vpop.f32.mrf.mxu0  ;;  %v713_v60 = vadd.f32 %v2287_v45, %v2279_v39 }
 0x11c   : > { %1561 = vmatmul.msk.f32.gmra.mxu2 %vm505_vm0, %v225_v62 }
 0x11d   : > { %v2386_v8 = vpop.f32.mrf.mxu1 }
 0x11e   : > { %v822_v26 = vpop.f32.mrf.mxu3  ;;  %1088 = vmatmul.f32.gmra.mxu0 %v223_v28  ;;  %v231_v28 = vld [vmem:[%s1897_s26 + $0x1b0] sm:$0xff] }
 0x11f   : > { %v2389_v31 = vadd.f32 %v822_v26, %v710_v3  ;;  %v2391_v16 = vpop.f32.mrf.mxu2 }
 0x120   : > { %2786 = vst [vmem:[#allocation2_spill] sm:$0xff] %v2391_v16  ;;  %1201 = vmatmul.f32.gmra.mxu1 %v224_v19  ;;  %v237_v16 = vld [vmem:[%s1897_s26 + $0x1e0] sm:$0xff] }
 0x123   : > { %978 = vmatmul.f32.gmra.mxu3 %v229_v27  ;;  %v2395_v44 = vpop.f32.mrf.mxu0  ;;  %v236_v27 = vld [vmem:[%s1897_s26 + $0x1d8] sm:$0xff] }
 0x124   : > { %2787 = vst [vmem:[#allocation3_spill] sm:$0xff] %v2395_v44  ;;  %1562 = vmatmul.msk.f32.gmra.mxu2 %vm505_vm0, %v232_v53  ;;  %v239_v44 = vld [vmem:[%s1897_s26 + $0x1f0] sm:$0xff] }
 0x125   : > { %v2401_v62 = vpop.f32.mrf.mxu1 }
 0x126   : > { %2788 = vst [vmem:[#allocation4_spill] sm:$0xff] %v2401_v62  ;;  %v825_v3 = vpop.f32.mrf.mxu3  ;;  %1091 = vmatmul.f32.gmra.mxu0 %v230_v18  ;;  %v238_v18 = vld [vmem:[%s1897_s26 + $0x1e8] sm:$0xff] }
 0x127   : > { %v2404_v26 = vadd.f32 %v825_v3, %v713_v60  ;;  %v2406_v19 = vpop.f32.mrf.mxu2 }
 0x128   : > { %2789 = vst [vmem:[#allocation5_spill] sm:$0xff] %v2406_v19  ;;  %1204 = vmatmul.f32.gmra.mxu1 %v231_v28  ;;  %v243_v28 = vld [vmem:[%s1897_s26 + $0x210] sm:$0xff] }
 0x12b   : > { %981 = vmatmul.f32.gmra.mxu3 %v236_v27  ;;  %v2410_v53 = vpop.f32.mrf.mxu0  ;;  %v246_v27 = vld [vmem:[%s1897_s26 + $0x228] sm:$0xff] }
 0x12c   : > { %2790 = vst [vmem:[#allocation6_spill] sm:$0xff] %v2410_v53  ;;  %1563 = vmatmul.msk.f32.gmra.mxu2 %vm505_vm0, %v239_v44  ;;  %v244_v44 = vld [vmem:[%s1897_s26 + $0x218] sm:$0xff] }
 0x12d   : > { %v2414_v39 = vpop.f32.mrf.mxu1 }
 0x12e   : > { %2791 = vst [vmem:[#allocation7_spill] sm:$0xff] %v2414_v39  ;;  %v917_v62 = vpop.f32.mrf.mxu3  ;;  %1094 = vmatmul.f32.gmra.mxu0 %v237_v16  ;;  %v245_v16 = vld [vmem:[%s1897_s26 + $0x220] sm:$0xff] }
 0x12f   : > { %v2418_v60 = vadd.f32 %v917_v62, %v2299_v57  ;;  %v2420_v3 = vpop.f32.mrf.mxu2 }
 0x130   : > { %1207 = vmatmul.f32.gmra.mxu1 %v238_v18  ;;  %v250_v18 = vld [vmem:[%s1897_s26 + $0x248] sm:$0xff] }
 0x131   : > { %2792 = vst [vmem:[#allocation8_spill] sm:$0xff] %v2418_v60 }
 0x133   : > { %984 = vmatmul.f32.gmra.mxu3 %v243_v28  ;;  %v2424_v53 = vpop.f32.mrf.mxu0  ;;  %v253_v28 = vld [vmem:[%s1897_s26 + $0x260] sm:$0xff] }
 0x134   : > { %2793 = vst [vmem:[#allocation9_spill] sm:$0xff] %v2424_v53  ;;  %1564 = vmatmul.msk.f32.gmra.mxu2 %vm505_vm0, %v246_v27  ;;  %v251_v27 = vld [vmem:[%s1897_s26 + $0x250] sm:$0xff] }
 0x135   : > { %v2428_v39 = vpop.f32.mrf.mxu1 }
 0x136   : > { %2794 = vst [vmem:[#allocation10_spill] sm:$0xff] %v2428_v39  ;;  %v920_v19 = vpop.f32.mrf.mxu3  ;;  %1097 = vmatmul.f32.gmra.mxu0 %v244_v44  ;;  %v252_v44 = vld [vmem:[%s1897_s26 + $0x258] sm:$0xff] }
 0x137   : > { %v2432_v57 = vadd.f32 %v920_v19, %v2314_v11  ;;  %v2434_v62 = vpop.f32.mrf.mxu2 }
 0x138   : > { %1210 = vmatmul.f32.gmra.mxu1 %v245_v16  ;;  %v257_v16 = vld [vmem:[%s1897_s26 + $0x280] sm:$0xff] }
 0x139   : > { %2795 = vst [vmem:[#allocation11_spill] sm:$0xff] %v2432_v57 }
 0x13b   : > { %987 = vmatmul.f32.gmra.mxu3 %v250_v18  ;;  %v2438_v60 = vpop.f32.mrf.mxu0  ;;  %v260_v18 = vld [vmem:[%s1897_s26 + $0x298] sm:$0xff] }
 0x13c   : > { %2796 = vst [vmem:[#allocation12_spill] sm:$0xff] %v2438_v60  ;;  %1565 = vmatmul.msk.f32.gmra.mxu2 %vm505_vm0, %v253_v28  ;;  %v258_v28 = vld [vmem:[%s1897_s26 + $0x288] sm:$0xff] }
 0x13d   : > { %v2442_v39 = vpop.f32.mrf.mxu1 }
 0x13e   : > { %2797 = vst [vmem:[#allocation13_spill] sm:$0xff] %v2442_v39  ;;  %v923_v53 = vpop.f32.mrf.mxu3  ;;  %1100 = vmatmul.f32.gmra.mxu0 %v251_v27  ;;  %v259_v27 = vld [vmem:[%s1897_s26 + $0x290] sm:$0xff] }
 0x13f   : > { %v2446_v11 = vadd.f32 %v923_v53, %v2329_v15  ;;  %v2448_v19 = vpop.f32.mrf.mxu2 }
 0x140   : > { %1213 = vmatmul.f32.gmra.mxu1 %v252_v44  ;;  %v264_v44 = vld [vmem:[%s1897_s26 + $0x2b8] sm:$0xff] }
 0x141   : > { %2798 = vst [vmem:[#allocation14_spill] sm:$0xff] %v2446_v11 }
 0x143   : > { %990 = vmatmul.f32.gmra.mxu3 %v257_v16  ;;  %v2452_v57 = vpop.f32.mrf.mxu0  ;;  %v267_v16 = vld [vmem:[%s1897_s26 + $0x2d0] sm:$0xff] }
 0x144   : > { %2799 = vst [vmem:[#allocation15_spill] sm:$0xff] %v2452_v57  ;;  %1566 = vmatmul.msk.f32.gmra.mxu2 %vm505_vm0, %v260_v18  ;;  %v265_v18 = vld [vmem:[%s1897_s26 + $0x2c0] sm:$0xff] }
 0x145   : > { %v2456_v39 = vpop.f32.mrf.mxu1 }
 0x146   : > { %2800 = vst [vmem:[#allocation16_spill] sm:$0xff] %v2456_v39  ;;  %v926_v60 = vpop.f32.mrf.mxu3  ;;  %1103 = vmatmul.f32.gmra.mxu0 %v258_v28  ;;  %v266_v28 = vld [vmem:[%s1897_s26 + $0x2c8] sm:$0xff] }
 0x147   : > { %v2460_v15 = vadd.f32 %v926_v60, %v2344_v55  ;;  %v2462_v53 = vpop.f32.mrf.mxu2 }
 0x148   : > { %1216 = vmatmul.f32.gmra.mxu1 %v259_v27  ;;  %v271_v27 = vld [vmem:[%s1897_s26 + $0x2f0] sm:$0xff] }
 0x149   : > { %2801 = vst [vmem:[#allocation17_spill] sm:$0xff] %v2460_v15 }
 0x14b   : > { %993 = vmatmul.f32.gmra.mxu3 %v264_v44  ;;  %v2466_v11 = vpop.f32.mrf.mxu0  ;;  %v274_v44 = vld [vmem:[%s1897_s26 + $0x308] sm:$0xff] }
 0x14c   : > { %2802 = vst [vmem:[#allocation18_spill] sm:$0xff] %v2466_v11  ;;  %1567 = vmatmul.msk.f32.gmra.mxu2 %vm505_vm0, %v267_v16  ;;  %v272_v16 = vld [vmem:[%s1897_s26 + $0x2f8] sm:$0xff] }
 0x14d   : > { %v2470_v39 = vpop.f32.mrf.mxu1 }
 0x14e   : > { %2803 = vst [vmem:[#allocation19_spill] sm:$0xff] %v2470_v39  ;;  %v929_v57 = vpop.f32.mrf.mxu3  ;;  %1106 = vmatmul.f32.gmra.mxu0 %v265_v18  ;;  %v273_v18 = vld [vmem:[%s1897_s26 + $0x300] sm:$0xff] }
 0x14f   : > { %v2474_v55 = vadd.f32 %v929_v57, %v2359_v20  ;;  %v2476_v60 = vpop.f32.mrf.mxu2 }
 0x150   : > { %1219 = vmatmul.f32.gmra.mxu1 %v266_v28  ;;  %v278_v28 = vld [vmem:[%s1897_s26 + $0x328] sm:$0xff] }
 0x151   : > { %2804 = vst [vmem:[#allocation20_spill] sm:$0xff] %v2474_v55 }
 0x153   : > { %996 = vmatmul.f32.gmra.mxu3 %v271_v27  ;;  %v2480_v15 = vpop.f32.mrf.mxu0  ;;  %v281_v27 = vld [vmem:[%s1897_s26 + $0x340] sm:$0xff] }
 0x154   : > { %2805 = vst [vmem:[#allocation21_spill] sm:$0xff] %v2480_v15  ;;  %1568 = vmatmul.msk.f32.gmra.mxu2 %vm505_vm0, %v274_v44  ;;  %v279_v44 = vld [vmem:[%s1897_s26 + $0x330] sm:$0xff] }
 0x155   : > { %v2484_v39 = vpop.f32.mrf.mxu1 }
 0x156   : > { %2806 = vst [vmem:[#allocation22_spill] sm:$0xff] %v2484_v39  ;;  %v932_v11 = vpop.f32.mrf.mxu3  ;;  %1109 = vmatmul.f32.gmra.mxu0 %v272_v16  ;;  %v280_v16 = vld [vmem:[%s1897_s26 + $0x338] sm:$0xff] }
 0x157   : > { %v2488_v20 = vadd.f32 %v932_v11, %v2374_v49  ;;  %v2490_v57 = vpop.f32.mrf.mxu2 }
 0x158   : > { %1222 = vmatmul.f32.gmra.mxu1 %v273_v18  ;;  %v285_v18 = vld [vmem:[%s1897_s26 + $0x360] sm:$0xff] }
 0x159   : > { %2807 = vst [vmem:[#allocation23_spill] sm:$0xff] %v2488_v20 }
 0x15b   : > { %999 = vmatmul.f32.gmra.mxu3 %v278_v28  ;;  %v2494_v55 = vpop.f32.mrf.mxu0  ;;  %v288_v28 = vld [vmem:[%s1897_s26 + $0x378] sm:$0xff] }
 0x15c   : > { %2808 = vst [vmem:[#allocation24_spill] sm:$0xff] %v2494_v55  ;;  %1569 = vmatmul.msk.f32.gmra.mxu2 %vm505_vm0, %v281_v27  ;;  %v286_v27 = vld [vmem:[%s1897_s26 + $0x368] sm:$0xff] }
 0x15d   : > { %v2498_v39 = vpop.f32.mrf.mxu1 }
 0x15e   : > { %2809 = vst [vmem:[#allocation25_spill] sm:$0xff] %v2498_v39  ;;  %v935_v15 = vpop.f32.mrf.mxu3  ;;  %1112 = vmatmul.f32.gmra.mxu0 %v279_v44  ;;  %v620_v44 = vadd.f32 %v2287_v45, %v2147_v9 }
 0x15f   : > { %v2502_v49 = vadd.f32 %v935_v15, %v2389_v31  ;;  %v2504_v11 = vpop.f32.mrf.mxu2  ;;  %v287_v31 = vld [vmem:[%s1897_s26 + $0x370] sm:$0xff] }
 0x160   : > { %2811 = vst [vmem:[#allocation27_spill] sm:$0xff] %v2504_v11  ;;  %1225 = vmatmul.f32.gmra.mxu1 %v280_v16  ;;  %v293_v11 = vld [vmem:[%s1897_s26 + $0x3a0] sm:$0xff] }
 0x161   : > { %2810 = vst [vmem:[#allocation26_spill] sm:$0xff] %v2502_v49 }
 0x163   : > { %1002 = vmatmul.f32.gmra.mxu3 %v285_v18  ;;  %v2508_v20 = vpop.f32.mrf.mxu0  ;;  %v292_v18 = vld [vmem:[%s1897_s26 + $0x398] sm:$0xff] }
 0x164   : > { %2812 = vst [vmem:[#allocation28_spill] sm:$0xff] %v2508_v20  ;;  %1570 = vmatmul.msk.f32.gmra.mxu2 %vm505_vm0, %v288_v28  ;;  %v733_v20 = vadd.f32 %v2153_v32, %v620_v44  ;;  %v295_v28 = vld [vmem:[%s1897_s26 + $0x3b0] sm:$0xff] }
 0x165   : > { %v2514_v39 = vpop.f32.mrf.mxu1  ;;  %v299_v44 = vld [vmem:[%s1897_s26 + $0x3d0] sm:$0xff] }
 0x166   : > { %2813 = vst [vmem:[#allocation29_spill] sm:$0xff] %v2514_v39  ;;  %v938_v15 = vpop.f32.mrf.mxu3  ;;  %1115 = vmatmul.f32.gmra.mxu0 %v286_v27  ;;  %v846_v39 = vadd.f32 %v2158_v34, %v733_v20  ;;  %v300_v20 = vld [vmem:[%s1897_s26 + $0x3d8] sm:$0xff] }
 0x167   : > { %v2518_v16 = vadd.f32 %v938_v15, %v2404_v26  ;;  %v2520_v49 = vpop.f32.mrf.mxu2  ;;  %v623_v26 = vadd.f32 %v2287_v45, %v2171_v38  ;;  %v294_v15 = vld [vmem:[%s1897_s26 + $0x3a8] sm:$0xff] }
 0x168   : > { %2815 = vst [vmem:[#allocation31_spill] sm:$0xff] %v2520_v49  ;;  %1228 = vmatmul.f32.gmra.mxu1 %v287_v31 }
 0x169   : > { %2814 = vst [vmem:[#allocation30_spill] sm:$0xff] %v2518_v16 }
 0x16b   : > { %1005 = vmatmul.f32.gmra.mxu3 %v292_v18  ;;  %v1071_v9 = vpop.f32.mrf.mxu0  ;;  %v736_v18 = vadd.f32 %v2177_v36, %v623_v26 }
 0x16c   : > { %1571 = vmatmul.msk.f32.gmra.mxu2 %vm505_vm0, %v295_v28  ;;  %v302_v28 = vld [vmem:[%s1897_s26 + $0x3e8] sm:$0xff] }
 0x16d   : > { %v1184_v27 = vpop.f32.mrf.mxu1  ;;  %v849_v38 = vadd.f32 %v2182_v43, %v736_v18  ;;  %v306_v43 = vld [vmem:[%s1897_s26 + $0x408] sm:$0xff]  ;;  %v307_v18 = vld [vmem:[%s1897_s26 + $0x410] sm:$0xff] }
 0x16e   : > { %v958_v16 = vpop.f32.mrf.mxu3  ;;  %1118 = vmatmul.f32.gmra.mxu0 %v293_v11 }
 0x16f   : > { %v959_v31 = vadd.f32 %v958_v16, %v846_v39  ;;  %v1297_v32 = vpop.f32.mrf.mxu2  ;;  %v626_v39 = vadd.f32 %v2287_v45, %v2189_v46 }
 0x170   : > { %1231 = vmatmul.f32.gmra.mxu1 %v294_v15  ;;  %v301_v15 = vld [vmem:[%s1897_s26 + $0x3e0] sm:$0xff] }
 0x171   : > { %v1072_v49 = vadd.f32 %v1071_v9, %v959_v31  ;;  %v739_v46 = vadd.f32 %v2201_v51, %v626_v39  ;;  %v309_v31 = vld [vmem:[%s1897_s26 + $0x420] sm:$0xff] }
 0x173   : > { %v1185_v55 = vadd.f32 %v1184_v27, %v1072_v49  ;;  %1008 = vmatmul.f32.gmra.mxu3 %v299_v44  ;;  %v1074_v34 = vpop.f32.mrf.mxu0 }
 0x174   : > { %1572 = vmatmul.msk.f32.gmra.mxu2 %vm505_vm0, %v302_v28  ;;  %v852_v28 = vadd.f32 %v2206_v54, %v739_v46  ;;  %v314_v46 = vld [vmem:[%s1897_s26 + $0x448] sm:$0xff] }
 0x175   : > { %v1298_v11 = vadd.f32 %v1297_v32, %v1185_v55  ;;  %v1187_v16 = vpop.f32.mrf.mxu1 }
 0x176   : > { %v961_v36 = vpop.f32.mrf.mxu3  ;;  %1121 = vmatmul.f32.gmra.mxu0 %v300_v20  ;;  %v629_v20 = vadd.f32 %v2287_v45, %v2213_v58 }
 0x177   : > { %v1393_v49 = vmax.f32 %v1298_v11, 0.0  ;;  %v962_v9 = vadd.f32 %v961_v36, %v849_v38  ;;  %v1300_v26 = vpop.f32.mrf.mxu2  ;;  %v313_v36 = vld [vmem:[%s1897_s26 + $0x440] sm:$0xff] }
 0x178   : > { %1234 = vmatmul.f32.gmra.mxu1 %v301_v15 }
 0x179   : > { %v1425_v55 = vpack.c.bf16 %v1393_v49, %v1393_v49  ;;  %v1075_v27 = vadd.f32 %v1074_v34, %v962_v9  ;;  %v308_v34 = vld [vmem:[%s1897_s26 + $0x418] sm:$0xff]  ;;  %v742_v49 = vadd.f32 %v2219_v61, %v629_v20 }
 0x17b   : > { %1458 = vst.msk [vmem:[%s2544_s28] sm:$0xf] %vm1457_vm1, %v1425_v55  ;;  %v1188_v32 = vadd.f32 %v1187_v16, %v1075_v27  ;;  %1011 = vmatmul.f32.gmra.mxu3 %v306_v43  ;;  %v1077_v44 = vpop.f32.mrf.mxu0  ;;  %v316_v43 = vld [vmem:[%s1897_s26 + $0x458] sm:$0xff]  ;;  %v855_v55 = vadd.f32 %v2224_v0, %v742_v49  ;;  %v632_v27 = vadd.f32 %v2287_v45, %v2237_v10 }
 0x17c   : > { %1573 = vmatmul.msk.f32.gmra.mxu2 %vm505_vm0, %v309_v31 }
 0x17d   : > { %v1301_v51 = vadd.f32 %v1300_v26, %v1188_v32  ;;  %v1190_v38 = vpop.f32.mrf.mxu1  ;;  %v315_v32 = vld [vmem:[%s1897_s26 + $0x450] sm:$0xff] }
 0x17e   : > { %v964_v39 = vpop.f32.mrf.mxu3  ;;  %1124 = vmatmul.f32.gmra.mxu0 %v307_v18 }
 0x17f   : > { %v1394_v11 = vmax.f32 %v1301_v51, 0.0  ;;  %v965_v16 = vadd.f32 %v964_v39, %v852_v28  ;;  %v1303_v15 = vpop.f32.mrf.mxu2  ;;  %v320_v51 = vld [vmem:[%s1897_s26 + $0x478] sm:$0xff]  ;;  %v323_v39 = vld [vmem:[%s1897_s26 + $0x490] sm:$0xff] }
 0x180   : > { %1237 = vmatmul.f32.gmra.mxu1 %v308_v34 }
 0x181   : > { %v1426_v9 = vpack.c.bf16 %v1394_v11, %v1394_v11  ;;  %v1078_v54 = vadd.f32 %v1077_v44, %v965_v16  ;;  %v321_v16 = vld [vmem:[%s1897_s26 + $0x480] sm:$0xff] }
 0x183   : > { %1459 = vst.msk [vmem:[%s2544_s28 + $0x4] sm:$0xf] %vm1457_vm1, %v1426_v9  ;;  %v1191_v58 = vadd.f32 %v1190_v38, %v1078_v54  ;;  %1014 = vmatmul.f32.gmra.mxu3 %v313_v36  ;;  %v1080_v26 = vpop.f32.mrf.mxu0  ;;  %v745_v38 = vadd.f32 %v2240_v13, %v632_v27  ;;  %v635_v36 = vadd.f32 %v2287_v45, %v2249_v22  ;;  %v322_v9 = vld [vmem:[%s1897_s26 + $0x488] sm:$0xff] }
 0x184   : > { %1574 = vmatmul.msk.f32.gmra.mxu2 %vm505_vm0, %v316_v43 }
 0x185   : > { %v1304_v61 = vadd.f32 %v1303_v15, %v1191_v58  ;;  %v1193_v31 = vpop.f32.mrf.mxu1  ;;  %v858_v15 = vadd.f32 %v2245_v17, %v745_v38 }
 0x186   : > { %v967_v44 = vpop.f32.mrf.mxu3  ;;  %1127 = vmatmul.f32.gmra.mxu0 %v314_v46  ;;  %v327_v46 = vld [vmem:[%s1897_s26 + $0x4b0] sm:$0xff] }
 0x187   : > { %v1395_v18 = vmax.f32 %v1304_v61, 0.0  ;;  %v968_v28 = vadd.f32 %v967_v44, %v855_v55  ;;  %v1306_v20 = vpop.f32.mrf.mxu2  ;;  %v748_v55 = vadd.f32 %v2252_v25, %v635_v36  ;;  %v330_v61 = vld [vmem:[%s1897_s26 + $0x4c8] sm:$0xff]  ;;  %v335_v36 = vld [vmem:[%s1897_s26 + $0x4f0] sm:$0xff] }
 0x188   : > { %1240 = vmatmul.f32.gmra.mxu1 %v315_v32  ;;  %v328_v32 = vld [vmem:[%s1897_s26 + $0x4b8] sm:$0xff] }
 0x189   : > { %v1427_v34 = vpack.c.bf16 %v1395_v18, %v1395_v18  ;;  %v1081_v0 = vadd.f32 %v1080_v26, %v968_v28  ;;  %v861_v44 = vadd.f32 %v2257_v29, %v748_v55  ;;  %v638_v18 = vadd.f32 %v2287_v45, %v2261_v4  ;;  %v341_v55 = vld [vmem:[%s1897_s26 + $0x520] sm:$0xff] }
 0x18b   : > { %1460 = vst.msk [vmem:[%s2544_s28 + $0x8] sm:$0xf] %vm1457_vm1, %v1427_v34  ;;  %v1194_v10 = vadd.f32 %v1193_v31, %v1081_v0  ;;  %1017 = vmatmul.f32.gmra.mxu3 %v320_v51  ;;  %v1083_v11 = vpop.f32.mrf.mxu0 }
 0x18c   : > { %1575 = vmatmul.msk.f32.gmra.mxu2 %vm505_vm0, %v323_v39  ;;  %v334_v39 = vld [vmem:[%s1897_s26 + $0x4e8] sm:$0xff] }
 0x18d   : > { %v1307_v13 = vadd.f32 %v1306_v20, %v1194_v10  ;;  %v1196_v49 = vpop.f32.mrf.mxu1  ;;  %v329_v20 = vld [vmem:[%s1897_s26 + $0x4c0] sm:$0xff]  ;;  %v751_v10 = vadd.f32 %v2264_v12, %v638_v18 }
 0x18e   : > { %v970_v54 = vpop.f32.mrf.mxu3  ;;  %1130 = vmatmul.f32.gmra.mxu0 %v321_v16  ;;  %v337_v16 = vld [vmem:[%s1897_s26 + $0x500] sm:$0xff] }
 0x18f   : > { %v1396_v43 = vmax.f32 %v1307_v13, 0.0  ;;  %v971_v58 = vadd.f32 %v970_v54, %v858_v15  ;;  %v1309_v26 = vpop.f32.mrf.mxu2  ;;  %v864_v13 = vadd.f32 %v2269_v35, %v751_v10  ;;  %v336_v54 = vld [vmem:[%s1897_s26 + $0x4f8] sm:$0xff]  ;;  %v351_v10 = vld [vmem:[%s1897_s26 + $0x570] sm:$0xff] }
 0x190   : > { %1243 = vmatmul.f32.gmra.mxu1 %v322_v9 }
 0x191   : > { %v1428_v27 = vpack.c.bf16 %v1396_v43, %v1396_v43  ;;  %v1084_v17 = vadd.f32 %v1083_v11, %v971_v58 }
 0x193   : > { %1461 = vst.msk [vmem:[%s2544_s28 + $0xc] sm:$0xf] %vm1457_vm1, %v1428_v27  ;;  %v1197_v22 = vadd.f32 %v1196_v49, %v1084_v17  ;;  %1020 = vmatmul.f32.gmra.mxu3 %v327_v46  ;;  %v1086_v31 = vpop.f32.mrf.mxu0  ;;  %v641_v49 = vadd.f32 %v2287_v45, %v2273_v30 }
 0x194   : > { %1576 = vmatmul.msk.f32.gmra.mxu2 %vm505_vm0, %v330_v61  ;;  %v344_v61 = vld [vmem:[%s1897_s26 + $0x538] sm:$0xff] }
 0x195   : > { %v1310_v25 = vadd.f32 %v1309_v26, %v1197_v22  ;;  %v1199_v28 = vpop.f32.mrf.mxu1  ;;  %v754_v27 = vadd.f32 %v2276_v40, %v641_v49 }
 0x196   : > { %v973_v51 = vpop.f32.mrf.mxu3  ;;  %1133 = vmatmul.f32.gmra.mxu0 %v328_v32 }
 0x197   : > { %v1397_v38 = vmax.f32 %v1310_v25, 0.0  ;;  %v974_v34 = vadd.f32 %v973_v51, %v861_v44  ;;  %v1312_v0 = vpop.f32.mrf.mxu2  ;;  %v867_v32 = vadd.f32 %v2281_v42, %v754_v27  ;;  %v644_v44 = vadd.f32 %v2287_v45, %v2290_v48  ;;  %v343_v25 = vld [vmem:[%s1897_s26 + $0x530] sm:$0xff] }
 0x198   : > { %1246 = vmatmul.f32.gmra.mxu1 %v329_v20 }
 0x199   : > { %v1429_v11 = vpack.c.bf16 %v1397_v38, %v1397_v38  ;;  %v1087_v29 = vadd.f32 %v1086_v31, %v974_v34  ;;  %v342_v31 = vld [vmem:[%s1897_s26 + $0x528] sm:$0xff]  ;;  %v348_v34 = vld [vmem:[%s1897_s26 + $0x558] sm:$0xff] }
 0x19b   : > { %1462 = vst.msk [vmem:[%s2544_s28 + $0x10] sm:$0xf] %vm1457_vm1, %v1429_v11  ;;  %v1200_v4 = vadd.f32 %v1199_v28, %v1087_v29  ;;  %1023 = vmatmul.f32.gmra.mxu3 %v334_v39  ;;  %v1089_v15 = vpop.f32.mrf.mxu0  ;;  %v349_v29 = vld [vmem:[%s1897_s26 + $0x560] sm:$0xff] }
 0x19c   : > { %1577 = vmatmul.msk.f32.gmra.mxu2 %vm505_vm0, %v337_v16 }
 0x19d   : > { %v1313_v12 = vadd.f32 %v1312_v0, %v1200_v4  ;;  %v1202_v9 = vpop.f32.mrf.mxu1  ;;  %v757_v0 = vadd.f32 %v2296_v52, %v644_v44  ;;  %v647_v4 = vadd.f32 %v2287_v45, %v2305_v1  ;;  %v362_v44 = vld [vmem:[%s1897_s26 + $0x5c8] sm:$0xff] }
 0x19e   : > { %v976_v43 = vpop.f32.mrf.mxu3  ;;  %1136 = vmatmul.f32.gmra.mxu0 %v335_v36  ;;  %v350_v36 = vld [vmem:[%s1897_s26 + $0x568] sm:$0xff] }
 0x19f   : > { %v1398_v58 = vmax.f32 %v1313_v12, 0.0  ;;  %v977_v26 = vadd.f32 %v976_v43, %v864_v13  ;;  %v1315_v46 = vpop.f32.mrf.mxu2  ;;  %v870_v16 = vadd.f32 %v2301_v59, %v757_v0  ;;  %v760_v43 = vadd.f32 %v2311_v5, %v647_v4  ;;  %v364_v0 = vld [vmem:[%s1897_s26 + $0x5d8] sm:$0xff] }
 0x1a0   : > { %1249 = vmatmul.f32.gmra.mxu1 %v336_v54  ;;  %v355_v54 = vld [vmem:[%s1897_s26 + $0x590] sm:$0xff]  ;;  %v372_v4 = vld [vmem:[%s1897_s26 + $0x618] sm:$0xff] }
 0x1a1   : > { %v1430_v17 = vpack.c.bf16 %v1398_v58, %v1398_v58  ;;  %v1090_v35 = vadd.f32 %v1089_v15, %v977_v26  ;;  %v358_v26 = vld [vmem:[%s1897_s26 + $0x5a8] sm:$0xff]  ;;  %v873_v27 = vadd.f32 %v2316_v14, %v760_v43 }
 0x1a3   : > { %1463 = vst.msk [vmem:[%s2544_s28 + $0x14] sm:$0xf] %vm1457_vm1, %v1430_v17  ;;  %v1203_v30 = vadd.f32 %v1202_v9, %v1090_v35  ;;  %1026 = vmatmul.f32.gmra.mxu3 %v341_v55  ;;  %v1092_v22 = vpop.f32.mrf.mxu0  ;;  %v356_v55 = vld [vmem:[%s1897_s26 + $0x598] sm:$0xff]  ;;  %v650_v17 = vadd.f32 %v2287_v45, %v2320_v23 }
 0x1a4   : > { %1578 = vmatmul.msk.f32.gmra.mxu2 %vm505_vm0, %v344_v61  ;;  %v357_v61 = vld [vmem:[%s1897_s26 + $0x5a0] sm:$0xff] }
 0x1a5   : > { %v1316_v40 = vadd.f32 %v1315_v46, %v1203_v30  ;;  %v1205_v18 = vpop.f32.mrf.mxu1 }
 0x1a6   : > { %v979_v28 = vpop.f32.mrf.mxu3  ;;  %1139 = vmatmul.f32.gmra.mxu0 %v342_v31 }
 0x1a7   : > { %v1399_v20 = vmax.f32 %v1316_v40, 0.0  ;;  %v980_v51 = vadd.f32 %v979_v28, %v867_v32  ;;  %v1318_v38 = vpop.f32.mrf.mxu2  ;;  %v763_v40 = vadd.f32 %v2326_v2, %v650_v17 }
 0x1a8   : > { %1252 = vmatmul.f32.gmra.mxu1 %v343_v25  ;;  %v365_v25 = vld [vmem:[%s1897_s26 + $0x5e0] sm:$0xff] }
 0x1a9   : > { %v1431_v39 = vpack.c.bf16 %v1399_v20, %v1399_v20  ;;  %v1093_v42 = vadd.f32 %v1092_v22, %v980_v51  ;;  %v363_v20 = vld [vmem:[%s1897_s26 + $0x5d0] sm:$0xff]  ;;  %v876_v51 = vadd.f32 %v2331_v24, %v763_v40 }
 0x1ab   : > { %1464 = vst.msk [vmem:[%s2544_s28 + $0x18] sm:$0xf] %vm1457_vm1, %v1431_v39  ;;  %v1206_v48 = vadd.f32 %v1205_v18, %v1093_v42  ;;  %1029 = vmatmul.f32.gmra.mxu3 %v348_v34  ;;  %v1095_v11 = vpop.f32.mrf.mxu0 }
 0x1ac   : > { %1579 = vmatmul.msk.f32.gmra.mxu2 %vm505_vm0, %v351_v10 }
 0x1ad   : > { %v1319_v52 = vadd.f32 %v1318_v38, %v1206_v48  ;;  %v1208_v15 = vpop.f32.mrf.mxu1  ;;  %v653_v38 = vadd.f32 %v2287_v45, %v2335_v33 }
 0x1ae   : > { %v982_v13 = vpop.f32.mrf.mxu3  ;;  %1142 = vmatmul.f32.gmra.mxu0 %v349_v29 }
 0x1af   : > { %v1400_v49 = vmax.f32 %v1319_v52, 0.0  ;;  %v983_v12 = vadd.f32 %v982_v13, %v870_v16  ;;  %v1321_v9 = vpop.f32.mrf.mxu2  ;;  %v766_v29 = vadd.f32 %v2341_v47, %v653_v38  ;;  %v656_v13 = vadd.f32 %v2287_v45, %v2350_v21  ;;  %v385_v38 = vld [vmem:[%s1897_s26 + $0x680] sm:$0xff] }
 0x1b0   : > { %1255 = vmatmul.f32.gmra.mxu1 %v350_v36 }
 0x1b1   : > { %v1432_v58 = vpack.c.bf16 %v1400_v49, %v1400_v49  ;;  %v1096_v59 = vadd.f32 %v1095_v11, %v983_v12  ;;  %v369_v11 = vld [vmem:[%s1897_s26 + $0x600] sm:$0xff]  ;;  %v879_v36 = vadd.f32 %v2346_v56, %v766_v29  ;;  %v371_v12 = vld [vmem:[%s1897_s26 + $0x610] sm:$0xff] }
 0x1b2   : > { %v391_v29 = vld [vmem:[%s1897_s26 + $0x6b0] sm:$0xff] }
 0x1b3   : > { %1465 = vst.msk [vmem:[%s2544_s28 + $0x1c] sm:$0xf] %vm1457_vm1, %v1432_v58  ;;  %v1209_v1 = vadd.f32 %v1208_v15, %v1096_v59  ;;  %1032 = vmatmul.f32.gmra.mxu3 %v355_v54  ;;  %v1098_v46 = vpop.f32.mrf.mxu0  ;;  %v370_v15 = vld [vmem:[%s1897_s26 + $0x608] sm:$0xff]  ;;  %v376_v59 = vld [vmem:[%s1897_s26 + $0x638] sm:$0xff] }
 0x1b4   : > { %1580 = vmatmul.msk.f32.gmra.mxu2 %vm505_vm0, %v358_v26  ;;  %v769_v26 = vadd.f32 %v2356_v7, %v656_v13 }
 0x1b5   : > { %v1322_v5 = vadd.f32 %v1321_v9, %v1209_v1  ;;  %v1211_v35 = vpop.f32.mrf.mxu1 }
 0x1b6   : > { %v985_v30 = vpop.f32.mrf.mxu3  ;;  %1145 = vmatmul.f32.gmra.mxu0 %v356_v55  ;;  %v882_v17 = vadd.f32 %v2361_v41, %v769_v26  ;;  %v400_v26 = vld [vmem:[%s1897_s26 + $0x6f8] sm:$0xff] }
 0x1b7   : > { %v1401_v22 = vmax.f32 %v1322_v5, 0.0  ;;  %v986_v31 = vadd.f32 %v985_v30, %v873_v27  ;;  %v1324_v32 = vpop.f32.mrf.mxu2  ;;  %v377_v27 = vld [vmem:[%s1897_s26 + $0x640] sm:$0xff]  ;;  %v659_v5 = vadd.f32 %v2287_v45, %v2365_v6 }
 0x1b8   : > { %1258 = vmatmul.f32.gmra.mxu1 %v357_v61  ;;  %v378_v61 = vld [vmem:[%s1897_s26 + $0x648] sm:$0xff] }
 0x1b9   : > { %v1433_v18 = vpack.c.bf16 %v1401_v22, %v1401_v22  ;;  %v1099_v14 = vadd.f32 %v1098_v46, %v986_v31  ;;  %v379_v46 = vld [vmem:[%s1897_s26 + $0x650] sm:$0xff]  ;;  %v772_v40 = vadd.f32 %v2371_v37, %v659_v5 }
 0x1bb   : > { %1466 = vst.msk [vmem:[%s2544_s28 + $0x20] sm:$0xf] %vm1457_vm1, %v1433_v18  ;;  %v1212_v23 = vadd.f32 %v1211_v35, %v1099_v14  ;;  %1035 = vmatmul.f32.gmra.mxu3 %v362_v44  ;;  %v1101_v28 = vpop.f32.mrf.mxu0  ;;  %v383_v44 = vld [vmem:[%s1897_s26 + $0x670] sm:$0xff]  ;;  %v386_v14 = vld [vmem:[%s1897_s26 + $0x688] sm:$0xff] }
 0x1bc   : > { %1581 = vmatmul.msk.f32.gmra.mxu2 %vm505_vm0, %v365_v25 }
 0x1bd   : > { %v1325_v2 = vadd.f32 %v1324_v32, %v1212_v23  ;;  %v1214_v34 = vpop.f32.mrf.mxu1  ;;  %v384_v23 = vld [vmem:[%s1897_s26 + $0x678] sm:$0xff] }
 0x1be   : > { %v988_v39 = vpop.f32.mrf.mxu3  ;;  %1148 = vmatmul.f32.gmra.mxu0 %v363_v20  ;;  %v662_v20 = vadd.f32 %v2287_v45, %v2380_v63 }
 0x1bf   : > { %v1402_v42 = vmax.f32 %v1325_v2, 0.0  ;;  %v989_v10 = vadd.f32 %v988_v39, %v876_v51  ;;  %v1327_v48 = vpop.f32.mrf.mxu2 }
 0x1c0   : > { %1261 = vmatmul.f32.gmra.mxu1 %v364_v0 }
 0x1c1   : > { %v1434_v16 = vpack.c.bf16 %v1402_v42, %v1402_v42  ;;  %v1102_v24 = vadd.f32 %v1101_v28, %v989_v10  ;;  %v885_v28 = vadd.f32 %v2376_v50, %v772_v40  ;;  %v390_v42 = vld [vmem:[%s1897_s26 + $0x6a8] sm:$0xff]  ;;  %v775_v10 = vadd.f32 %v2386_v8, %v662_v20 }
 0x1c2   : > { %v2817_v8 = vld [vmem:[#allocation3_spill] sm:$0xff] }
 0x1c3   : > { %1467 = vst.msk [vmem:[%s2544_s28 + $0x24] sm:$0xf] %vm1457_vm1, %v1434_v16  ;;  %v1215_v33 = vadd.f32 %v1214_v34, %v1102_v24  ;;  %1038 = vmatmul.f32.gmra.mxu3 %v369_v11  ;;  %v1104_v52 = vpop.f32.mrf.mxu0  ;;  %v393_v11 = vld [vmem:[%s1897_s26 + $0x6c0] sm:$0xff] }
 0x1c4   : > { %1582 = vmatmul.msk.f32.gmra.mxu2 %vm505_vm0, %v372_v4  ;;  %v2816_v16 = vld [vmem:[#allocation2_spill] sm:$0xff] }
 0x1c5   : > { %v1328_v47 = vadd.f32 %v1327_v48, %v1215_v33  ;;  %v1217_v49 = vpop.f32.mrf.mxu1  ;;  %v888_v24 = vadd.f32 %v2816_v16, %v775_v10  ;;  %v2689_v4 = vld [vmem:[%s2784_s2] ss:$0 sm:$0xff] }
 0x1c6   : > { %v991_v9 = vpop.f32.mrf.mxu3  ;;  %1151 = vmatmul.f32.gmra.mxu0 %v370_v15  ;;  %v665_v33 = vadd.f32 %v2689_v4, %v2817_v8 }
 0x1c7   : > { %v1403_v54 = vmax.f32 %v1328_v47, 0.0  ;;  %v992_v43 = vadd.f32 %v991_v9, %v879_v36  ;;  %v1330_v58 = vpop.f32.mrf.mxu2  ;;  %v392_v36 = vld [vmem:[%s1897_s26 + $0x6b8] sm:$0xff]  ;;  %v397_v9 = vld [vmem:[%s1897_s26 + $0x6e0] sm:$0xff] }
 0x1c8   : > { %1264 = vmatmul.f32.gmra.mxu1 %v371_v12 }
 0x1c9   : > { %v1435_v1 = vpack.c.bf16 %v1403_v54, %v1403_v54  ;;  %v1105_v56 = vadd.f32 %v1104_v52, %v992_v43  ;;  %v2818_v54 = vld [vmem:[#allocation4_spill] sm:$0xff] }
 0x1ca   : > { %v778_v43 = vadd.f32 %v2818_v54, %v665_v33  ;;  %v2825_v33 = vld [vmem:[#allocation13_spill] sm:$0xff] }
 0x1cb   : > { %1468 = vst.msk [vmem:[%s2544_s28 + $0x28] sm:$0xf] %vm1457_vm1, %v1435_v1  ;;  %v1218_v21 = vadd.f32 %v1217_v49, %v1105_v56  ;;  %1041 = vmatmul.f32.gmra.mxu3 %v376_v59  ;;  %v1107_v55 = vpop.f32.mrf.mxu0 }
 0x1cc   : > { %1583 = vmatmul.msk.f32.gmra.mxu2 %vm505_vm0, %v379_v46  ;;  %v398_v46 = vld [vmem:[%s1897_s26 + $0x6e8] sm:$0xff] }
 0x1cd   : > { %v1331_v7 = vadd.f32 %v1330_v58, %v1218_v21  ;;  %v1220_v35 = vpop.f32.mrf.mxu1  ;;  %v2819_v21 = vld [vmem:[#allocation5_spill] sm:$0xff] }
 0x1ce   : > { %v994_v30 = vpop.f32.mrf.mxu3  ;;  %1154 = vmatmul.f32.gmra.mxu0 %v377_v27  ;;  %v2820_v27 = vld [vmem:[#allocation6_spill] sm:$0xff] }
 0x1cf   : > { %v1404_v22 = vmax.f32 %v1331_v7, 0.0  ;;  %v995_v31 = vadd.f32 %v994_v30, %v882_v17  ;;  %v1333_v32 = vpop.f32.mrf.mxu2  ;;  %v668_v17 = vadd.f32 %v2689_v4, %v2820_v27 }
 0x1d0   : > { %1267 = vmatmul.f32.gmra.mxu1 %v378_v61 }
 0x1d1   : > { %v1436_v18 = vpack.c.bf16 %v1404_v22, %v1404_v22  ;;  %v1108_v41 = vadd.f32 %v1107_v55, %v995_v31  ;;  %v891_v55 = vadd.f32 %v2819_v21, %v778_v43 }
 0x1d3   : > { %1469 = vst.msk [vmem:[%s2544_s28 + $0x2c] sm:$0xf] %vm1457_vm1, %v1436_v18  ;;  %v1221_v6 = vadd.f32 %v1220_v35, %v1108_v41  ;;  %1044 = vmatmul.f32.gmra.mxu3 %v383_v44  ;;  %v1110_v25 = vpop.f32.mrf.mxu0  ;;  %v399_v35 = vld [vmem:[%s1897_s26 + $0x6f0] sm:$0xff] }
 0x1d4   : > { %1584 = vmatmul.msk.f32.gmra.mxu2 %vm505_vm0, %v386_v14 }
 0x1d5   : > { %v1334_v37 = vadd.f32 %v1333_v32, %v1221_v6  ;;  %v1223_v51 = vpop.f32.mrf.mxu1  ;;  %v2821_v32 = vld [vmem:[#allocation7_spill] sm:$0xff] }
 0x1d6   : > { %v997_v2 = vpop.f32.mrf.mxu3  ;;  %1157 = vmatmul.f32.gmra.mxu0 %v384_v23  ;;  %v781_v44 = vadd.f32 %v2821_v32, %v668_v17  ;;  %v2828_v17 = vld [vmem:[#allocation18_spill] sm:$0xff]  ;;  %v2829_v32 = vld [vmem:[#allocation19_spill] sm:$0xff] }
 0x1d7   : > { %v1405_v34 = vmax.f32 %v1334_v37, 0.0  ;;  %v998_v0 = vadd.f32 %v997_v2, %v885_v28  ;;  %v1336_v39 = vpop.f32.mrf.mxu2 }
 0x1d8   : > { %1270 = vmatmul.f32.gmra.mxu1 %v385_v38  ;;  %v894_v6 = vadd.f32 %v2420_v3, %v781_v44 }
 0x1d9   : > { %v1437_v48 = vpack.c.bf16 %v1405_v34, %v1405_v34  ;;  %v1111_v50 = vadd.f32 %v1110_v25, %v998_v0  ;;  %v2822_v25 = vld [vmem:[#allocation9_spill] sm:$0xff]  ;;  %v2823_v34 = vld [vmem:[#allocation10_spill] sm:$0xff] }
 0x1da   : > { %v671_v23 = vadd.f32 %v2689_v4, %v2822_v25 }
 0x1db   : > { %1470 = vst.msk [vmem:[%s2544_s28 + $0x30] sm:$0xf] %vm1457_vm1, %v1437_v48  ;;  %v1224_v45 = vadd.f32 %v1223_v51, %v1111_v50  ;;  %1047 = vmatmul.f32.gmra.mxu3 %v390_v42  ;;  %v1113_v63 = vpop.f32.mrf.mxu0  ;;  %v2824_v50 = vld [vmem:[#allocation12_spill] sm:$0xff] }
 0x1dc   : > { %1585 = vmatmul.msk.f32.gmra.mxu2 %vm505_vm0, %v393_v11  ;;  %v784_v0 = vadd.f32 %v2823_v34, %v671_v23  ;;  %v674_v11 = vadd.f32 %v2689_v4, %v2824_v50 }
 0x1dd   : > { %v1337_v52 = vadd.f32 %v1336_v39, %v1224_v45  ;;  %v1226_v15 = vpop.f32.mrf.mxu1 }
 0x1de   : > { %v1000_v13 = vpop.f32.mrf.mxu3  ;;  %1160 = vmatmul.f32.gmra.mxu0 %v391_v29  ;;  %v897_v3 = vadd.f32 %v2434_v62, %v784_v0 }
 0x1df   : > { %v1406_v47 = vmax.f32 %v1337_v52, 0.0  ;;  %v1001_v49 = vadd.f32 %v1000_v13, %v888_v24  ;;  %v1339_v12 = vpop.f32.mrf.mxu2  ;;  %v787_v52 = vadd.f32 %v2825_v33, %v674_v11 }
 0x1e0   : > { %1273 = vmatmul.f32.gmra.mxu1 %v392_v36 }
 0x1e1   : > { %v1438_v58 = vpack.c.bf16 %v1406_v47, %v1406_v47  ;;  %v1114_v59 = vadd.f32 %v1113_v63, %v1001_v49  ;;  %v900_v62 = vadd.f32 %v2448_v19, %v787_v52  ;;  %v2826_v49 = vld [vmem:[#allocation15_spill] sm:$0xff] }
 0x1e3   : > { %1471 = vst.msk [vmem:[%s2544_s28 + $0x34] sm:$0xf] %vm1457_vm1, %v1438_v58  ;;  %v1227_v1 = vadd.f32 %v1226_v15, %v1114_v59  ;;  %1050 = vmatmul.f32.gmra.mxu3 %v397_v9  ;;  %v1116_v56 = vpop.f32.mrf.mxu0 }
 0x1e4   : > { %1586 = vmatmul.msk.f32.gmra.mxu2 %vm505_vm0, %v400_v26 }
 0x1e5   : > { %v1340_v5 = vadd.f32 %v1339_v12, %v1227_v1  ;;  %v1229_v7 = vpop.f32.mrf.mxu1  ;;  %v677_v12 = vadd.f32 %v2689_v4, %v2826_v49  ;;  %v2827_v1 = vld [vmem:[#allocation16_spill] sm:$0xff] }
 0x1e6   : > { %v1003_v61 = vpop.f32.mrf.mxu3  ;;  %1163 = vmatmul.f32.gmra.mxu0 %v398_v46 }
 0x1e7   : > { %v1407_v30 = vmax.f32 %v1340_v5, 0.0  ;;  %v1004_v22 = vadd.f32 %v1003_v61, %v891_v55  ;;  %v1342_v31 = vpop.f32.mrf.mxu2  ;;  %v680_v5 = vadd.f32 %v2689_v4, %v2828_v17 }
 0x1e8   : > { %1276 = vmatmul.f32.gmra.mxu1 %v399_v35 }
 0x1e9   : > { %v1439_v40 = vpack.c.bf16 %v1407_v30, %v1407_v30  ;;  %v1117_v18 = vadd.f32 %v1116_v56, %v1004_v22  ;;  %v790_v56 = vadd.f32 %v2827_v1, %v677_v12  ;;  %v793_v44 = vadd.f32 %v2829_v32, %v680_v5 }
 0x1eb   : > { %1472 = vst.msk [vmem:[%s2544_s28 + $0x38] sm:$0xf] %vm1457_vm1, %v1439_v40  ;;  %v1230_v41 = vadd.f32 %v1229_v7, %v1117_v18  ;;  %v1119_v14 = vpop.f32.mrf.mxu0  ;;  %v903_v19 = vadd.f32 %v2462_v53, %v790_v56  ;;  %v906_v53 = vadd.f32 %v2476_v60, %v793_v44 }
 0x1ed   : > { %v1343_v28 = vadd.f32 %v1342_v31, %v1230_v41  ;;  %v1232_v20 = vpop.f32.mrf.mxu1 }
 0x1ee   : > { %v1006_v37 = vpop.f32.mrf.mxu3 }
 0x1ef   : > { %v1408_v51 = vmax.f32 %v1343_v28, 0.0  ;;  %v1007_v38 = vadd.f32 %v1006_v37, %v894_v6  ;;  %v1345_v2 = vpop.f32.mrf.mxu2  ;;  %v2830_v6 = vld [vmem:[#allocation21_spill] sm:$0xff] }
 0x1f0   : > { %v683_v25 = vadd.f32 %v2689_v4, %v2830_v6 }
 0x1f1   : > { %v1440_v39 = vpack.c.bf16 %v1408_v51, %v1408_v51  ;;  %v1120_v42 = vadd.f32 %v1119_v14, %v1007_v38 }
 0x1f3   : > { %1473 = vst.msk [vmem:[%s2544_s28 + $0x3c] sm:$0xf] %vm1457_vm1, %v1440_v39  ;;  %v1233_v10 = vadd.f32 %v1232_v20, %v1120_v42  ;;  %v1122_v48 = vpop.f32.mrf.mxu0 }
 0x1f5   : > { %v1346_v45 = vadd.f32 %v1345_v2, %v1233_v10  ;;  %v1235_v63 = vpop.f32.mrf.mxu1  ;;  %v2831_v2 = vld [vmem:[#allocation22_spill] sm:$0xff] }
 0x1f6   : > { %v1009_v29 = vpop.f32.mrf.mxu3  ;;  %v796_v34 = vadd.f32 %v2831_v2, %v683_v25  ;;  %v2839_v2 = vld [vmem:[#allocation11_spill] sm:$0xff] }
 0x1f7   : > { %v1409_v16 = vmax.f32 %v1346_v45, 0.0  ;;  %v1010_v24 = vadd.f32 %v1009_v29, %v897_v3  ;;  %v1348_v8 = vpop.f32.mrf.mxu2 }
 0x1f8   : > { %v909_v60 = vadd.f32 %v2490_v57, %v796_v34 }
 0x1f9   : > { %v1441_v15 = vpack.c.bf16 %v1409_v16, %v1409_v16  ;;  %v1123_v36 = vadd.f32 %v1122_v48, %v1010_v24  ;;  %v2832_v48 = vld [vmem:[#allocation24_spill] sm:$0xff]  ;;  %v2833_v24 = vld [vmem:[#allocation25_spill] sm:$0xff] }
 0x1fa   : > { %v686_v3 = vadd.f32 %v2689_v4, %v2832_v48 }
 0x1fb   : > { %1474 = vst.msk [vmem:[%s2544_s28 + $0x40] sm:$0xf] %vm1457_vm1, %v1441_v15  ;;  %v1236_v13 = vadd.f32 %v1235_v63, %v1123_v36  ;;  %v1125_v47 = vpop.f32.mrf.mxu0 }
 0x1fd   : > { %v1349_v9 = vadd.f32 %v1348_v8, %v1236_v13  ;;  %v1238_v54 = vpop.f32.mrf.mxu1  ;;  %v799_v8 = vadd.f32 %v2833_v24, %v686_v3  ;;  %v2834_v13 = vld [vmem:[#allocation27_spill] sm:$0xff] }
 0x1fe   : > { %v1012_v43 = vpop.f32.mrf.mxu3 }
 0x1ff   : > { %v1410_v58 = vmax.f32 %v1349_v9, 0.0  ;;  %v1013_v59 = vadd.f32 %v1012_v43, %v900_v62  ;;  %v1351_v26 = vpop.f32.mrf.mxu2  ;;  %v912_v57 = vadd.f32 %v2834_v13, %v799_v8 }
 0x201   : > { %v1442_v46 = vpack.c.bf16 %v1410_v58, %v1410_v58  ;;  %v1126_v21 = vadd.f32 %v1125_v47, %v1013_v59  ;;  %v2835_v47 = vld [vmem:[#allocation28_spill] sm:$0xff]  ;;  %v2836_v59 = vld [vmem:[#allocation29_spill] sm:$0xff] }
 0x202   : > { %v689_v62 = vadd.f32 %v2689_v4, %v2835_v47 }
 0x203   : > { %1475 = vst.msk [vmem:[%s2544_s28 + $0x44] sm:$0xf] %vm1457_vm1, %v1442_v46  ;;  %v1239_v55 = vadd.f32 %v1238_v54, %v1126_v21  ;;  %v1128_v27 = vpop.f32.mrf.mxu0 }
 0x205   : > { %v1352_v7 = vadd.f32 %v1351_v26, %v1239_v55  ;;  %v1241_v35 = vpop.f32.mrf.mxu1  ;;  %v802_v26 = vadd.f32 %v2836_v59, %v689_v62  ;;  %v2837_v55 = vld [vmem:[#allocation31_spill] sm:$0xff] }
 0x206   : > { %v1015_v61 = vpop.f32.mrf.mxu3 }
 0x207   : > { %v1411_v30 = vmax.f32 %v1352_v7, 0.0  ;;  %v1016_v22 = vadd.f32 %v1015_v61, %v903_v19  ;;  %v1354_v31 = vpop.f32.mrf.mxu2 }
 0x209   : > { %v1443_v40 = vpack.c.bf16 %v1411_v30, %v1411_v30  ;;  %v1129_v18 = vadd.f32 %v1128_v27, %v1016_v22  ;;  %v915_v27 = vadd.f32 %v2837_v55, %v802_v26 }
 0x20b   : > { %1476 = vst.msk [vmem:[%s2544_s28 + $0x48] sm:$0xf] %vm1457_vm1, %v1443_v40  ;;  %v1242_v41 = vadd.f32 %v1241_v35, %v1129_v18  ;;  %v1131_v14 = vpop.f32.mrf.mxu0 }
 0x20d   : > { %v1355_v23 = vadd.f32 %v1354_v31, %v1242_v41  ;;  %v1244_v28 = vpop.f32.mrf.mxu1  ;;  %v2838_v41 = vld [vmem:[#allocation8_spill] sm:$0xff] }
 0x20e   : > { %v1018_v20 = vpop.f32.mrf.mxu3 }
 0x20f   : > { %v1412_v37 = vmax.f32 %v1355_v23, 0.0  ;;  %v1019_v51 = vadd.f32 %v1018_v20, %v906_v53  ;;  %v1357_v38 = vpop.f32.mrf.mxu2 }
 0x211   : > { %v1444_v0 = vpack.c.bf16 %v1412_v37, %v1412_v37  ;;  %v1132_v39 = vadd.f32 %v1131_v14, %v1019_v51 }
 0x213   : > { %1477 = vst.msk [vmem:[%s2544_s28 + $0x4c] sm:$0xf] %vm1457_vm1, %v1444_v0  ;;  %v1245_v42 = vadd.f32 %v1244_v28, %v1132_v39  ;;  %v1134_v10 = vpop.f32.mrf.mxu0 }
 0x215   : > { %v1358_v50 = vadd.f32 %v1357_v38, %v1245_v42  ;;  %v1247_v11 = vpop.f32.mrf.mxu1 }
 0x216   : > { %v1021_v45 = vpop.f32.mrf.mxu3 }
 0x217   : > { %v1413_v63 = vmax.f32 %v1358_v50, 0.0  ;;  %v1022_v29 = vadd.f32 %v1021_v45, %v909_v60  ;;  %v1360_v16 = vpop.f32.mrf.mxu2  ;;  %v2840_v45 = vld [vmem:[#allocation14_spill] sm:$0xff] }
 0x219   : > { %v1445_v33 = vpack.c.bf16 %v1413_v63, %v1413_v63  ;;  %v1135_v52 = vadd.f32 %v1134_v10, %v1022_v29 }
 0x21b   : > { %1478 = vst.msk [vmem:[%s2544_s28 + $0x50] sm:$0xf] %vm1457_vm1, %v1445_v33  ;;  %v1248_v15 = vadd.f32 %v1247_v11, %v1135_v52  ;;  %v1137_v36 = vpop.f32.mrf.mxu0 }
 0x21d   : > { %v1361_v49 = vadd.f32 %v1360_v16, %v1248_v15  ;;  %v1250_v12 = vpop.f32.mrf.mxu1 }
 0x21e   : > { %v1024_v9 = vpop.f32.mrf.mxu3 }
 0x21f   : > { %v1414_v54 = vmax.f32 %v1361_v49, 0.0  ;;  %v1025_v43 = vadd.f32 %v1024_v9, %v912_v57  ;;  %v1363_v58 = vpop.f32.mrf.mxu2  ;;  %v2841_v57 = vld [vmem:[#allocation17_spill] sm:$0xff] }
 0x221   : > { %v1446_v1 = vpack.c.bf16 %v1414_v54, %v1414_v54  ;;  %v1138_v56 = vadd.f32 %v1137_v36, %v1025_v43 }
 0x223   : > { %1479 = vst.msk [vmem:[%s2544_s28 + $0x54] sm:$0xf] %vm1457_vm1, %v1446_v1  ;;  %v1251_v46 = vadd.f32 %v1250_v12, %v1138_v56  ;;  %v1140_v21 = vpop.f32.mrf.mxu0  ;;  %v2842_v1 = vld [vmem:[#allocation20_spill] sm:$0xff] }
 0x225   : > { %v1364_v19 = vadd.f32 %v1363_v58, %v1251_v46  ;;  %v1253_v17 = vpop.f32.mrf.mxu1 }
 0x226   : > { %v1027_v4 = vpop.f32.mrf.mxu3 }
 0x227   : > { %v1415_v5 = vmax.f32 %v1364_v19, 0.0  ;;  %v1028_v7 = vadd.f32 %v1027_v4, %v915_v27  ;;  %v1366_v35 = vpop.f32.mrf.mxu2 }
 0x229   : > { %v1447_v61 = vpack.c.bf16 %v1415_v5, %v1415_v5  ;;  %v1141_v30 = vadd.f32 %v1140_v21, %v1028_v7 }
 0x22b   : > { %1480 = vst.msk [vmem:[%s2544_s28 + $0x58] sm:$0xf] %vm1457_vm1, %v1447_v61  ;;  %v1254_v22 = vadd.f32 %v1253_v17, %v1141_v30  ;;  %v1143_v31 = vpop.f32.mrf.mxu0 }
 0x22d   : > { %v1367_v32 = vadd.f32 %v1366_v35, %v1254_v22  ;;  %v1256_v44 = vpop.f32.mrf.mxu1  ;;  %v2843_v35 = vld [vmem:[#allocation23_spill] sm:$0xff] }
 0x22e   : > { %v1030_v40 = vpop.f32.mrf.mxu3 }
 0x22f   : > { %v1416_v18 = vmax.f32 %v1367_v32, 0.0  ;;  %v1031_v14 = vadd.f32 %v1030_v40, %v2838_v41  ;;  %v1369_v53 = vpop.f32.mrf.mxu2 }
 0x231   : > { %v1448_v6 = vpack.c.bf16 %v1416_v18, %v1416_v18  ;;  %v1144_v25 = vadd.f32 %v1143_v31, %v1031_v14 }
 0x233   : > { %1481 = vst.msk [vmem:[%s2544_s28 + $0x5c] sm:$0xf] %vm1457_vm1, %v1448_v6  ;;  %v1257_v23 = vadd.f32 %v1256_v44, %v1144_v25  ;;  %v1146_v28 = vpop.f32.mrf.mxu0 }
 0x235   : > { %v1370_v20 = vadd.f32 %v1369_v53, %v1257_v23  ;;  %v1259_v37 = vpop.f32.mrf.mxu1  ;;  %v2844_v53 = vld [vmem:[#allocation26_spill] sm:$0xff] }
 0x236   : > { %v1033_v51 = vpop.f32.mrf.mxu3 }
 0x237   : > { %v1417_v38 = vmax.f32 %v1370_v20, 0.0  ;;  %v1034_v34 = vadd.f32 %v1033_v51, %v2839_v2  ;;  %v1372_v0 = vpop.f32.mrf.mxu2 }
 0x239   : > { %v1449_v39 = vpack.c.bf16 %v1417_v38, %v1417_v38  ;;  %v1147_v42 = vadd.f32 %v1146_v28, %v1034_v34  ;;  %v2845_v34 = vld [vmem:[#allocation30_spill] sm:$0xff] }
 0x23b   : > { %1482 = vst.msk [vmem:[%s2544_s28 + $0x60] sm:$0xf] %vm1457_vm1, %v1449_v39  ;;  %v1260_v10 = vadd.f32 %v1259_v37, %v1147_v42  ;;  %v1149_v60 = vpop.f32.mrf.mxu0 }
 0x23d   : > { %v1373_v48 = vadd.f32 %v1372_v0, %v1260_v10  ;;  %v1262_v3 = vpop.f32.mrf.mxu1 }
 0x23e   : > { %v1036_v50 = vpop.f32.mrf.mxu3 }
 0x23f   : > { %v1418_v11 = vmax.f32 %v1373_v48, 0.0  ;;  %v1037_v63 = vadd.f32 %v1036_v50, %v2840_v45  ;;  %v1375_v29 = vpop.f32.mrf.mxu2 }
 0x241   : > { %v1450_v16 = vpack.c.bf16 %v1418_v11, %v1418_v11  ;;  %v1150_v24 = vadd.f32 %v1149_v60, %v1037_v63 }
 0x243   : > { %1483 = vst.msk [vmem:[%s2544_s28 + $0x64] sm:$0xf] %vm1457_vm1, %v1450_v16  ;;  %v1263_v8 = vadd.f32 %v1262_v3, %v1150_v24  ;;  %v1152_v33 = vpop.f32.mrf.mxu0 }
 0x245   : > { %v1376_v52 = vadd.f32 %v1375_v29, %v1263_v8  ;;  %v1265_v15 = vpop.f32.mrf.mxu1 }
 0x246   : > { %v1039_v36 = vpop.f32.mrf.mxu3 }
 0x247   : > { %v1419_v13 = vmax.f32 %v1376_v52, 0.0  ;;  %v1040_v47 = vadd.f32 %v1039_v36, %v2841_v57  ;;  %v1378_v62 = vpop.f32.mrf.mxu2 }
 0x249   : > { %v1451_v49 = vpack.c.bf16 %v1419_v13, %v1419_v13  ;;  %v1153_v12 = vadd.f32 %v1152_v33, %v1040_v47 }
 0x24b   : > { %1484 = vst.msk [vmem:[%s2544_s28 + $0x68] sm:$0xf] %vm1457_vm1, %v1451_v49  ;;  %v1266_v9 = vadd.f32 %v1265_v15, %v1153_v12  ;;  %v1155_v54 = vpop.f32.mrf.mxu0 }
 0x24d   : > { %v1379_v43 = vadd.f32 %v1378_v62, %v1266_v9  ;;  %v1268_v58 = vpop.f32.mrf.mxu1 }
 0x24e   : > { %v1042_v59 = vpop.f32.mrf.mxu3 }
 0x24f   : > { %v1420_v26 = vmax.f32 %v1379_v43, 0.0  ;;  %v1043_v56 = vadd.f32 %v1042_v59, %v2842_v1  ;;  %v1381_v46 = vpop.f32.mrf.mxu2 }
 0x251   : > { %v1452_v21 = vpack.c.bf16 %v1420_v26, %v1420_v26  ;;  %v1156_v55 = vadd.f32 %v1155_v54, %v1043_v56 }
 0x253   : > { %1485 = vst.msk [vmem:[%s2544_s28 + $0x6c] sm:$0xf] %vm1457_vm1, %v1452_v21  ;;  %v1269_v27 = vadd.f32 %v1268_v58, %v1156_v55  ;;  %v1158_v19 = vpop.f32.mrf.mxu0 }
 0x255   : > { %v1382_v17 = vadd.f32 %v1381_v46, %v1269_v27  ;;  %v1271_v4 = vpop.f32.mrf.mxu1 }
 0x256   : > { %v1045_v5 = vpop.f32.mrf.mxu3 }
 0x257   : > { %v1421_v7 = vmax.f32 %v1382_v17, 0.0  ;;  %v1046_v61 = vadd.f32 %v1045_v5, %v2843_v35  ;;  %v1384_v30 = vpop.f32.mrf.mxu2 }
 0x259   : > { %v1453_v22 = vpack.c.bf16 %v1421_v7, %v1421_v7  ;;  %v1159_v31 = vadd.f32 %v1158_v19, %v1046_v61 }
 0x25b   : > { %1486 = vst.msk [vmem:[%s2544_s28 + $0x70] sm:$0xf] %vm1457_vm1, %v1453_v22  ;;  %v1272_v32 = vadd.f32 %v1271_v4, %v1159_v31  ;;  %v1161_v44 = vpop.f32.mrf.mxu0 }
 0x25d   : > { %v1385_v40 = vadd.f32 %v1384_v30, %v1272_v32  ;;  %v1274_v41 = vpop.f32.mrf.mxu1 }
 0x25e   : > { %v1048_v18 = vpop.f32.mrf.mxu3 }
 0x25f   : > { %v1422_v14 = vmax.f32 %v1385_v40, 0.0  ;;  %v1049_v6 = vadd.f32 %v1048_v18, %v2844_v53  ;;  %v1387_v25 = vpop.f32.mrf.mxu2 }
 0x261   : > { %v1454_v23 = vpack.c.bf16 %v1422_v14, %v1422_v14  ;;  %v1162_v28 = vadd.f32 %v1161_v44, %v1049_v6 }
 0x263   : > { %1487 = vst.msk [vmem:[%s2544_s28 + $0x74] sm:$0xf] %vm1457_vm1, %v1454_v23  ;;  %v1275_v20 = vadd.f32 %v1274_v41, %v1162_v28  ;;  %v1164_v38 = vpop.f32.mrf.mxu0 }
 0x265   : > { %v1388_v37 = vadd.f32 %v1387_v25, %v1275_v20  ;;  %v1277_v39 = vpop.f32.mrf.mxu1 }
 0x266   : > { %v1051_v51 = vpop.f32.mrf.mxu3 }
 0x267   : > { %v1423_v2 = vmax.f32 %v1388_v37, 0.0  ;;  %v1052_v0 = vadd.f32 %v1051_v51, %v2845_v34  ;;  %v1390_v60 = vpop.f32.mrf.mxu2 }
 0x269   : > { %v1455_v42 = vpack.c.bf16 %v1423_v2, %v1423_v2  ;;  %v1165_v10 = vadd.f32 %v1164_v38, %v1052_v0 }
 0x26b   : > { %1488 = vst.msk [vmem:[%s2544_s28 + $0x78] sm:$0xf] %vm1457_vm1, %v1455_v42  ;;  %v1278_v48 = vadd.f32 %v1277_v39, %v1165_v10 }
 0x26d   : > { %v1391_v3 = vadd.f32 %v1390_v60, %v1278_v48 }
 0x26f   : > { %v1424_v50 = vmax.f32 %v1391_v3, 0.0 }
 0x271   : > { %v1456_v11 = vpack.c.bf16 %v1424_v50, %v1424_v50 }
 0x273   : > { %1489 = vst.msk [vmem:[%s2544_s28 + $0x7c] sm:$0xf] %vm1457_vm1, %v1456_v11 }
 0x274 PF: > { %s13_s12 = sadd.s32 1, %s1654_s12  }
 0x275   : > { %p10_p4 = scmp.ge.s32.totalorder %s13_s12, 6  }
 0x277   :  { %12 = sbr.rel (!%p10_p4) target bundleno = 1 (0x1), region = 62 }

// kernel: cnn_forward.5
= control target key start
LH: loop header
LB: loop body
LE: loop exit
PB: predicated region body
PF: predicated region fallthrough
CT: control target
= control target key end

     0   :  { %10 = vsyncpa [#allocation4], 0  ;;  %s8085_s18 = smov 0   ;;  %s8705_s0 = inlined_call_operand.vmem [shape: bf16[1,65536], index: 0, kind: input, shape index: {}]   ;;  %s8706_s1 = inlined_call_operand.vmem [shape: bf16[65536,128], index: 1, kind: input, shape index: {}]   ;;  %s8707_s2 = inlined_call_operand.vmem [shape: f32[1,128], index: 2, kind: input, shape index: {}]   ;;  %s8708_s3 = inlined_call_operand.vmem [shape: f32[128,2], index: 3, kind: input, shape index: {}]   ;;  %s8709_s4 = inlined_call_operand.vmem [shape: f32[1,2], index: 4, kind: input, shape index: {}]   ;;  %s8710_s5 = inlined_call_operand.hbm [shape: f32[1,2], index: 5, kind: output, shape index: {}]  }
   0x1 LB: > { %s8091_s19 = sadd.s32 4294967295, %s8051_s18   ;;  %p5427_p0 = scmp.ge.s32.totalorder %s8051_s18, 1  ;;  %s8051_s18 = sphi %s8085_s18, %s16_s18  }
   0x2   : > { %p194_p1 = scmp.lt.s32.totalorder %s8051_s18, 9 }
   0x4   : > { %p195_p2 = pnand %p5427_p0, %p194_p1 }
   0x5   : > { %s5428_s20 = sshll.u32 (!%p195_p2), %s8091_s19, 6  ;;  %s5429_s21 = sshll.u32 (!%p195_p2), %s8091_s19, 10 }
   0x6   : > { %198 = sbr.rel (%p195_p2) target bundleno = 841 (0x349), region = 40  ;;  %p222_p3 = scmp.lt.s32.totalorder (!%p195_p2), %s5428_s20, 511 }
   0x7   : > { %p227_p4 = scmp.lt.s32.totalorder (!%p195_p2), %s5429_s21, 8191  ;;  %p5431_p5 = scmp.ne.s32.totalorder (!%p195_p2), %s8091_s19, 0 }
   0xb   : > { %s8712_s20 = smov (!%p222_p3, %s5428_s20), 511  ;;  %s8714_s21 = smov (!%p227_p4, %s5429_s21), 8191 }
   0xc   : > { %s8100_s24 = scalar_lea.vmem %s8705_s0, %s8712_s20  ;;  %s5430_s25 = sshll.u32 %s8714_s21, 2 }
   0xd   : > { %s8105_s28 = scalar_lea.vmem %s8706_s1, %s5430_s25  ;;  %235 = sbr.rel (%p5431_p5) target bundleno = 20 (0x14), region = 44 }
  0x12   : > { %v8053_v0 = vmov 0.0  }
  0x13   : > { %236 = vst [vmem:[#allocation2] sm:$0x1] %v8053_v0 }
  0x14 PF: > { %v7492_v1 = vld [vmem:[%s8105_s28 + $0x38] sm:$0xff]  ;;  %v7491_v5 = vld [vmem:[%s8105_s28 + $0x30] sm:$0xff]  ;;  %v7490_v9 = vld [vmem:[%s8105_s28 + $0x28] sm:$0xff]  ;;  %p7480_p6 = scmp.ne.s32.totalorder %s8091_s19, 7 }
  0x15   : > { %v7500_v2 = vld [vmem:[%s8105_s28 + $0x78] sm:$0xff]  ;;  %4486 = vmatpush.bf16.msra.mxu0 %v7492_v1  ;;  %v7499_v6 = vld [vmem:[%s8105_s28 + $0x70] sm:$0xff]  ;;  %v7498_v10 = vld [vmem:[%s8105_s28 + $0x68] sm:$0xff] }
  0x16   : > { %v7508_v3 = vld [vmem:[%s8105_s28 + $0xb8] sm:$0xff]  ;;  %4499 = vmatpush.bf16.msra.mxu1 %v7500_v2  ;;  %v7507_v7 = vld [vmem:[%s8105_s28 + $0xb0] sm:$0xff]  ;;  %v7506_v11 = vld [vmem:[%s8105_s28 + $0xa8] sm:$0xff] }
  0x17   : > { %v7516_v4 = vld [vmem:[%s8105_s28 + $0xf8] sm:$0xff]  ;;  %4512 = vmatpush.bf16.msra.mxu2 %v7508_v3  ;;  %v7515_v8 = vld [vmem:[%s8105_s28 + $0xf0] sm:$0xff]  ;;  %v7514_v12 = vld [vmem:[%s8105_s28 + $0xe8] sm:$0xff] }
  0x18   : > { %4525 = vmatpush.bf16.msra.mxu3 %v7516_v4  ;;  %v7489_v13 = vld [vmem:[%s8105_s28 + $0x20] sm:$0xff]  ;;  %v7488_v17 = vld [vmem:[%s8105_s28 + $0x18] sm:$0xff]  ;;  %v7487_v22 = vld [vmem:[%s8105_s28 + $0x10] sm:$0xff] }
  0x19   : > { %4487 = vmatpush.bf16.msra.mxu0 %v7491_v5  ;;  %v7497_v14 = vld [vmem:[%s8105_s28 + $0x60] sm:$0xff]  ;;  %v7496_v18 = vld [vmem:[%s8105_s28 + $0x58] sm:$0xff]  ;;  %v7495_v23 = vld [vmem:[%s8105_s28 + $0x50] sm:$0xff] }
  0x1a   : > { %4500 = vmatpush.bf16.msra.mxu1 %v7499_v6  ;;  %v7505_v15 = vld [vmem:[%s8105_s28 + $0xa0] sm:$0xff]  ;;  %v7504_v19 = vld [vmem:[%s8105_s28 + $0x98] sm:$0xff]  ;;  %v7503_v24 = vld [vmem:[%s8105_s28 + $0x90] sm:$0xff] }
  0x1b   : > { %4513 = vmatpush.bf16.msra.mxu2 %v7507_v7  ;;  %v7513_v16 = vld [vmem:[%s8105_s28 + $0xe0] sm:$0xff]  ;;  %v7512_v20 = vld [vmem:[%s8105_s28 + $0xd8] sm:$0xff]  ;;  %v7511_v25 = vld [vmem:[%s8105_s28 + $0xd0] sm:$0xff] }
  0x1c   : > { %4526 = vmatpush.bf16.msra.mxu3 %v7515_v8  ;;  %v238_v21 = vld [vmem:[%s8100_s24] sm:$0xff]  ;;  %v7486_v26 = vld [vmem:[%s8105_s28 + $0x8] sm:$0xff]  ;;  %v7524_v34 = vld [vmem:[%s8105_s28 + $0x138] sm:$0xff] }
  0x1d   : > { %4488 = vmatpush.bf16.msra.mxu0 %v7490_v9  ;;  %1271 = vst [vmem:[#allocation1] ss:$9 sm:$0xff] %v238_v21  ;;  %v7494_v27 = vld [vmem:[%s8105_s28 + $0x48] sm:$0xff]  ;;  %v7485_v30 = vld [vmem:[%s8105_s28] sm:$0xff]  ;;  %v7532_v35 = vld [vmem:[%s8105_s28 + $0x178] sm:$0xff] }
  0x1e   : > { %4501 = vmatpush.bf16.msra.mxu1 %v7498_v10  ;;  %v7502_v28 = vld [vmem:[%s8105_s28 + $0x88] sm:$0xff]  ;;  %v7493_v31 = vld [vmem:[%s8105_s28 + $0x40] sm:$0xff]  ;;  %v7540_v36 = vld [vmem:[%s8105_s28 + $0x1b8] sm:$0xff] }
  0x1f   : > { %4514 = vmatpush.bf16.msra.mxu2 %v7506_v11  ;;  %v7510_v29 = vld [vmem:[%s8105_s28 + $0xc8] sm:$0xff]  ;;  %v7501_v32 = vld [vmem:[%s8105_s28 + $0x80] sm:$0xff]  ;;  %v7548_v37 = vld [vmem:[%s8105_s28 + $0x1f8] sm:$0xff] }
  0x20   : > { %4527 = vmatpush.bf16.msra.mxu3 %v7514_v12  ;;  %v7509_v33 = vld [vmem:[%s8105_s28 + $0xc0] sm:$0xff]  ;;  %v7523_v38 = vld [vmem:[%s8105_s28 + $0x130] sm:$0xff]  ;;  %v7522_v46 = vld [vmem:[%s8105_s28 + $0x128] sm:$0xff] }
  0x21   : > { %4489 = vmatpush.bf16.msra.mxu0 %v7489_v13  ;;  %v7531_v41 = vld [vmem:[%s8105_s28 + $0x170] sm:$0xff]  ;;  %v7530_v47 = vld [vmem:[%s8105_s28 + $0x168] sm:$0xff]  ;;  %v7521_v55 = vld [vmem:[%s8105_s28 + $0x120] sm:$0xff] }
  0x22   : > { %4502 = vmatpush.bf16.msra.mxu1 %v7497_v14  ;;  %v7539_v44 = vld [vmem:[%s8105_s28 + $0x1b0] sm:$0xff]  ;;  %v7538_v48 = vld [vmem:[%s8105_s28 + $0x1a8] sm:$0xff]  ;;  %v7529_v56 = vld [vmem:[%s8105_s28 + $0x160] sm:$0xff] }
  0x23   : > { %4515 = vmatpush.bf16.msra.mxu2 %v7505_v15  ;;  %v7547_v45 = vld [vmem:[%s8105_s28 + $0x1f0] sm:$0xff]  ;;  %v7546_v49 = vld [vmem:[%s8105_s28 + $0x1e8] sm:$0xff]  ;;  %v7537_v57 = vld [vmem:[%s8105_s28 + $0x1a0] sm:$0xff] }
  0x24   : > { %4528 = vmatpush.bf16.msra.mxu3 %v7513_v16  ;;  %v1274_v39 = vld [vmem:[#allocation1 + $0x12] sm:$0xff]  ;;  %v1272_v40 = vld [vmem:[#allocation1] sm:$0xff]  ;;  %v1273_v43 = vld [vmem:[#allocation1 + $0x9] sm:$0xff] }
  0x25   : > { %4490 = vmatpush.bf16.msra.mxu0 %v7488_v17  ;;  %v1275_v42 = vld [vmem:[#allocation1 + $0x1b] sm:$0xff]  ;;  %v1276_v51 = vld [vmem:[#allocation1 + $0x24] sm:$0xff]  ;;  %v1277_v54 = vld [vmem:[#allocation1 + $0x2d] sm:$0xff] }
  0x26   : > { %4503 = vmatpush.bf16.msra.mxu1 %v7496_v18  ;;  %v1278_v50 = vld [vmem:[#allocation1 + $0x36] sm:$0xff]  ;;  %v1279_v52 = vld [vmem:[#allocation1 + $0x3f] sm:$0xff]  ;;  %v239_v53 = vld [vmem:[%s8100_s24 + $0x8] sm:$0xff] }
  0x27   : > { %4516 = vmatpush.bf16.msra.mxu2 %v7504_v19  ;;  %1281 = vst [vmem:[#allocation1] ss:$9 sm:$0xff] %v239_v53  ;;  %v7545_v58 = vld [vmem:[%s8105_s28 + $0x1e0] sm:$0xff]  ;;  %v7520_v59 = vld [vmem:[%s8105_s28 + $0x118] sm:$0xff]  ;;  %v7519_v63 = vld [vmem:[%s8105_s28 + $0x110] sm:$0xff] }
  0x28   : > { %4529 = vmatpush.bf16.msra.mxu3 %v7512_v20  ;;  %v7528_v60 = vld [vmem:[%s8105_s28 + $0x158] sm:$0xff]  ;;  %v7527_v0 = vld [vmem:[%s8105_s28 + $0x150] sm:$0xff]  ;;  %v7518_v3 = vld [vmem:[%s8105_s28 + $0x108] sm:$0xff] }
  0x29   : > { %4491 = vmatpush.bf16.msra.mxu0 %v7487_v22  ;;  %v7536_v61 = vld [vmem:[%s8105_s28 + $0x198] sm:$0xff]  ;;  %v7535_v1 = vld [vmem:[%s8105_s28 + $0x190] sm:$0xff]  ;;  %v7526_v4 = vld [vmem:[%s8105_s28 + $0x148] sm:$0xff] }
  0x2a   : > { %4504 = vmatpush.bf16.msra.mxu1 %v7495_v23  ;;  %v7544_v62 = vld [vmem:[%s8105_s28 + $0x1d8] sm:$0xff]  ;;  %v7543_v2 = vld [vmem:[%s8105_s28 + $0x1d0] sm:$0xff]  ;;  %v7534_v5 = vld [vmem:[%s8105_s28 + $0x188] sm:$0xff] }
  0x2b   : > { %4517 = vmatpush.bf16.msra.mxu2 %v7503_v24  ;;  %v7542_v6 = vld [vmem:[%s8105_s28 + $0x1c8] sm:$0xff]  ;;  %v7517_v7 = vld [vmem:[%s8105_s28 + $0x100] sm:$0xff]  ;;  %v7556_v11 = vld [vmem:[%s8105_s28 + $0x238] sm:$0xff] }
  0x2c   : > { %4530 = vmatpush.bf16.msra.mxu3 %v7511_v25  ;;  %v7525_v8 = vld [vmem:[%s8105_s28 + $0x140] sm:$0xff]  ;;  %v7564_v12 = vld [vmem:[%s8105_s28 + $0x278] sm:$0xff]  ;;  %v7555_v15 = vld [vmem:[%s8105_s28 + $0x230] sm:$0xff] }
  0x2d   : > { %4492 = vmatpush.bf16.msra.mxu0 %v7486_v26  ;;  %v7533_v9 = vld [vmem:[%s8105_s28 + $0x180] sm:$0xff]  ;;  %v7572_v13 = vld [vmem:[%s8105_s28 + $0x2b8] sm:$0xff]  ;;  %v7563_v16 = vld [vmem:[%s8105_s28 + $0x270] sm:$0xff] }
  0x2e   : > { %4505 = vmatpush.bf16.msra.mxu1 %v7494_v27  ;;  %v7541_v10 = vld [vmem:[%s8105_s28 + $0x1c0] sm:$0xff]  ;;  %v7580_v14 = vld [vmem:[%s8105_s28 + $0x2f8] sm:$0xff]  ;;  %v7571_v17 = vld [vmem:[%s8105_s28 + $0x2b0] sm:$0xff] }
  0x2f   : > { %4518 = vmatpush.bf16.msra.mxu2 %v7502_v28  ;;  %v7579_v18 = vld [vmem:[%s8105_s28 + $0x2f0] sm:$0xff]  ;;  %v7554_v19 = vld [vmem:[%s8105_s28 + $0x228] sm:$0xff]  ;;  %v7553_v23 = vld [vmem:[%s8105_s28 + $0x220] sm:$0xff] }
  0x30   : > { %4531 = vmatpush.bf16.msra.mxu3 %v7510_v29  ;;  %v7562_v20 = vld [vmem:[%s8105_s28 + $0x268] sm:$0xff]  ;;  %v7561_v24 = vld [vmem:[%s8105_s28 + $0x260] sm:$0xff]  ;;  %v7552_v27 = vld [vmem:[%s8105_s28 + $0x218] sm:$0xff] }
  0x31   : > { %4493 = vmatpush.bf16.msra.mxu0 %v7485_v30  ;;  %v7570_v21 = vld [vmem:[%s8105_s28 + $0x2a8] sm:$0xff]  ;;  %v7569_v25 = vld [vmem:[%s8105_s28 + $0x2a0] sm:$0xff]  ;;  %v7560_v28 = vld [vmem:[%s8105_s28 + $0x258] sm:$0xff] }
  0x32   : > { %4506 = vmatpush.bf16.msra.mxu1 %v7493_v31  ;;  %v7578_v22 = vld [vmem:[%s8105_s28 + $0x2e8] sm:$0xff]  ;;  %v7577_v26 = vld [vmem:[%s8105_s28 + $0x2e0] sm:$0xff]  ;;  %v7568_v29 = vld [vmem:[%s8105_s28 + $0x298] sm:$0xff] }
  0x33   : > { %4519 = vmatpush.bf16.msra.mxu2 %v7501_v32  ;;  %v7576_v30 = vld [vmem:[%s8105_s28 + $0x2d8] sm:$0xff]  ;;  %v7551_v31 = vld [vmem:[%s8105_s28 + $0x210] sm:$0xff] }
  0x34   : > { %4532 = vmatpush.bf16.msra.mxu3 %v7509_v33  ;;  %4494 = vmatmul.bf16.vlgmr.msra.gmra.mxu0 %v1272_v40  ;;  %v7559_v32 = vld [vmem:[%s8105_s28 + $0x250] sm:$0xff]  ;;  %v7557_v40 = vld [vmem:[%s8105_s28 + $0x240] sm:$0xff] }
  0x35   : > { %4538 = vmatpush.bf16.msrb.mxu0 %v7524_v34  ;;  %4507 = vmatmul.bf16.vlgmr.msra.gmra.mxu1 %v1273_v43  ;;  %v7567_v33 = vld [vmem:[%s8105_s28 + $0x290] sm:$0xff]  ;;  %v7588_v43 = vld [vmem:[%s8105_s28 + $0x338] sm:$0xff] }
  0x36   : > { %4551 = vmatpush.bf16.msrb.mxu1 %v7532_v35  ;;  %4520 = vmatmul.bf16.vlgmr.msra.gmra.mxu2 %v1274_v39  ;;  %v7575_v34 = vld [vmem:[%s8105_s28 + $0x2d0] sm:$0xff]  ;;  %v7550_v35 = vld [vmem:[%s8105_s28 + $0x208] sm:$0xff]  ;;  %v7549_v39 = vld [vmem:[%s8105_s28 + $0x200] sm:$0xff] }
  0x37   : > { %4564 = vmatpush.bf16.msrb.mxu2 %v7540_v36  ;;  %4533 = vmatmul.bf16.vlgmr.msra.gmra.mxu3 %v1275_v42  ;;  %v7558_v36 = vld [vmem:[%s8105_s28 + $0x248] sm:$0xff]  ;;  %v7573_v42 = vld [vmem:[%s8105_s28 + $0x2c0] sm:$0xff]  ;;  %v7603_v53 = vld [vmem:[%s8105_s28 + $0x3b0] sm:$0xff] }
  0x38   : > { %4577 = vmatpush.bf16.msrb.mxu3 %v7548_v37  ;;  %v7566_v37 = vld [vmem:[%s8105_s28 + $0x288] sm:$0xff] }
  0x39   : > { %4539 = vmatpush.bf16.msrb.mxu0 %v7523_v38  ;;  %v7574_v38 = vld [vmem:[%s8105_s28 + $0x2c8] sm:$0xff] }
  0x3a   : > { %4552 = vmatpush.bf16.msrb.mxu1 %v7531_v41  ;;  %v7565_v41 = vld [vmem:[%s8105_s28 + $0x280] sm:$0xff] }
  0x3b   : > { %4565 = vmatpush.bf16.msrb.mxu2 %v7539_v44  ;;  %v7596_v44 = vld [vmem:[%s8105_s28 + $0x378] sm:$0xff] }
  0x3c   : > { %4578 = vmatpush.bf16.msrb.mxu3 %v7547_v45  ;;  %v7604_v45 = vld [vmem:[%s8105_s28 + $0x3b8] sm:$0xff] }
  0x3d   : > { %4540 = vmatpush.bf16.msrb.mxu0 %v7522_v46  ;;  %v7612_v46 = vld [vmem:[%s8105_s28 + $0x3f8] sm:$0xff] }
  0x3e   : > { %4553 = vmatpush.bf16.msrb.mxu1 %v7530_v47  ;;  %v1282_v47 = vld [vmem:[#allocation1] sm:$0xff] }
  0x3f   : > { %4566 = vmatpush.bf16.msrb.mxu2 %v7538_v48  ;;  %v1284_v48 = vld [vmem:[#allocation1 + $0x12] sm:$0xff] }
  0x40   : > { %4579 = vmatpush.bf16.msrb.mxu3 %v7546_v49  ;;  %v1283_v49 = vld [vmem:[#allocation1 + $0x9] sm:$0xff] }
  0x41   : > { %4541 = vmatpush.bf16.msrb.mxu0 %v7521_v55  ;;  %v7586_v55 = vld [vmem:[%s8105_s28 + $0x328] sm:$0xff] }
  0x42   : > { %4554 = vmatpush.bf16.msrb.mxu1 %v7529_v56  ;;  %v7594_v56 = vld [vmem:[%s8105_s28 + $0x368] sm:$0xff] }
  0x43   : > { %4567 = vmatpush.bf16.msrb.mxu2 %v7537_v57  ;;  %v7602_v57 = vld [vmem:[%s8105_s28 + $0x3a8] sm:$0xff] }
  0x44   : > { %4580 = vmatpush.bf16.msrb.mxu3 %v7545_v58  ;;  %v7610_v58 = vld [vmem:[%s8105_s28 + $0x3e8] sm:$0xff] }
  0x45   : > { %4542 = vmatpush.bf16.msrb.mxu0 %v7520_v59  ;;  %v7585_v59 = vld [vmem:[%s8105_s28 + $0x320] sm:$0xff] }
  0x46   : > { %4555 = vmatpush.bf16.msrb.mxu1 %v7528_v60  ;;  %v7593_v60 = vld [vmem:[%s8105_s28 + $0x360] sm:$0xff] }
  0x47   : > { %4568 = vmatpush.bf16.msrb.mxu2 %v7536_v61  ;;  %v7601_v61 = vld [vmem:[%s8105_s28 + $0x3a0] sm:$0xff] }
  0x48   : > { %4581 = vmatpush.bf16.msrb.mxu3 %v7544_v62  ;;  %v7609_v62 = vld [vmem:[%s8105_s28 + $0x3e0] sm:$0xff] }
  0x49   : > { %4543 = vmatpush.bf16.msrb.mxu0 %v7519_v63  ;;  %v7584_v63 = vld [vmem:[%s8105_s28 + $0x318] sm:$0xff] }
  0x4a   : > { %4556 = vmatpush.bf16.msrb.mxu1 %v7527_v0  ;;  %v7592_v0 = vld [vmem:[%s8105_s28 + $0x358] sm:$0xff] }
  0x4b   : > { %4569 = vmatpush.bf16.msrb.mxu2 %v7535_v1  ;;  %v7600_v1 = vld [vmem:[%s8105_s28 + $0x398] sm:$0xff] }
  0x4c   : > { %4582 = vmatpush.bf16.msrb.mxu3 %v7543_v2  ;;  %v7608_v2 = vld [vmem:[%s8105_s28 + $0x3d8] sm:$0xff] }
  0x4d   : > { %4544 = vmatpush.bf16.msrb.mxu0 %v7518_v3  ;;  %v7583_v3 = vld [vmem:[%s8105_s28 + $0x310] sm:$0xff] }
  0x4e   : > { %4557 = vmatpush.bf16.msrb.mxu1 %v7526_v4  ;;  %v7591_v4 = vld [vmem:[%s8105_s28 + $0x350] sm:$0xff] }
  0x4f   : > { %4570 = vmatpush.bf16.msrb.mxu2 %v7534_v5  ;;  %v7599_v5 = vld [vmem:[%s8105_s28 + $0x390] sm:$0xff] }
  0x50   : > { %4583 = vmatpush.bf16.msrb.mxu3 %v7542_v6  ;;  %v7607_v6 = vld [vmem:[%s8105_s28 + $0x3d0] sm:$0xff] }
  0x51   : > { %4545 = vmatpush.bf16.msrb.mxu0 %v7517_v7  ;;  %v7582_v7 = vld [vmem:[%s8105_s28 + $0x308] sm:$0xff] }
  0x52   : > { %4558 = vmatpush.bf16.msrb.mxu1 %v7525_v8  ;;  %v7590_v8 = vld [vmem:[%s8105_s28 + $0x348] sm:$0xff] }
  0x53   : > { %4571 = vmatpush.bf16.msrb.mxu2 %v7533_v9  ;;  %v7598_v9 = vld [vmem:[%s8105_s28 + $0x388] sm:$0xff] }
  0x54   : > { %4584 = vmatpush.bf16.msrb.mxu3 %v7541_v10  ;;  %4546 = vmatmul.bf16.vlgmr.msrb.gmra.mxu0 %v1276_v51  ;;  %v7587_v51 = vld [vmem:[%s8105_s28 + $0x330] sm:$0xff]  ;;  %v7606_v10 = vld [vmem:[%s8105_s28 + $0x3c8] sm:$0xff] }
  0x55   : > { %4590 = vmatpush.bf16.msra.mxu0 %v7556_v11  ;;  %4559 = vmatmul.bf16.vlgmr.msrb.gmra.mxu1 %v1277_v54  ;;  %v7611_v54 = vld [vmem:[%s8105_s28 + $0x3f0] sm:$0xff]  ;;  %v1286_v11 = vld [vmem:[#allocation1 + $0x24] sm:$0xff] }
  0x56   : > { %4603 = vmatpush.bf16.msra.mxu1 %v7564_v12  ;;  %4572 = vmatmul.bf16.vlgmr.msrb.gmra.mxu2 %v1278_v50  ;;  %v1285_v50 = vld [vmem:[#allocation1 + $0x1b] sm:$0xff] }
  0x57   : > { %4616 = vmatpush.bf16.msra.mxu2 %v7572_v13  ;;  %4585 = vmatmul.bf16.vlgmr.msrb.gmra.mxu3 %v1279_v52  ;;  %v7595_v52 = vld [vmem:[%s8105_s28 + $0x370] sm:$0xff] }
  0x58   : > { %4629 = vmatpush.bf16.msra.mxu3 %v7580_v14  ;;  %v1288_v12 = vld [vmem:[#allocation1 + $0x36] sm:$0xff]  ;;  %v1287_v13 = vld [vmem:[#allocation1 + $0x2d] sm:$0xff]  ;;  %v1289_v14 = vld [vmem:[#allocation1 + $0x3f] sm:$0xff] }
  0x59   : > { %4591 = vmatpush.bf16.msra.mxu0 %v7555_v15  ;;  %v240_v15 = vld [vmem:[%s8100_s24 + $0x10] sm:$0xff] }
  0x5a   : > { %4604 = vmatpush.bf16.msra.mxu1 %v7563_v16  ;;  %1291 = vst [vmem:[#allocation1] ss:$9 sm:$0xff] %v240_v15  ;;  %v7581_v16 = vld [vmem:[%s8105_s28 + $0x300] sm:$0xff] }
  0x5b   : > { %4617 = vmatpush.bf16.msra.mxu2 %v7571_v17  ;;  %v7589_v17 = vld [vmem:[%s8105_s28 + $0x340] sm:$0xff] }
  0x5c   : > { %4630 = vmatpush.bf16.msra.mxu3 %v7579_v18  ;;  %v7597_v18 = vld [vmem:[%s8105_s28 + $0x380] sm:$0xff] }
  0x5d   : > { %4592 = vmatpush.bf16.msra.mxu0 %v7554_v19  ;;  %v7605_v19 = vld [vmem:[%s8105_s28 + $0x3c0] sm:$0xff] }
  0x5e   : > { %4605 = vmatpush.bf16.msra.mxu1 %v7562_v20  ;;  %v7620_v20 = vld [vmem:[%s8105_s28 + $0x438] sm:$0xff] }
  0x5f   : > { %4618 = vmatpush.bf16.msra.mxu2 %v7570_v21  ;;  %v7628_v21 = vld [vmem:[%s8105_s28 + $0x478] sm:$0xff] }
  0x60   : > { %4631 = vmatpush.bf16.msra.mxu3 %v7578_v22  ;;  %v7636_v22 = vld [vmem:[%s8105_s28 + $0x4b8] sm:$0xff] }
  0x61   : > { %4593 = vmatpush.bf16.msra.mxu0 %v7553_v23  ;;  %v7644_v23 = vld [vmem:[%s8105_s28 + $0x4f8] sm:$0xff] }
  0x62   : > { %4606 = vmatpush.bf16.msra.mxu1 %v7561_v24  ;;  %v7619_v24 = vld [vmem:[%s8105_s28 + $0x430] sm:$0xff] }
  0x63   : > { %4619 = vmatpush.bf16.msra.mxu2 %v7569_v25  ;;  %v7627_v25 = vld [vmem:[%s8105_s28 + $0x470] sm:$0xff] }
  0x64   : > { %4632 = vmatpush.bf16.msra.mxu3 %v7577_v26  ;;  %v7635_v26 = vld [vmem:[%s8105_s28 + $0x4b0] sm:$0xff] }
  0x65   : > { %4594 = vmatpush.bf16.msra.mxu0 %v7552_v27  ;;  %v7643_v27 = vld [vmem:[%s8105_s28 + $0x4f0] sm:$0xff] }
  0x66   : > { %4607 = vmatpush.bf16.msra.mxu1 %v7560_v28  ;;  %v7618_v28 = vld [vmem:[%s8105_s28 + $0x428] sm:$0xff] }
  0x67   : > { %4620 = vmatpush.bf16.msra.mxu2 %v7568_v29  ;;  %v7626_v29 = vld [vmem:[%s8105_s28 + $0x468] sm:$0xff] }
  0x68   : > { %4633 = vmatpush.bf16.msra.mxu3 %v7576_v30  ;;  %v7634_v30 = vld [vmem:[%s8105_s28 + $0x4a8] sm:$0xff] }
  0x69   : > { %4595 = vmatpush.bf16.msra.mxu0 %v7551_v31  ;;  %v7642_v31 = vld [vmem:[%s8105_s28 + $0x4e8] sm:$0xff] }
  0x6a   : > { %4608 = vmatpush.bf16.msra.mxu1 %v7559_v32  ;;  %v7617_v32 = vld [vmem:[%s8105_s28 + $0x420] sm:$0xff] }
  0x6b   : > { %4621 = vmatpush.bf16.msra.mxu2 %v7567_v33  ;;  %v7625_v33 = vld [vmem:[%s8105_s28 + $0x460] sm:$0xff] }
  0x6c   : > { %4634 = vmatpush.bf16.msra.mxu3 %v7575_v34  ;;  %v7633_v34 = vld [vmem:[%s8105_s28 + $0x4a0] sm:$0xff] }
  0x6d   : > { %4596 = vmatpush.bf16.msra.mxu0 %v7550_v35  ;;  %v7641_v35 = vld [vmem:[%s8105_s28 + $0x4e0] sm:$0xff] }
  0x6e   : > { %4609 = vmatpush.bf16.msra.mxu1 %v7558_v36  ;;  %v7616_v36 = vld [vmem:[%s8105_s28 + $0x418] sm:$0xff] }
  0x6f   : > { %4622 = vmatpush.bf16.msra.mxu2 %v7566_v37  ;;  %v7624_v37 = vld [vmem:[%s8105_s28 + $0x458] sm:$0xff] }
  0x70   : > { %4635 = vmatpush.bf16.msra.mxu3 %v7574_v38  ;;  %v7632_v38 = vld [vmem:[%s8105_s28 + $0x498] sm:$0xff] }
  0x71   : > { %4597 = vmatpush.bf16.msra.mxu0 %v7549_v39  ;;  %v7640_v39 = vld [vmem:[%s8105_s28 + $0x4d8] sm:$0xff] }
  0x72   : > { %4610 = vmatpush.bf16.msra.mxu1 %v7557_v40  ;;  %v7615_v40 = vld [vmem:[%s8105_s28 + $0x410] sm:$0xff] }
  0x73   : > { %4623 = vmatpush.bf16.msra.mxu2 %v7565_v41  ;;  %v7623_v41 = vld [vmem:[%s8105_s28 + $0x450] sm:$0xff] }
  0x74   : > { %4636 = vmatpush.bf16.msra.mxu3 %v7573_v42  ;;  %4598 = vmatmul.bf16.vlgmr.msra.gmra.mxu0 %v1282_v47  ;;  %v7631_v42 = vld [vmem:[%s8105_s28 + $0x490] sm:$0xff]  ;;  %v7638_v47 = vld [vmem:[%s8105_s28 + $0x4c8] sm:$0xff] }
  0x75   : > { %4642 = vmatpush.bf16.msrb.mxu0 %v7588_v43  ;;  %4611 = vmatmul.bf16.vlgmr.msra.gmra.mxu1 %v1283_v49  ;;  %v7639_v43 = vld [vmem:[%s8105_s28 + $0x4d0] sm:$0xff]  ;;  %v7621_v49 = vld [vmem:[%s8105_s28 + $0x440] sm:$0xff] }
  0x76   : > { %4655 = vmatpush.bf16.msrb.mxu1 %v7596_v44  ;;  %4624 = vmatmul.bf16.vlgmr.msra.gmra.mxu2 %v1284_v48  ;;  %v7614_v44 = vld [vmem:[%s8105_s28 + $0x408] sm:$0xff]  ;;  %v7613_v48 = vld [vmem:[%s8105_s28 + $0x400] sm:$0xff] }
  0x77   : > { %4668 = vmatpush.bf16.msrb.mxu2 %v7604_v45  ;;  %4637 = vmatmul.bf16.vlgmr.msra.gmra.mxu3 %v1285_v50  ;;  %v7622_v45 = vld [vmem:[%s8105_s28 + $0x448] sm:$0xff]  ;;  %v7629_v50 = vld [vmem:[%s8105_s28 + $0x480] sm:$0xff] }
  0x78   : > { %4681 = vmatpush.bf16.msrb.mxu3 %v7612_v46  ;;  %v7630_v46 = vld [vmem:[%s8105_s28 + $0x488] sm:$0xff] }
  0x79   : > { %4643 = vmatpush.bf16.msrb.mxu0 %v7587_v51  ;;  %v7637_v51 = vld [vmem:[%s8105_s28 + $0x4c0] sm:$0xff] }
  0x7a   : > { %4656 = vmatpush.bf16.msrb.mxu1 %v7595_v52  ;;  %v7652_v52 = vld [vmem:[%s8105_s28 + $0x538] sm:$0xff] }
  0x7b   : > { %4669 = vmatpush.bf16.msrb.mxu2 %v7603_v53  ;;  %v7660_v53 = vld [vmem:[%s8105_s28 + $0x578] sm:$0xff] }
  0x7c   : > { %4682 = vmatpush.bf16.msrb.mxu3 %v7611_v54  ;;  %v7668_v54 = vld [vmem:[%s8105_s28 + $0x5b8] sm:$0xff] }
  0x7d   : > { %4644 = vmatpush.bf16.msrb.mxu0 %v7586_v55  ;;  %v7676_v55 = vld [vmem:[%s8105_s28 + $0x5f8] sm:$0xff] }
  0x7e   : > { %4657 = vmatpush.bf16.msrb.mxu1 %v7594_v56  ;;  %v1292_v56 = vld [vmem:[#allocation1] sm:$0xff] }
  0x7f   : > { %4670 = vmatpush.bf16.msrb.mxu2 %v7602_v57  ;;  %v1294_v57 = vld [vmem:[#allocation1 + $0x12] sm:$0xff] }
  0x80   : > { %4683 = vmatpush.bf16.msrb.mxu3 %v7610_v58  ;;  %v1293_v58 = vld [vmem:[#allocation1 + $0x9] sm:$0xff] }
  0x81   : > { %4645 = vmatpush.bf16.msrb.mxu0 %v7585_v59  ;;  %v1295_v59 = vld [vmem:[#allocation1 + $0x1b] sm:$0xff] }
  0x82   : > { %4658 = vmatpush.bf16.msrb.mxu1 %v7593_v60  ;;  %v7651_v60 = vld [vmem:[%s8105_s28 + $0x530] sm:$0xff] }
  0x83   : > { %4671 = vmatpush.bf16.msrb.mxu2 %v7601_v61  ;;  %v7659_v61 = vld [vmem:[%s8105_s28 + $0x570] sm:$0xff] }
  0x84   : > { %4684 = vmatpush.bf16.msrb.mxu3 %v7609_v62  ;;  %v7667_v62 = vld [vmem:[%s8105_s28 + $0x5b0] sm:$0xff] }
  0x85   : > { %4646 = vmatpush.bf16.msrb.mxu0 %v7584_v63  ;;  %v7675_v63 = vld [vmem:[%s8105_s28 + $0x5f0] sm:$0xff] }
  0x86   : > { %4659 = vmatpush.bf16.msrb.mxu1 %v7592_v0  ;;  %v7650_v0 = vld [vmem:[%s8105_s28 + $0x528] sm:$0xff] }
  0x87   : > { %4672 = vmatpush.bf16.msrb.mxu2 %v7600_v1  ;;  %v7658_v1 = vld [vmem:[%s8105_s28 + $0x568] sm:$0xff] }
  0x88   : > { %4685 = vmatpush.bf16.msrb.mxu3 %v7608_v2  ;;  %v7666_v2 = vld [vmem:[%s8105_s28 + $0x5a8] sm:$0xff] }
  0x89   : > { %4647 = vmatpush.bf16.msrb.mxu0 %v7583_v3  ;;  %v7674_v3 = vld [vmem:[%s8105_s28 + $0x5e8] sm:$0xff] }
  0x8a   : > { %4660 = vmatpush.bf16.msrb.mxu1 %v7591_v4 }
  0x8b   : > { %4673 = vmatpush.bf16.msrb.mxu2 %v7599_v5  ;;  %v7649_v5 = vld [vmem:[%s8105_s28 + $0x520] sm:$0xff] }
  0x8c   : > { %4686 = vmatpush.bf16.msrb.mxu3 %v7607_v6  ;;  %v7657_v6 = vld [vmem:[%s8105_s28 + $0x560] sm:$0xff] }
  0x8d   : > { %4648 = vmatpush.bf16.msrb.mxu0 %v7582_v7 }
  0x8e   : > { %4661 = vmatpush.bf16.msrb.mxu1 %v7590_v8  ;;  %v7665_v8 = vld [vmem:[%s8105_s28 + $0x5a0] sm:$0xff] }
  0x8f   : > { %4674 = vmatpush.bf16.msrb.mxu2 %v7598_v9  ;;  %v7673_v9 = vld [vmem:[%s8105_s28 + $0x5e0] sm:$0xff] }
  0x90   : > { %4687 = vmatpush.bf16.msrb.mxu3 %v7606_v10 }
  0x91   : > { %4649 = vmatpush.bf16.msrb.mxu0 %v7581_v16 }
  0x92   : > { %4662 = vmatpush.bf16.msrb.mxu1 %v7589_v17 }
  0x93   : > { %4675 = vmatpush.bf16.msrb.mxu2 %v7597_v18 }
  0x94   : > { %4688 = vmatpush.bf16.msrb.mxu3 %v7605_v19  ;;  %4650 = vmatmul.bf16.vlgmr.msrb.gmra.mxu0 %v1286_v11  ;;  %v7648_v11 = vld [vmem:[%s8105_s28 + $0x518] sm:$0xff]  ;;  %v7647_v19 = vld [vmem:[%s8105_s28 + $0x510] sm:$0xff] }
  0x95   : > { %4694 = vmatpush.bf16.msra.mxu0 %v7620_v20  ;;  %4663 = vmatmul.bf16.vlgmr.msrb.gmra.mxu1 %v1287_v13  ;;  %v7664_v13 = vld [vmem:[%s8105_s28 + $0x598] sm:$0xff]  ;;  %v7655_v20 = vld [vmem:[%s8105_s28 + $0x550] sm:$0xff] }
  0x96   : > { %4707 = vmatpush.bf16.msra.mxu1 %v7628_v21  ;;  %4676 = vmatmul.bf16.vlgmr.msrb.gmra.mxu2 %v1288_v12  ;;  %v7656_v12 = vld [vmem:[%s8105_s28 + $0x558] sm:$0xff] }
  0x97   : > { %4720 = vmatpush.bf16.msra.mxu2 %v7636_v22  ;;  %4689 = vmatmul.bf16.vlgmr.msrb.gmra.mxu3 %v1289_v14  ;;  %v7672_v14 = vld [vmem:[%s8105_s28 + $0x5d8] sm:$0xff] }
  0x98   : > { %4733 = vmatpush.bf16.msra.mxu3 %v7644_v23  ;;  %v7663_v23 = vld [vmem:[%s8105_s28 + $0x590] sm:$0xff] }
  0x99   : > { %4695 = vmatpush.bf16.msra.mxu0 %v7619_v24  ;;  %v7671_v24 = vld [vmem:[%s8105_s28 + $0x5d0] sm:$0xff] }
  0x9a   : > { %4708 = vmatpush.bf16.msra.mxu1 %v7627_v25  ;;  %v7646_v25 = vld [vmem:[%s8105_s28 + $0x508] sm:$0xff] }
  0x9b   : > { %4721 = vmatpush.bf16.msra.mxu2 %v7635_v26  ;;  %v7654_v26 = vld [vmem:[%s8105_s28 + $0x548] sm:$0xff] }
  0x9c   : > { %4734 = vmatpush.bf16.msra.mxu3 %v7643_v27  ;;  %v7662_v27 = vld [vmem:[%s8105_s28 + $0x588] sm:$0xff] }
  0x9d   : > { %4696 = vmatpush.bf16.msra.mxu0 %v7618_v28  ;;  %v7670_v28 = vld [vmem:[%s8105_s28 + $0x5c8] sm:$0xff] }
  0x9e   : > { %4709 = vmatpush.bf16.msra.mxu1 %v7626_v29  ;;  %v1296_v29 = vld [vmem:[#allocation1 + $0x24] sm:$0xff] }
  0x9f   : > { %4722 = vmatpush.bf16.msra.mxu2 %v7634_v30  ;;  %v1298_v30 = vld [vmem:[#allocation1 + $0x36] sm:$0xff] }
  0xa0   : > { %4735 = vmatpush.bf16.msra.mxu3 %v7642_v31 }
  0xa1   : > { %4697 = vmatpush.bf16.msra.mxu0 %v7617_v32  ;;  %v1297_v32 = vld [vmem:[#allocation1 + $0x2d] sm:$0xff] }
  0xa2   : > { %4710 = vmatpush.bf16.msra.mxu1 %v7625_v33  ;;  %v1299_v33 = vld [vmem:[#allocation1 + $0x3f] sm:$0xff] }
  0xa3   : > { %4723 = vmatpush.bf16.msra.mxu2 %v7633_v34 }
  0xa4   : > { %4736 = vmatpush.bf16.msra.mxu3 %v7641_v35  ;;  %v241_v35 = vld [vmem:[%s8100_s24 + $0x18] sm:$0xff] }
  0xa5   : > { %4698 = vmatpush.bf16.msra.mxu0 %v7616_v36  ;;  %1301 = vst [vmem:[#allocation1] ss:$9 sm:$0xff] %v241_v35  ;;  %v7645_v36 = vld [vmem:[%s8105_s28 + $0x500] sm:$0xff]  ;;  %v7738_v35 = vld [vmem:[%s8105_s28 + $0x7e8] sm:$0xff] }
  0xa6   : > { %4711 = vmatpush.bf16.msra.mxu1 %v7624_v37  ;;  %v7653_v37 = vld [vmem:[%s8105_s28 + $0x540] sm:$0xff] }
  0xa7   : > { %4724 = vmatpush.bf16.msra.mxu2 %v7632_v38  ;;  %v7661_v38 = vld [vmem:[%s8105_s28 + $0x580] sm:$0xff] }
  0xa8   : > { %4737 = vmatpush.bf16.msra.mxu3 %v7640_v39  ;;  %v7669_v39 = vld [vmem:[%s8105_s28 + $0x5c0] sm:$0xff] }
  0xa9   : > { %4699 = vmatpush.bf16.msra.mxu0 %v7615_v40  ;;  %v7684_v40 = vld [vmem:[%s8105_s28 + $0x638] sm:$0xff] }
  0xaa   : > { %4712 = vmatpush.bf16.msra.mxu1 %v7623_v41  ;;  %v7692_v41 = vld [vmem:[%s8105_s28 + $0x678] sm:$0xff] }
  0xab   : > { %4725 = vmatpush.bf16.msra.mxu2 %v7631_v42  ;;  %v7700_v42 = vld [vmem:[%s8105_s28 + $0x6b8] sm:$0xff] }
  0xac   : > { %4738 = vmatpush.bf16.msra.mxu3 %v7639_v43  ;;  %v7708_v43 = vld [vmem:[%s8105_s28 + $0x6f8] sm:$0xff] }
  0xad   : > { %4700 = vmatpush.bf16.msra.mxu0 %v7614_v44  ;;  %v7683_v44 = vld [vmem:[%s8105_s28 + $0x630] sm:$0xff] }
  0xae   : > { %4713 = vmatpush.bf16.msra.mxu1 %v7622_v45  ;;  %v7691_v45 = vld [vmem:[%s8105_s28 + $0x670] sm:$0xff] }
  0xaf   : > { %4726 = vmatpush.bf16.msra.mxu2 %v7630_v46  ;;  %v7699_v46 = vld [vmem:[%s8105_s28 + $0x6b0] sm:$0xff] }
  0xb0   : > { %4739 = vmatpush.bf16.msra.mxu3 %v7638_v47  ;;  %v7707_v47 = vld [vmem:[%s8105_s28 + $0x6f0] sm:$0xff] }
  0xb1   : > { %4701 = vmatpush.bf16.msra.mxu0 %v7613_v48  ;;  %v4495_v4 = vpop.f32.mrf.mxu0  ;;  %v7682_v48 = vld [vmem:[%s8105_s28 + $0x628] sm:$0xff] }
  0xb2   : > { %4714 = vmatpush.bf16.msra.mxu1 %v7621_v49  ;;  %v4508_v7 = vpop.f32.mrf.mxu1  ;;  %v7690_v49 = vld [vmem:[%s8105_s28 + $0x668] sm:$0xff] }
  0xb3   : > { %4727 = vmatpush.bf16.msra.mxu2 %v7629_v50  ;;  %v4509_v10 = vadd.f32 %v4508_v7, %v4495_v4  ;;  %v7698_v50 = vld [vmem:[%s8105_s28 + $0x6a8] sm:$0xff]  ;;  %v7679_v4 = vld [vmem:[%s8105_s28 + $0x610] sm:$0xff] }
  0xb4   : > { %4740 = vmatpush.bf16.msra.mxu3 %v7637_v51  ;;  %4702 = vmatmul.bf16.vlgmr.msra.gmra.mxu0 %v1292_v56  ;;  %v7706_v51 = vld [vmem:[%s8105_s28 + $0x6e8] sm:$0xff] }
  0xb5   : > { %4746 = vmatpush.bf16.msrb.mxu0 %v7652_v52  ;;  %4715 = vmatmul.bf16.vlgmr.msra.gmra.mxu1 %v1293_v58  ;;  %v7705_v58 = vld [vmem:[%s8105_s28 + $0x6e0] sm:$0xff] }
  0xb6   : > { %4759 = vmatpush.bf16.msrb.mxu1 %v7660_v53  ;;  %4728 = vmatmul.bf16.vlgmr.msra.gmra.mxu2 %v1294_v57  ;;  %v7681_v53 = vld [vmem:[%s8105_s28 + $0x620] sm:$0xff] }
  0xb7   : > { %4772 = vmatpush.bf16.msrb.mxu2 %v7668_v54  ;;  %4741 = vmatmul.bf16.vlgmr.msra.gmra.mxu3 %v1295_v59  ;;  %v7689_v54 = vld [vmem:[%s8105_s28 + $0x660] sm:$0xff] }
  0xb8   : > { %4785 = vmatpush.bf16.msrb.mxu3 %v7676_v55  ;;  %v7697_v57 = vld [vmem:[%s8105_s28 + $0x6a0] sm:$0xff] }
  0xb9   : > { %4747 = vmatpush.bf16.msrb.mxu0 %v7651_v60  ;;  %v4521_v15 = vpop.f32.mrf.mxu2  ;;  %v4497_v18 = vpop.f32.mrf.mxu0  ;;  %v7680_v60 = vld [vmem:[%s8105_s28 + $0x618] sm:$0xff] }
  0xba   : > { %4760 = vmatpush.bf16.msrb.mxu1 %v7659_v61  ;;  %v4522_v16 = vadd.f32 %v4521_v15, %v4509_v10  ;;  %v4534_v17 = vpop.f32.mrf.mxu3  ;;  %v4510_v22 = vpop.f32.mrf.mxu1  ;;  %v7688_v61 = vld [vmem:[%s8105_s28 + $0x658] sm:$0xff]  ;;  %v7678_v10 = vld [vmem:[%s8105_s28 + $0x608] sm:$0xff]  ;;  %v7693_v18 = vld [vmem:[%s8105_s28 + $0x680] sm:$0xff] }
  0xbb   : > { %4773 = vmatpush.bf16.msrb.mxu2 %v7667_v62  ;;  %v7696_v62 = vld [vmem:[%s8105_s28 + $0x698] sm:$0xff] }
  0xbc   : > { %4786 = vmatpush.bf16.msrb.mxu3 %v7675_v63  ;;  %v8293_v21 = vadd.f32 %v4534_v17, %v4522_v16  ;;  %v7704_v63 = vld [vmem:[%s8105_s28 + $0x6d8] sm:$0xff]  ;;  %v7677_v16 = vld [vmem:[%s8105_s28 + $0x600] sm:$0xff] }
  0xbd   : > { %4748 = vmatpush.bf16.msrb.mxu0 %v7650_v0  ;;  %v7685_v17 = vld [vmem:[%s8105_s28 + $0x640] sm:$0xff]  ;;  %v7732_v22 = vld [vmem:[%s8105_s28 + $0x7b8] sm:$0xff] }
  0xbe   : > { %4761 = vmatpush.bf16.msrb.mxu1 %v7658_v1 }
  0xbf   : > { %4774 = vmatpush.bf16.msrb.mxu2 %v7666_v2 }
  0xc0   : > { %4787 = vmatpush.bf16.msrb.mxu3 %v7674_v3 }
  0xc1   : > { %4749 = vmatpush.bf16.msrb.mxu0 %v7649_v5  ;;  %v4523_v31 = vpop.f32.mrf.mxu2  ;;  %v7687_v5 = vld [vmem:[%s8105_s28 + $0x650] sm:$0xff] }
  0xc2   : > { %4762 = vmatpush.bf16.msrb.mxu1 %v7657_v6  ;;  %v4536_v34 = vpop.f32.mrf.mxu3  ;;  %v7739_v31 = vld [vmem:[%s8105_s28 + $0x7f0] sm:$0xff] }
  0xc3   : > { %4775 = vmatpush.bf16.msrb.mxu2 %v7665_v8  ;;  %v7695_v8 = vld [vmem:[%s8105_s28 + $0x690] sm:$0xff]  ;;  %v7730_v34 = vld [vmem:[%s8105_s28 + $0x7a8] sm:$0xff] }
  0xc4   : > { %4788 = vmatpush.bf16.msrb.mxu3 %v7673_v9  ;;  %v7703_v9 = vld [vmem:[%s8105_s28 + $0x6d0] sm:$0xff] }
  0xc5   : > { %4750 = vmatpush.bf16.msrb.mxu0 %v7648_v11  ;;  %v7686_v11 = vld [vmem:[%s8105_s28 + $0x648] sm:$0xff] }
  0xc6   : > { %4763 = vmatpush.bf16.msrb.mxu1 %v7656_v12  ;;  %v7694_v12 = vld [vmem:[%s8105_s28 + $0x688] sm:$0xff] }
  0xc7   : > { %4776 = vmatpush.bf16.msrb.mxu2 %v7664_v13  ;;  %v7702_v13 = vld [vmem:[%s8105_s28 + $0x6c8] sm:$0xff] }
  0xc8   : > { %4789 = vmatpush.bf16.msrb.mxu3 %v7672_v14 }
  0xc9   : > { %4751 = vmatpush.bf16.msrb.mxu0 %v7647_v19  ;;  %v7701_v19 = vld [vmem:[%s8105_s28 + $0x6c0] sm:$0xff] }
  0xca   : > { %4764 = vmatpush.bf16.msrb.mxu1 %v7655_v20  ;;  %v7716_v20 = vld [vmem:[%s8105_s28 + $0x738] sm:$0xff] }
  0xcb   : > { %4777 = vmatpush.bf16.msrb.mxu2 %v7663_v23  ;;  %v7740_v23 = vld [vmem:[%s8105_s28 + $0x7f8] sm:$0xff] }
  0xcc   : > { %4790 = vmatpush.bf16.msrb.mxu3 %v7671_v24  ;;  %v1302_v24 = vld [vmem:[#allocation1] sm:$0xff] }
  0xcd   : > { %4752 = vmatpush.bf16.msrb.mxu0 %v7646_v25  ;;  %v1304_v25 = vld [vmem:[#allocation1 + $0x12] sm:$0xff] }
  0xce   : > { %4765 = vmatpush.bf16.msrb.mxu1 %v7654_v26  ;;  %v1303_v26 = vld [vmem:[#allocation1 + $0x9] sm:$0xff] }
  0xcf   : > { %4778 = vmatpush.bf16.msrb.mxu2 %v7662_v27  ;;  %v1305_v27 = vld [vmem:[#allocation1 + $0x1b] sm:$0xff] }
  0xd0   : > { %4791 = vmatpush.bf16.msrb.mxu3 %v7670_v28  ;;  %v7715_v28 = vld [vmem:[%s8105_s28 + $0x730] sm:$0xff] }
  0xd1   : > { %4753 = vmatpush.bf16.msrb.mxu0 %v7645_v36  ;;  %v4547_v52 = vpop.f32.mrf.mxu0 }
  0xd2   : > { %4766 = vmatpush.bf16.msrb.mxu1 %v7653_v37  ;;  %v4548_v55 = vadd.f32 %v4547_v52, %v8293_v21  ;;  %v4560_v56 = vpop.f32.mrf.mxu1  ;;  %v7724_v21 = vld [vmem:[%s8105_s28 + $0x778] sm:$0xff] }
  0xd3   : > { %4779 = vmatpush.bf16.msrb.mxu2 %v7661_v38  ;;  %v7713_v38 = vld [vmem:[%s8105_s28 + $0x720] sm:$0xff] }
  0xd4   : > { %4792 = vmatpush.bf16.msrb.mxu3 %v7669_v39  ;;  %4754 = vmatmul.bf16.vlgmr.msrb.gmra.mxu0 %v1296_v29  ;;  %v4561_v59 = vadd.f32 %v4560_v56, %v4548_v55  ;;  %v7723_v29 = vld [vmem:[%s8105_s28 + $0x770] sm:$0xff]  ;;  %v7721_v39 = vld [vmem:[%s8105_s28 + $0x760] sm:$0xff] }
  0xd5   : > { %4798 = vmatpush.bf16.msra.mxu0 %v7684_v40  ;;  %4767 = vmatmul.bf16.vlgmr.msrb.gmra.mxu1 %v1297_v32  ;;  %v7714_v32 = vld [vmem:[%s8105_s28 + $0x728] sm:$0xff]  ;;  %v7727_v56 = vld [vmem:[%s8105_s28 + $0x790] sm:$0xff] }
  0xd6   : > { %4811 = vmatpush.bf16.msra.mxu1 %v7692_v41  ;;  %4780 = vmatmul.bf16.vlgmr.msrb.gmra.mxu2 %v1298_v30  ;;  %v7731_v30 = vld [vmem:[%s8105_s28 + $0x7b0] sm:$0xff]  ;;  %v7729_v41 = vld [vmem:[%s8105_s28 + $0x7a0] sm:$0xff] }
  0xd7   : > { %4824 = vmatpush.bf16.msra.mxu2 %v7700_v42  ;;  %4793 = vmatmul.bf16.vlgmr.msrb.gmra.mxu3 %v1299_v33  ;;  %v7722_v33 = vld [vmem:[%s8105_s28 + $0x768] sm:$0xff]  ;;  %v7737_v42 = vld [vmem:[%s8105_s28 + $0x7e0] sm:$0xff] }
  0xd8   : > { %4837 = vmatpush.bf16.msra.mxu3 %v7708_v43 }
  0xd9   : > { %4799 = vmatpush.bf16.msra.mxu0 %v7683_v44  ;;  %v4573_v0 = vpop.f32.mrf.mxu2  ;;  %v4549_v3 = vpop.f32.mrf.mxu0  ;;  %v7712_v44 = vld [vmem:[%s8105_s28 + $0x718] sm:$0xff] }
  0xda   : > { %4812 = vmatpush.bf16.msra.mxu1 %v7691_v45  ;;  %v4574_v1 = vadd.f32 %v4573_v0, %v4561_v59  ;;  %v4586_v2 = vpop.f32.mrf.mxu3  ;;  %v4562_v7 = vpop.f32.mrf.mxu1  ;;  %v7720_v45 = vld [vmem:[%s8105_s28 + $0x758] sm:$0xff]  ;;  %v7718_v59 = vld [vmem:[%s8105_s28 + $0x748] sm:$0xff] }
  0xdb   : > { %4825 = vmatpush.bf16.msra.mxu2 %v7699_v46  ;;  %v7728_v46 = vld [vmem:[%s8105_s28 + $0x798] sm:$0xff]  ;;  %v7725_v7 = vld [vmem:[%s8105_s28 + $0x780] sm:$0xff] }
  0xdc   : > { %4838 = vmatpush.bf16.msra.mxu3 %v7707_v47  ;;  %v4587_v6 = vadd.f32 %v4586_v2, %v4574_v1  ;;  %v7736_v47 = vld [vmem:[%s8105_s28 + $0x7d8] sm:$0xff]  ;;  %v1307_v1 = vld [vmem:[#allocation1 + $0x2d] sm:$0xff] }
  0xdd   : > { %4800 = vmatpush.bf16.msra.mxu0 %v7682_v48  ;;  %v1309_v2 = vld [vmem:[#allocation1 + $0x3f] sm:$0xff] }
  0xde   : > { %4813 = vmatpush.bf16.msra.mxu1 %v7690_v49 }
  0xdf   : > { %4826 = vmatpush.bf16.msra.mxu2 %v7698_v50 }
  0xe0   : > { %4839 = vmatpush.bf16.msra.mxu3 %v7706_v51 }
  0xe1   : > { %4801 = vmatpush.bf16.msra.mxu0 %v7681_v53  ;;  %v4575_v14 = vpop.f32.mrf.mxu2  ;;  %v7711_v53 = vld [vmem:[%s8105_s28 + $0x710] sm:$0xff] }
  0xe2   : > { %4814 = vmatpush.bf16.msra.mxu1 %v7689_v54  ;;  %v4588_v15 = vpop.f32.mrf.mxu3  ;;  %v7719_v54 = vld [vmem:[%s8105_s28 + $0x750] sm:$0xff] }
  0xe3   : > { %4827 = vmatpush.bf16.msra.mxu2 %v7697_v57  ;;  %v7735_v57 = vld [vmem:[%s8105_s28 + $0x7d0] sm:$0xff] }
  0xe4   : > { %4840 = vmatpush.bf16.msra.mxu3 %v7705_v58  ;;  %v7710_v58 = vld [vmem:[%s8105_s28 + $0x708] sm:$0xff]  ;;  %v7755_v14 = vld [vmem:[%s8105_s28 + $0x870] sm:$0xff] }
  0xe5   : > { %4802 = vmatpush.bf16.msra.mxu0 %v7680_v60  ;;  %v7726_v60 = vld [vmem:[%s8105_s28 + $0x788] sm:$0xff]  ;;  %v7763_v15 = vld [vmem:[%s8105_s28 + $0x8b0] sm:$0xff] }
  0xe6   : > { %4815 = vmatpush.bf16.msra.mxu1 %v7688_v61  ;;  %v7734_v61 = vld [vmem:[%s8105_s28 + $0x7c8] sm:$0xff] }
  0xe7   : > { %4828 = vmatpush.bf16.msra.mxu2 %v7696_v62  ;;  %v1306_v62 = vld [vmem:[#allocation1 + $0x24] sm:$0xff] }
  0xe8   : > { %4841 = vmatpush.bf16.msra.mxu3 %v7704_v63  ;;  %v1308_v63 = vld [vmem:[#allocation1 + $0x36] sm:$0xff] }
  0xe9   : > { %4803 = vmatpush.bf16.msra.mxu0 %v7679_v4  ;;  %v242_v4 = vld [vmem:[%s8100_s24 + $0x20] sm:$0xff] }
  0xea   : > { %4816 = vmatpush.bf16.msra.mxu1 %v7687_v5  ;;  %1311 = vst [vmem:[#allocation1] ss:$9 sm:$0xff] %v242_v4  ;;  %v7709_v5 = vld [vmem:[%s8105_s28 + $0x700] sm:$0xff]  ;;  %v7802_v4 = vld [vmem:[%s8105_s28 + $0x9e8] sm:$0xff] }
  0xeb   : > { %4829 = vmatpush.bf16.msra.mxu2 %v7695_v8  ;;  %v7733_v8 = vld [vmem:[%s8105_s28 + $0x7c0] sm:$0xff] }
  0xec   : > { %4842 = vmatpush.bf16.msra.mxu3 %v7703_v9  ;;  %v7748_v9 = vld [vmem:[%s8105_s28 + $0x838] sm:$0xff] }
  0xed   : > { %4804 = vmatpush.bf16.msra.mxu0 %v7678_v10  ;;  %v7756_v10 = vld [vmem:[%s8105_s28 + $0x878] sm:$0xff] }
  0xee   : > { %4817 = vmatpush.bf16.msra.mxu1 %v7686_v11  ;;  %v7764_v11 = vld [vmem:[%s8105_s28 + $0x8b8] sm:$0xff] }
  0xef   : > { %4830 = vmatpush.bf16.msra.mxu2 %v7694_v12  ;;  %v7772_v12 = vld [vmem:[%s8105_s28 + $0x8f8] sm:$0xff] }
  0xf0   : > { %4843 = vmatpush.bf16.msra.mxu3 %v7702_v13  ;;  %v7747_v13 = vld [vmem:[%s8105_s28 + $0x830] sm:$0xff] }
  0xf1   : > { %4805 = vmatpush.bf16.msra.mxu0 %v7677_v16  ;;  %v4599_v36 = vpop.f32.mrf.mxu0  ;;  %v7771_v16 = vld [vmem:[%s8105_s28 + $0x8f0] sm:$0xff] }
  0xf2   : > { %4818 = vmatpush.bf16.msra.mxu1 %v7685_v17  ;;  %v4600_v37 = vadd.f32 %v4599_v36, %v4587_v6  ;;  %v4612_v40 = vpop.f32.mrf.mxu1  ;;  %v7717_v6 = vld [vmem:[%s8105_s28 + $0x740] sm:$0xff]  ;;  %v7746_v17 = vld [vmem:[%s8105_s28 + $0x828] sm:$0xff] }
  0xf3   : > { %4831 = vmatpush.bf16.msra.mxu2 %v7693_v18  ;;  %v7754_v18 = vld [vmem:[%s8105_s28 + $0x868] sm:$0xff] }
  0xf4   : > { %4844 = vmatpush.bf16.msra.mxu3 %v7701_v19  ;;  %4806 = vmatmul.bf16.vlgmr.msra.gmra.mxu0 %v1302_v24  ;;  %v4613_v43 = vadd.f32 %v4612_v40, %v4600_v37  ;;  %v7762_v19 = vld [vmem:[%s8105_s28 + $0x8a8] sm:$0xff]  ;;  %v7753_v24 = vld [vmem:[%s8105_s28 + $0x860] sm:$0xff] }
  0xf5   : > { %4850 = vmatpush.bf16.msrb.mxu0 %v7716_v20  ;;  %4819 = vmatmul.bf16.vlgmr.msra.gmra.mxu1 %v1303_v26  ;;  %v7770_v20 = vld [vmem:[%s8105_s28 + $0x8e8] sm:$0xff]  ;;  %v7761_v26 = vld [vmem:[%s8105_s28 + $0x8a0] sm:$0xff] }
  0xf6   : > { %4863 = vmatpush.bf16.msrb.mxu1 %v7724_v21  ;;  %4832 = vmatmul.bf16.vlgmr.msra.gmra.mxu2 %v1304_v25 }
  0xf7   : > { %4876 = vmatpush.bf16.msrb.mxu2 %v7732_v22  ;;  %4845 = vmatmul.bf16.vlgmr.msra.gmra.mxu3 %v1305_v27  ;;  %v7769_v27 = vld [vmem:[%s8105_s28 + $0x8e0] sm:$0xff] }
  0xf8   : > { %4889 = vmatpush.bf16.msrb.mxu3 %v7740_v23  ;;  %v7745_v23 = vld [vmem:[%s8105_s28 + $0x820] sm:$0xff] }
  0xf9   : > { %4851 = vmatpush.bf16.msrb.mxu0 %v7715_v28  ;;  %v4625_v48 = vpop.f32.mrf.mxu2  ;;  %v4601_v51 = vpop.f32.mrf.mxu0 }
  0xfa   : > { %4864 = vmatpush.bf16.msrb.mxu1 %v7723_v29  ;;  %v4626_v49 = vadd.f32 %v4625_v48, %v4613_v43  ;;  %v4638_v50 = vpop.f32.mrf.mxu3  ;;  %v4614_v55 = vpop.f32.mrf.mxu1  ;;  %v7744_v29 = vld [vmem:[%s8105_s28 + $0x818] sm:$0xff]  ;;  %v7742_v43 = vld [vmem:[%s8105_s28 + $0x808] sm:$0xff]  ;;  %v7757_v51 = vld [vmem:[%s8105_s28 + $0x880] sm:$0xff] }
  0xfb   : > { %4877 = vmatpush.bf16.msrb.mxu2 %v7731_v30  ;;  %v7752_v30 = vld [vmem:[%s8105_s28 + $0x858] sm:$0xff] }
  0xfc   : > { %4890 = vmatpush.bf16.msrb.mxu3 %v7739_v31  ;;  %v8359_v52 = vadd.f32 %v4638_v50, %v4626_v49  ;;  %v7760_v31 = vld [vmem:[%s8105_s28 + $0x898] sm:$0xff]  ;;  %v7741_v49 = vld [vmem:[%s8105_s28 + $0x800] sm:$0xff] }
  0xfd   : > { %4852 = vmatpush.bf16.msrb.mxu0 %v7714_v32  ;;  %v7768_v32 = vld [vmem:[%s8105_s28 + $0x8d8] sm:$0xff]  ;;  %v7749_v50 = vld [vmem:[%s8105_s28 + $0x840] sm:$0xff] }
  0xfe   : > { %4865 = vmatpush.bf16.msrb.mxu1 %v7722_v33  ;;  %v7796_v55 = vld [vmem:[%s8105_s28 + $0x9b8] sm:$0xff] }
  0xff   : > { %4878 = vmatpush.bf16.msrb.mxu2 %v7730_v34 }
 0x100   : > { %4891 = vmatpush.bf16.msrb.mxu3 %v7738_v35 }
 0x101   : > { %4853 = vmatpush.bf16.msrb.mxu0 %v7713_v38  ;;  %v4627_v0 = vpop.f32.mrf.mxu2  ;;  %v7743_v38 = vld [vmem:[%s8105_s28 + $0x810] sm:$0xff] }
 0x102   : > { %4866 = vmatpush.bf16.msrb.mxu1 %v7721_v39  ;;  %v4640_v3 = vpop.f32.mrf.mxu3  ;;  %v7751_v39 = vld [vmem:[%s8105_s28 + $0x850] sm:$0xff] }
 0x103   : > { %4879 = vmatpush.bf16.msrb.mxu2 %v7729_v41  ;;  %v7759_v41 = vld [vmem:[%s8105_s28 + $0x890] sm:$0xff]  ;;  %v7794_v3 = vld [vmem:[%s8105_s28 + $0x9a8] sm:$0xff] }
 0x104   : > { %4892 = vmatpush.bf16.msrb.mxu3 %v7737_v42  ;;  %v7767_v42 = vld [vmem:[%s8105_s28 + $0x8d0] sm:$0xff] }
 0x105   : > { %4854 = vmatpush.bf16.msrb.mxu0 %v7712_v44  ;;  %v7750_v44 = vld [vmem:[%s8105_s28 + $0x848] sm:$0xff]  ;;  %v7803_v0 = vld [vmem:[%s8105_s28 + $0x9f0] sm:$0xff] }
 0x106   : > { %4867 = vmatpush.bf16.msrb.mxu1 %v7720_v45  ;;  %v7758_v45 = vld [vmem:[%s8105_s28 + $0x888] sm:$0xff] }
 0x107   : > { %4880 = vmatpush.bf16.msrb.mxu2 %v7728_v46  ;;  %v7766_v46 = vld [vmem:[%s8105_s28 + $0x8c8] sm:$0xff] }
 0x108   : > { %4893 = vmatpush.bf16.msrb.mxu3 %v7736_v47 }
 0x109   : > { %4855 = vmatpush.bf16.msrb.mxu0 %v7711_v53  ;;  %v7780_v53 = vld [vmem:[%s8105_s28 + $0x938] sm:$0xff] }
 0x10a   : > { %4868 = vmatpush.bf16.msrb.mxu1 %v7719_v54  ;;  %v7788_v54 = vld [vmem:[%s8105_s28 + $0x978] sm:$0xff] }
 0x10b   : > { %4881 = vmatpush.bf16.msrb.mxu2 %v7727_v56  ;;  %v7804_v56 = vld [vmem:[%s8105_s28 + $0x9f8] sm:$0xff] }
 0x10c   : > { %4894 = vmatpush.bf16.msrb.mxu3 %v7735_v57  ;;  %v1312_v57 = vld [vmem:[#allocation1] sm:$0xff] }
 0x10d   : > { %4856 = vmatpush.bf16.msrb.mxu0 %v7710_v58  ;;  %v1314_v58 = vld [vmem:[#allocation1 + $0x12] sm:$0xff] }
 0x10e   : > { %4869 = vmatpush.bf16.msrb.mxu1 %v7718_v59  ;;  %v1313_v59 = vld [vmem:[#allocation1 + $0x9] sm:$0xff] }
 0x10f   : > { %4882 = vmatpush.bf16.msrb.mxu2 %v7726_v60  ;;  %v1315_v60 = vld [vmem:[#allocation1 + $0x1b] sm:$0xff] }
 0x110   : > { %4895 = vmatpush.bf16.msrb.mxu3 %v7734_v61  ;;  %v7779_v61 = vld [vmem:[%s8105_s28 + $0x930] sm:$0xff] }
 0x111   : > { %4857 = vmatpush.bf16.msrb.mxu0 %v7709_v5  ;;  %v4651_v21 = vpop.f32.mrf.mxu0 }
 0x112   : > { %4870 = vmatpush.bf16.msrb.mxu1 %v7717_v6  ;;  %v4652_v22 = vadd.f32 %v4651_v21, %v8359_v52  ;;  %v4664_v25 = vpop.f32.mrf.mxu1  ;;  %v7765_v52 = vld [vmem:[%s8105_s28 + $0x8c0] sm:$0xff] }
 0x113   : > { %4883 = vmatpush.bf16.msrb.mxu2 %v7725_v7  ;;  %v7777_v7 = vld [vmem:[%s8105_s28 + $0x920] sm:$0xff] }
 0x114   : > { %4896 = vmatpush.bf16.msrb.mxu3 %v7733_v8  ;;  %4858 = vmatmul.bf16.vlgmr.msrb.gmra.mxu0 %v1306_v62  ;;  %v4665_v28 = vadd.f32 %v4664_v25, %v4652_v22  ;;  %v7787_v62 = vld [vmem:[%s8105_s28 + $0x970] sm:$0xff]  ;;  %v7785_v8 = vld [vmem:[%s8105_s28 + $0x960] sm:$0xff] }
 0x115   : > { %4902 = vmatpush.bf16.msra.mxu0 %v7748_v9  ;;  %4871 = vmatmul.bf16.vlgmr.msrb.gmra.mxu1 %v1307_v1  ;;  %v7778_v1 = vld [vmem:[%s8105_s28 + $0x928] sm:$0xff]  ;;  %v7775_v22 = vld [vmem:[%s8105_s28 + $0x910] sm:$0xff] }
 0x116   : > { %4915 = vmatpush.bf16.msra.mxu1 %v7756_v10  ;;  %4884 = vmatmul.bf16.vlgmr.msrb.gmra.mxu2 %v1308_v63  ;;  %v7795_v63 = vld [vmem:[%s8105_s28 + $0x9b0] sm:$0xff]  ;;  %v7793_v10 = vld [vmem:[%s8105_s28 + $0x9a0] sm:$0xff] }
 0x117   : > { %4928 = vmatpush.bf16.msra.mxu2 %v7764_v11  ;;  %4897 = vmatmul.bf16.vlgmr.msrb.gmra.mxu3 %v1309_v2  ;;  %v7786_v2 = vld [vmem:[%s8105_s28 + $0x968] sm:$0xff]  ;;  %v7801_v11 = vld [vmem:[%s8105_s28 + $0x9e0] sm:$0xff]  ;;  %v7791_v25 = vld [vmem:[%s8105_s28 + $0x990] sm:$0xff] }
 0x118   : > { %4941 = vmatpush.bf16.msra.mxu3 %v7772_v12 }
 0x119   : > { %4903 = vmatpush.bf16.msra.mxu0 %v7747_v13  ;;  %v4677_v33 = vpop.f32.mrf.mxu2  ;;  %v4653_v36 = vpop.f32.mrf.mxu0  ;;  %v7776_v13 = vld [vmem:[%s8105_s28 + $0x918] sm:$0xff] }
 0x11a   : > { %4916 = vmatpush.bf16.msra.mxu1 %v7755_v14  ;;  %v4678_v34 = vadd.f32 %v4677_v33, %v4665_v28  ;;  %v4690_v35 = vpop.f32.mrf.mxu3  ;;  %v4666_v40 = vpop.f32.mrf.mxu1  ;;  %v7784_v14 = vld [vmem:[%s8105_s28 + $0x958] sm:$0xff]  ;;  %v7782_v28 = vld [vmem:[%s8105_s28 + $0x948] sm:$0xff] }
 0x11b   : > { %4929 = vmatpush.bf16.msra.mxu2 %v7763_v15  ;;  %v7792_v15 = vld [vmem:[%s8105_s28 + $0x998] sm:$0xff]  ;;  %v7789_v40 = vld [vmem:[%s8105_s28 + $0x980] sm:$0xff] }
 0x11c   : > { %4942 = vmatpush.bf16.msra.mxu3 %v7771_v16  ;;  %v4691_v37 = vadd.f32 %v4690_v35, %v4678_v34  ;;  %v7800_v16 = vld [vmem:[%s8105_s28 + $0x9d8] sm:$0xff]  ;;  %v1317_v34 = vld [vmem:[#allocation1 + $0x2d] sm:$0xff] }
 0x11d   : > { %4904 = vmatpush.bf16.msra.mxu0 %v7746_v17  ;;  %v1319_v35 = vld [vmem:[#allocation1 + $0x3f] sm:$0xff] }
 0x11e   : > { %4917 = vmatpush.bf16.msra.mxu1 %v7754_v18 }
 0x11f   : > { %4930 = vmatpush.bf16.msra.mxu2 %v7762_v19 }
 0x120   : > { %4943 = vmatpush.bf16.msra.mxu3 %v7770_v20 }
 0x121   : > { %4905 = vmatpush.bf16.msra.mxu0 %v7745_v23  ;;  %v4679_v47 = vpop.f32.mrf.mxu2  ;;  %v7783_v23 = vld [vmem:[%s8105_s28 + $0x950] sm:$0xff] }
 0x122   : > { %4918 = vmatpush.bf16.msra.mxu1 %v7753_v24  ;;  %v4692_v48 = vpop.f32.mrf.mxu3  ;;  %v7819_v47 = vld [vmem:[%s8105_s28 + $0xa70] sm:$0xff] }
 0x123   : > { %4931 = vmatpush.bf16.msra.mxu2 %v7761_v26  ;;  %v7799_v26 = vld [vmem:[%s8105_s28 + $0x9d0] sm:$0xff] }
 0x124   : > { %4944 = vmatpush.bf16.msra.mxu3 %v7769_v27  ;;  %v7774_v27 = vld [vmem:[%s8105_s28 + $0x908] sm:$0xff]  ;;  %v7827_v48 = vld [vmem:[%s8105_s28 + $0xab0] sm:$0xff] }
 0x125   : > { %4906 = vmatpush.bf16.msra.mxu0 %v7744_v29  ;;  %v7790_v29 = vld [vmem:[%s8105_s28 + $0x988] sm:$0xff] }
 0x126   : > { %4919 = vmatpush.bf16.msra.mxu1 %v7752_v30  ;;  %v7798_v30 = vld [vmem:[%s8105_s28 + $0x9c8] sm:$0xff] }
 0x127   : > { %4932 = vmatpush.bf16.msra.mxu2 %v7760_v31  ;;  %v1316_v31 = vld [vmem:[#allocation1 + $0x24] sm:$0xff] }
 0x128   : > { %4945 = vmatpush.bf16.msra.mxu3 %v7768_v32  ;;  %v1318_v32 = vld [vmem:[#allocation1 + $0x36] sm:$0xff] }
 0x129   : > { %4907 = vmatpush.bf16.msra.mxu0 %v7743_v38  ;;  %v7773_v38 = vld [vmem:[%s8105_s28 + $0x900] sm:$0xff] }
 0x12a   : > { %4920 = vmatpush.bf16.msra.mxu1 %v7751_v39  ;;  %v7781_v39 = vld [vmem:[%s8105_s28 + $0x940] sm:$0xff] }
 0x12b   : > { %4933 = vmatpush.bf16.msra.mxu2 %v7759_v41  ;;  %v7797_v41 = vld [vmem:[%s8105_s28 + $0x9c0] sm:$0xff] }
 0x12c   : > { %4946 = vmatpush.bf16.msra.mxu3 %v7767_v42  ;;  %v7812_v42 = vld [vmem:[%s8105_s28 + $0xa38] sm:$0xff] }
 0x12d   : > { %4908 = vmatpush.bf16.msra.mxu0 %v7742_v43  ;;  %v7820_v43 = vld [vmem:[%s8105_s28 + $0xa78] sm:$0xff] }
 0x12e   : > { %4921 = vmatpush.bf16.msra.mxu1 %v7750_v44  ;;  %v7828_v44 = vld [vmem:[%s8105_s28 + $0xab8] sm:$0xff] }
 0x12f   : > { %4934 = vmatpush.bf16.msra.mxu2 %v7758_v45  ;;  %v7836_v45 = vld [vmem:[%s8105_s28 + $0xaf8] sm:$0xff] }
 0x130   : > { %4947 = vmatpush.bf16.msra.mxu3 %v7766_v46  ;;  %v7811_v46 = vld [vmem:[%s8105_s28 + $0xa30] sm:$0xff] }
 0x131   : > { %4909 = vmatpush.bf16.msra.mxu0 %v7741_v49  ;;  %v4703_v5 = vpop.f32.mrf.mxu0  ;;  %v7835_v49 = vld [vmem:[%s8105_s28 + $0xaf0] sm:$0xff] }
 0x132   : > { %4922 = vmatpush.bf16.msra.mxu1 %v7749_v50  ;;  %v4704_v6 = vadd.f32 %v4703_v5, %v4691_v37  ;;  %v4716_v9 = vpop.f32.mrf.mxu1  ;;  %v243_v37 = vld [vmem:[%s8100_s24 + $0x28] sm:$0xff] }
 0x133   : > { %4935 = vmatpush.bf16.msra.mxu2 %v7757_v51  ;;  %1321 = vst [vmem:[#allocation1] ss:$9 sm:$0xff] %v243_v37  ;;  %v7810_v50 = vld [vmem:[%s8105_s28 + $0xa28] sm:$0xff] }
 0x134   : > { %4948 = vmatpush.bf16.msra.mxu3 %v7765_v52  ;;  %4910 = vmatmul.bf16.vlgmr.msra.gmra.mxu0 %v1312_v57  ;;  %v4717_v12 = vadd.f32 %v4716_v9, %v4704_v6  ;;  %v7818_v51 = vld [vmem:[%s8105_s28 + $0xa68] sm:$0xff]  ;;  %v7817_v57 = vld [vmem:[%s8105_s28 + $0xa60] sm:$0xff] }
 0x135   : > { %4954 = vmatpush.bf16.msrb.mxu0 %v7780_v53  ;;  %4923 = vmatmul.bf16.vlgmr.msra.gmra.mxu1 %v1313_v59  ;;  %v7826_v52 = vld [vmem:[%s8105_s28 + $0xaa8] sm:$0xff]  ;;  %v7825_v59 = vld [vmem:[%s8105_s28 + $0xaa0] sm:$0xff] }
 0x136   : > { %4967 = vmatpush.bf16.msrb.mxu1 %v7788_v54  ;;  %4936 = vmatmul.bf16.vlgmr.msra.gmra.mxu2 %v1314_v58  ;;  %v7834_v53 = vld [vmem:[%s8105_s28 + $0xae8] sm:$0xff] }
 0x137   : > { %4980 = vmatpush.bf16.msrb.mxu2 %v7796_v55  ;;  %4949 = vmatmul.bf16.vlgmr.msra.gmra.mxu3 %v1315_v60  ;;  %v7833_v60 = vld [vmem:[%s8105_s28 + $0xae0] sm:$0xff]  ;;  %v7866_v37 = vld [vmem:[%s8105_s28 + $0xbe8] sm:$0xff] }
 0x138   : > { %4993 = vmatpush.bf16.msrb.mxu3 %v7804_v56  ;;  %v7809_v56 = vld [vmem:[%s8105_s28 + $0xa20] sm:$0xff] }
 0x139   : > { %4955 = vmatpush.bf16.msrb.mxu0 %v7779_v61  ;;  %v4729_v17 = vpop.f32.mrf.mxu2  ;;  %v4705_v20 = vpop.f32.mrf.mxu0 }
 0x13a   : > { %4968 = vmatpush.bf16.msrb.mxu1 %v7787_v62  ;;  %v4730_v18 = vadd.f32 %v4729_v17, %v4717_v12  ;;  %v4742_v19 = vpop.f32.mrf.mxu3  ;;  %v4718_v24 = vpop.f32.mrf.mxu1  ;;  %v7808_v62 = vld [vmem:[%s8105_s28 + $0xa18] sm:$0xff]  ;;  %v7806_v12 = vld [vmem:[%s8105_s28 + $0xa08] sm:$0xff]  ;;  %v7821_v20 = vld [vmem:[%s8105_s28 + $0xa80] sm:$0xff] }
 0x13b   : > { %4981 = vmatpush.bf16.msrb.mxu2 %v7795_v63  ;;  %v7816_v63 = vld [vmem:[%s8105_s28 + $0xa58] sm:$0xff] }
 0x13c   : > { %4994 = vmatpush.bf16.msrb.mxu3 %v7803_v0  ;;  %v8427_v21 = vadd.f32 %v4742_v19, %v4730_v18  ;;  %v7824_v0 = vld [vmem:[%s8105_s28 + $0xa98] sm:$0xff]  ;;  %v7805_v18 = vld [vmem:[%s8105_s28 + $0xa00] sm:$0xff] }
 0x13d   : > { %4956 = vmatpush.bf16.msrb.mxu0 %v7778_v1  ;;  %v7832_v1 = vld [vmem:[%s8105_s28 + $0xad8] sm:$0xff]  ;;  %v7813_v19 = vld [vmem:[%s8105_s28 + $0xa40] sm:$0xff] }
 0x13e   : > { %4969 = vmatpush.bf16.msrb.mxu1 %v7786_v2  ;;  %v7860_v24 = vld [vmem:[%s8105_s28 + $0xbb8] sm:$0xff] }
 0x13f   : > { %4982 = vmatpush.bf16.msrb.mxu2 %v7794_v3 }
 0x140   : > { %4995 = vmatpush.bf16.msrb.mxu3 %v7802_v4 }
 0x141   : > { %4957 = vmatpush.bf16.msrb.mxu0 %v7777_v7  ;;  %v4731_v33 = vpop.f32.mrf.mxu2  ;;  %v7807_v7 = vld [vmem:[%s8105_s28 + $0xa10] sm:$0xff] }
 0x142   : > { %4970 = vmatpush.bf16.msrb.mxu1 %v7785_v8  ;;  %v4744_v36 = vpop.f32.mrf.mxu3  ;;  %v7815_v8 = vld [vmem:[%s8105_s28 + $0xa50] sm:$0xff] }
 0x143   : > { %4983 = vmatpush.bf16.msrb.mxu2 %v7793_v10  ;;  %v7823_v10 = vld [vmem:[%s8105_s28 + $0xa90] sm:$0xff]  ;;  %v7858_v36 = vld [vmem:[%s8105_s28 + $0xba8] sm:$0xff] }
 0x144   : > { %4996 = vmatpush.bf16.msrb.mxu3 %v7801_v11  ;;  %v7831_v11 = vld [vmem:[%s8105_s28 + $0xad0] sm:$0xff] }
 0x145   : > { %4958 = vmatpush.bf16.msrb.mxu0 %v7776_v13  ;;  %v7814_v13 = vld [vmem:[%s8105_s28 + $0xa48] sm:$0xff]  ;;  %v7867_v33 = vld [vmem:[%s8105_s28 + $0xbf0] sm:$0xff] }
 0x146   : > { %4971 = vmatpush.bf16.msrb.mxu1 %v7784_v14  ;;  %v7822_v14 = vld [vmem:[%s8105_s28 + $0xa88] sm:$0xff] }
 0x147   : > { %4984 = vmatpush.bf16.msrb.mxu2 %v7792_v15  ;;  %v7830_v15 = vld [vmem:[%s8105_s28 + $0xac8] sm:$0xff] }
 0x148   : > { %4997 = vmatpush.bf16.msrb.mxu3 %v7800_v16 }
 0x149   : > { %4959 = vmatpush.bf16.msrb.mxu0 %v7775_v22  ;;  %v7844_v22 = vld [vmem:[%s8105_s28 + $0xb38] sm:$0xff] }
 0x14a   : > { %4972 = vmatpush.bf16.msrb.mxu1 %v7783_v23  ;;  %v7852_v23 = vld [vmem:[%s8105_s28 + $0xb78] sm:$0xff] }
 0x14b   : > { %4985 = vmatpush.bf16.msrb.mxu2 %v7791_v25  ;;  %v7868_v25 = vld [vmem:[%s8105_s28 + $0xbf8] sm:$0xff] }
 0x14c   : > { %4998 = vmatpush.bf16.msrb.mxu3 %v7799_v26  ;;  %v1322_v26 = vld [vmem:[#allocation1] sm:$0xff] }
 0x14d   : > { %4960 = vmatpush.bf16.msrb.mxu0 %v7774_v27  ;;  %v1324_v27 = vld [vmem:[#allocation1 + $0x12] sm:$0xff] }
 0x14e   : > { %4973 = vmatpush.bf16.msrb.mxu1 %v7782_v28  ;;  %v1323_v28 = vld [vmem:[#allocation1 + $0x9] sm:$0xff] }
 0x14f   : > { %4986 = vmatpush.bf16.msrb.mxu2 %v7790_v29  ;;  %v1325_v29 = vld [vmem:[#allocation1 + $0x1b] sm:$0xff] }
 0x150   : > { %4999 = vmatpush.bf16.msrb.mxu3 %v7798_v30  ;;  %v7843_v30 = vld [vmem:[%s8105_s28 + $0xb30] sm:$0xff] }
 0x151   : > { %4961 = vmatpush.bf16.msrb.mxu0 %v7773_v38  ;;  %v4755_v54 = vpop.f32.mrf.mxu0 }
 0x152   : > { %4974 = vmatpush.bf16.msrb.mxu1 %v7781_v39  ;;  %v4756_v55 = vadd.f32 %v4755_v54, %v8427_v21  ;;  %v4768_v58 = vpop.f32.mrf.mxu1  ;;  %v7829_v21 = vld [vmem:[%s8105_s28 + $0xac0] sm:$0xff] }
 0x153   : > { %4987 = vmatpush.bf16.msrb.mxu2 %v7789_v40  ;;  %v7841_v40 = vld [vmem:[%s8105_s28 + $0xb20] sm:$0xff] }
 0x154   : > { %5000 = vmatpush.bf16.msrb.mxu3 %v7797_v41  ;;  %4962 = vmatmul.bf16.vlgmr.msrb.gmra.mxu0 %v1316_v31  ;;  %v4769_v61 = vadd.f32 %v4768_v58, %v4756_v55  ;;  %v7851_v31 = vld [vmem:[%s8105_s28 + $0xb70] sm:$0xff]  ;;  %v7849_v41 = vld [vmem:[%s8105_s28 + $0xb60] sm:$0xff] }
 0x155   : > { %5006 = vmatpush.bf16.msra.mxu0 %v7812_v42  ;;  %4975 = vmatmul.bf16.vlgmr.msrb.gmra.mxu1 %v1317_v34  ;;  %v7842_v34 = vld [vmem:[%s8105_s28 + $0xb28] sm:$0xff]  ;;  %v7839_v55 = vld [vmem:[%s8105_s28 + $0xb10] sm:$0xff] }
 0x156   : > { %5019 = vmatpush.bf16.msra.mxu1 %v7820_v43  ;;  %4988 = vmatmul.bf16.vlgmr.msrb.gmra.mxu2 %v1318_v32  ;;  %v7859_v32 = vld [vmem:[%s8105_s28 + $0xbb0] sm:$0xff]  ;;  %v7857_v43 = vld [vmem:[%s8105_s28 + $0xba0] sm:$0xff] }
 0x157   : > { %5032 = vmatpush.bf16.msra.mxu2 %v7828_v44  ;;  %5001 = vmatmul.bf16.vlgmr.msrb.gmra.mxu3 %v1319_v35  ;;  %v7850_v35 = vld [vmem:[%s8105_s28 + $0xb68] sm:$0xff]  ;;  %v7865_v44 = vld [vmem:[%s8105_s28 + $0xbe0] sm:$0xff]  ;;  %v7855_v58 = vld [vmem:[%s8105_s28 + $0xb90] sm:$0xff] }
 0x158   : > { %5045 = vmatpush.bf16.msra.mxu3 %v7836_v45 }
 0x159   : > { %5007 = vmatpush.bf16.msra.mxu0 %v7811_v46  ;;  %v4781_v2 = vpop.f32.mrf.mxu2  ;;  %v4757_v5 = vpop.f32.mrf.mxu0  ;;  %v7840_v46 = vld [vmem:[%s8105_s28 + $0xb18] sm:$0xff] }
 0x15a   : > { %5020 = vmatpush.bf16.msra.mxu1 %v7819_v47  ;;  %v4782_v3 = vadd.f32 %v4781_v2, %v4769_v61  ;;  %v4794_v4 = vpop.f32.mrf.mxu3  ;;  %v4770_v9 = vpop.f32.mrf.mxu1  ;;  %v7848_v47 = vld [vmem:[%s8105_s28 + $0xb58] sm:$0xff]  ;;  %v7846_v61 = vld [vmem:[%s8105_s28 + $0xb48] sm:$0xff] }
 0x15b   : > { %5033 = vmatpush.bf16.msra.mxu2 %v7827_v48  ;;  %v7856_v48 = vld [vmem:[%s8105_s28 + $0xb98] sm:$0xff]  ;;  %v7853_v9 = vld [vmem:[%s8105_s28 + $0xb80] sm:$0xff] }
 0x15c   : > { %5046 = vmatpush.bf16.msra.mxu3 %v7835_v49  ;;  %v4795_v6 = vadd.f32 %v4794_v4, %v4782_v3  ;;  %v7864_v49 = vld [vmem:[%s8105_s28 + $0xbd8] sm:$0xff]  ;;  %v1327_v3 = vld [vmem:[#allocation1 + $0x2d] sm:$0xff] }
 0x15d   : > { %5008 = vmatpush.bf16.msra.mxu0 %v7810_v50  ;;  %v1329_v4 = vld [vmem:[#allocation1 + $0x3f] sm:$0xff] }
 0x15e   : > { %5021 = vmatpush.bf16.msra.mxu1 %v7818_v51 }
 0x15f   : > { %5034 = vmatpush.bf16.msra.mxu2 %v7826_v52 }
 0x160   : > { %5047 = vmatpush.bf16.msra.mxu3 %v7834_v53 }
 0x161   : > { %5009 = vmatpush.bf16.msra.mxu0 %v7809_v56  ;;  %v4783_v16 = vpop.f32.mrf.mxu2  ;;  %v7847_v56 = vld [vmem:[%s8105_s28 + $0xb50] sm:$0xff] }
 0x162   : > { %5022 = vmatpush.bf16.msra.mxu1 %v7817_v57  ;;  %v4796_v17 = vpop.f32.mrf.mxu3  ;;  %v7883_v16 = vld [vmem:[%s8105_s28 + $0xc70] sm:$0xff] }
 0x163   : > { %5035 = vmatpush.bf16.msra.mxu2 %v7825_v59  ;;  %v7863_v59 = vld [vmem:[%s8105_s28 + $0xbd0] sm:$0xff] }
 0x164   : > { %5048 = vmatpush.bf16.msra.mxu3 %v7833_v60  ;;  %v7838_v60 = vld [vmem:[%s8105_s28 + $0xb08] sm:$0xff]  ;;  %v7891_v17 = vld [vmem:[%s8105_s28 + $0xcb0] sm:$0xff] }
 0x165   : > { %5010 = vmatpush.bf16.msra.mxu0 %v7808_v62  ;;  %v7854_v62 = vld [vmem:[%s8105_s28 + $0xb88] sm:$0xff] }
 0x166   : > { %5023 = vmatpush.bf16.msra.mxu1 %v7816_v63  ;;  %v7862_v63 = vld [vmem:[%s8105_s28 + $0xbc8] sm:$0xff] }
 0x167   : > { %5036 = vmatpush.bf16.msra.mxu2 %v7824_v0  ;;  %v1326_v0 = vld [vmem:[#allocation1 + $0x24] sm:$0xff] }
 0x168   : > { %5049 = vmatpush.bf16.msra.mxu3 %v7832_v1  ;;  %v1328_v1 = vld [vmem:[#allocation1 + $0x36] sm:$0xff] }
 0x169   : > { %5011 = vmatpush.bf16.msra.mxu0 %v7807_v7  ;;  %v7837_v7 = vld [vmem:[%s8105_s28 + $0xb00] sm:$0xff] }
 0x16a   : > { %5024 = vmatpush.bf16.msra.mxu1 %v7815_v8  ;;  %v7845_v8 = vld [vmem:[%s8105_s28 + $0xb40] sm:$0xff] }
 0x16b   : > { %5037 = vmatpush.bf16.msra.mxu2 %v7823_v10  ;;  %v7861_v10 = vld [vmem:[%s8105_s28 + $0xbc0] sm:$0xff] }
 0x16c   : > { %5050 = vmatpush.bf16.msra.mxu3 %v7831_v11  ;;  %v7876_v11 = vld [vmem:[%s8105_s28 + $0xc38] sm:$0xff] }
 0x16d   : > { %5012 = vmatpush.bf16.msra.mxu0 %v7806_v12  ;;  %v7884_v12 = vld [vmem:[%s8105_s28 + $0xc78] sm:$0xff] }
 0x16e   : > { %5025 = vmatpush.bf16.msra.mxu1 %v7814_v13  ;;  %v7892_v13 = vld [vmem:[%s8105_s28 + $0xcb8] sm:$0xff] }
 0x16f   : > { %5038 = vmatpush.bf16.msra.mxu2 %v7822_v14  ;;  %v7900_v14 = vld [vmem:[%s8105_s28 + $0xcf8] sm:$0xff] }
 0x170   : > { %5051 = vmatpush.bf16.msra.mxu3 %v7830_v15  ;;  %v7875_v15 = vld [vmem:[%s8105_s28 + $0xc30] sm:$0xff] }
 0x171   : > { %5013 = vmatpush.bf16.msra.mxu0 %v7805_v18  ;;  %v4807_v38 = vpop.f32.mrf.mxu0  ;;  %v7899_v18 = vld [vmem:[%s8105_s28 + $0xcf0] sm:$0xff] }
 0x172   : > { %5026 = vmatpush.bf16.msra.mxu1 %v7813_v19  ;;  %v4808_v39 = vadd.f32 %v4807_v38, %v4795_v6  ;;  %v4820_v42 = vpop.f32.mrf.mxu1  ;;  %v244_v6 = vld [vmem:[%s8100_s24 + $0x30] sm:$0xff]  ;;  %v7874_v19 = vld [vmem:[%s8105_s28 + $0xc28] sm:$0xff] }
 0x173   : > { %5039 = vmatpush.bf16.msra.mxu2 %v7821_v20  ;;  %1331 = vst [vmem:[#allocation1] ss:$9 sm:$0xff] %v244_v6  ;;  %v7882_v20 = vld [vmem:[%s8105_s28 + $0xc68] sm:$0xff] }
 0x174   : > { %5052 = vmatpush.bf16.msra.mxu3 %v7829_v21  ;;  %5014 = vmatmul.bf16.vlgmr.msra.gmra.mxu0 %v1322_v26  ;;  %v4821_v45 = vadd.f32 %v4820_v42, %v4808_v39  ;;  %v7890_v21 = vld [vmem:[%s8105_s28 + $0xca8] sm:$0xff]  ;;  %v7881_v26 = vld [vmem:[%s8105_s28 + $0xc60] sm:$0xff] }
 0x175   : > { %5058 = vmatpush.bf16.msrb.mxu0 %v7844_v22  ;;  %5027 = vmatmul.bf16.vlgmr.msra.gmra.mxu1 %v1323_v28  ;;  %v7898_v22 = vld [vmem:[%s8105_s28 + $0xce8] sm:$0xff]  ;;  %v7889_v28 = vld [vmem:[%s8105_s28 + $0xca0] sm:$0xff] }
 0x176   : > { %5071 = vmatpush.bf16.msrb.mxu1 %v7852_v23  ;;  %5040 = vmatmul.bf16.vlgmr.msra.gmra.mxu2 %v1324_v27  ;;  %v7930_v6 = vld [vmem:[%s8105_s28 + $0xde8] sm:$0xff] }
 0x177   : > { %5084 = vmatpush.bf16.msrb.mxu2 %v7860_v24  ;;  %5053 = vmatmul.bf16.vlgmr.msra.gmra.mxu3 %v1325_v29  ;;  %v7897_v29 = vld [vmem:[%s8105_s28 + $0xce0] sm:$0xff] }
 0x178   : > { %5097 = vmatpush.bf16.msrb.mxu3 %v7868_v25  ;;  %v7873_v25 = vld [vmem:[%s8105_s28 + $0xc20] sm:$0xff] }
 0x179   : > { %5059 = vmatpush.bf16.msrb.mxu0 %v7843_v30  ;;  %v4833_v50 = vpop.f32.mrf.mxu2  ;;  %v4809_v53 = vpop.f32.mrf.mxu0 }
 0x17a   : > { %5072 = vmatpush.bf16.msrb.mxu1 %v7851_v31  ;;  %v4834_v51 = vadd.f32 %v4833_v50, %v4821_v45  ;;  %v4846_v52 = vpop.f32.mrf.mxu3  ;;  %v4822_v57 = vpop.f32.mrf.mxu1  ;;  %v7872_v31 = vld [vmem:[%s8105_s28 + $0xc18] sm:$0xff]  ;;  %v7870_v45 = vld [vmem:[%s8105_s28 + $0xc08] sm:$0xff]  ;;  %v7885_v53 = vld [vmem:[%s8105_s28 + $0xc80] sm:$0xff] }
 0x17b   : > { %5085 = vmatpush.bf16.msrb.mxu2 %v7859_v32  ;;  %v7880_v32 = vld [vmem:[%s8105_s28 + $0xc58] sm:$0xff] }
 0x17c   : > { %5098 = vmatpush.bf16.msrb.mxu3 %v7867_v33  ;;  %v8495_v54 = vadd.f32 %v4846_v52, %v4834_v51  ;;  %v7888_v33 = vld [vmem:[%s8105_s28 + $0xc98] sm:$0xff]  ;;  %v7869_v51 = vld [vmem:[%s8105_s28 + $0xc00] sm:$0xff] }
 0x17d   : > { %5060 = vmatpush.bf16.msrb.mxu0 %v7842_v34  ;;  %v7896_v34 = vld [vmem:[%s8105_s28 + $0xcd8] sm:$0xff]  ;;  %v7877_v52 = vld [vmem:[%s8105_s28 + $0xc40] sm:$0xff] }
 0x17e   : > { %5073 = vmatpush.bf16.msrb.mxu1 %v7850_v35  ;;  %v7924_v57 = vld [vmem:[%s8105_s28 + $0xdb8] sm:$0xff] }
 0x17f   : > { %5086 = vmatpush.bf16.msrb.mxu2 %v7858_v36 }
 0x180   : > { %5099 = vmatpush.bf16.msrb.mxu3 %v7866_v37 }
 0x181   : > { %5061 = vmatpush.bf16.msrb.mxu0 %v7841_v40  ;;  %v4835_v2 = vpop.f32.mrf.mxu2  ;;  %v7871_v40 = vld [vmem:[%s8105_s28 + $0xc10] sm:$0xff] }
 0x182   : > { %5074 = vmatpush.bf16.msrb.mxu1 %v7849_v41  ;;  %v4848_v5 = vpop.f32.mrf.mxu3  ;;  %v7879_v41 = vld [vmem:[%s8105_s28 + $0xc50] sm:$0xff] }
 0x183   : > { %5087 = vmatpush.bf16.msrb.mxu2 %v7857_v43  ;;  %v7887_v43 = vld [vmem:[%s8105_s28 + $0xc90] sm:$0xff]  ;;  %v7922_v5 = vld [vmem:[%s8105_s28 + $0xda8] sm:$0xff] }
 0x184   : > { %5100 = vmatpush.bf16.msrb.mxu3 %v7865_v44  ;;  %v7895_v44 = vld [vmem:[%s8105_s28 + $0xcd0] sm:$0xff] }
 0x185   : > { %5062 = vmatpush.bf16.msrb.mxu0 %v7840_v46  ;;  %v7878_v46 = vld [vmem:[%s8105_s28 + $0xc48] sm:$0xff]  ;;  %v7931_v2 = vld [vmem:[%s8105_s28 + $0xdf0] sm:$0xff] }
 0x186   : > { %5075 = vmatpush.bf16.msrb.mxu1 %v7848_v47  ;;  %v7886_v47 = vld [vmem:[%s8105_s28 + $0xc88] sm:$0xff] }
 0x187   : > { %5088 = vmatpush.bf16.msrb.mxu2 %v7856_v48  ;;  %v7894_v48 = vld [vmem:[%s8105_s28 + $0xcc8] sm:$0xff] }
 0x188   : > { %5101 = vmatpush.bf16.msrb.mxu3 %v7864_v49 }
 0x189   : > { %5063 = vmatpush.bf16.msrb.mxu0 %v7839_v55  ;;  %v7908_v55 = vld [vmem:[%s8105_s28 + $0xd38] sm:$0xff] }
 0x18a   : > { %5076 = vmatpush.bf16.msrb.mxu1 %v7847_v56  ;;  %v7916_v56 = vld [vmem:[%s8105_s28 + $0xd78] sm:$0xff] }
 0x18b   : > { %5089 = vmatpush.bf16.msrb.mxu2 %v7855_v58  ;;  %v7932_v58 = vld [vmem:[%s8105_s28 + $0xdf8] sm:$0xff] }
 0x18c   : > { %5102 = vmatpush.bf16.msrb.mxu3 %v7863_v59  ;;  %v1332_v59 = vld [vmem:[#allocation1] sm:$0xff] }
 0x18d   : > { %5064 = vmatpush.bf16.msrb.mxu0 %v7838_v60  ;;  %v1334_v60 = vld [vmem:[#allocation1 + $0x12] sm:$0xff] }
 0x18e   : > { %5077 = vmatpush.bf16.msrb.mxu1 %v7846_v61  ;;  %v1333_v61 = vld [vmem:[#allocation1 + $0x9] sm:$0xff] }
 0x18f   : > { %5090 = vmatpush.bf16.msrb.mxu2 %v7854_v62  ;;  %v1335_v62 = vld [vmem:[#allocation1 + $0x1b] sm:$0xff] }
 0x190   : > { %5103 = vmatpush.bf16.msrb.mxu3 %v7862_v63  ;;  %v7907_v63 = vld [vmem:[%s8105_s28 + $0xd30] sm:$0xff] }
 0x191   : > { %5065 = vmatpush.bf16.msrb.mxu0 %v7837_v7  ;;  %v4859_v23 = vpop.f32.mrf.mxu0 }
 0x192   : > { %5078 = vmatpush.bf16.msrb.mxu1 %v7845_v8  ;;  %v4860_v24 = vadd.f32 %v4859_v23, %v8495_v54  ;;  %v4872_v27 = vpop.f32.mrf.mxu1  ;;  %v7893_v54 = vld [vmem:[%s8105_s28 + $0xcc0] sm:$0xff] }
 0x193   : > { %5091 = vmatpush.bf16.msrb.mxu2 %v7853_v9  ;;  %v7905_v9 = vld [vmem:[%s8105_s28 + $0xd20] sm:$0xff] }
 0x194   : > { %5104 = vmatpush.bf16.msrb.mxu3 %v7861_v10  ;;  %5066 = vmatmul.bf16.vlgmr.msrb.gmra.mxu0 %v1326_v0  ;;  %v4873_v30 = vadd.f32 %v4872_v27, %v4860_v24  ;;  %v7915_v0 = vld [vmem:[%s8105_s28 + $0xd70] sm:$0xff]  ;;  %v7913_v10 = vld [vmem:[%s8105_s28 + $0xd60] sm:$0xff] }
 0x195   : > { %5110 = vmatpush.bf16.msra.mxu0 %v7876_v11  ;;  %5079 = vmatmul.bf16.vlgmr.msrb.gmra.mxu1 %v1327_v3  ;;  %v7906_v3 = vld [vmem:[%s8105_s28 + $0xd28] sm:$0xff]  ;;  %v7903_v24 = vld [vmem:[%s8105_s28 + $0xd10] sm:$0xff] }
 0x196   : > { %5123 = vmatpush.bf16.msra.mxu1 %v7884_v12  ;;  %5092 = vmatmul.bf16.vlgmr.msrb.gmra.mxu2 %v1328_v1  ;;  %v7923_v1 = vld [vmem:[%s8105_s28 + $0xdb0] sm:$0xff]  ;;  %v7921_v12 = vld [vmem:[%s8105_s28 + $0xda0] sm:$0xff] }
 0x197   : > { %5136 = vmatpush.bf16.msra.mxu2 %v7892_v13  ;;  %5105 = vmatmul.bf16.vlgmr.msrb.gmra.mxu3 %v1329_v4  ;;  %v7914_v4 = vld [vmem:[%s8105_s28 + $0xd68] sm:$0xff]  ;;  %v7929_v13 = vld [vmem:[%s8105_s28 + $0xde0] sm:$0xff]  ;;  %v7919_v27 = vld [vmem:[%s8105_s28 + $0xd90] sm:$0xff] }
 0x198   : > { %5149 = vmatpush.bf16.msra.mxu3 %v7900_v14 }
 0x199   : > { %5111 = vmatpush.bf16.msra.mxu0 %v7875_v15  ;;  %v4885_v35 = vpop.f32.mrf.mxu2  ;;  %v4861_v38 = vpop.f32.mrf.mxu0  ;;  %v7904_v15 = vld [vmem:[%s8105_s28 + $0xd18] sm:$0xff] }
 0x19a   : > { %5124 = vmatpush.bf16.msra.mxu1 %v7883_v16  ;;  %v4886_v36 = vadd.f32 %v4885_v35, %v4873_v30  ;;  %v4898_v37 = vpop.f32.mrf.mxu3  ;;  %v4874_v42 = vpop.f32.mrf.mxu1  ;;  %v7912_v16 = vld [vmem:[%s8105_s28 + $0xd58] sm:$0xff]  ;;  %v7910_v30 = vld [vmem:[%s8105_s28 + $0xd48] sm:$0xff] }
 0x19b   : > { %5137 = vmatpush.bf16.msra.mxu2 %v7891_v17  ;;  %v7920_v17 = vld [vmem:[%s8105_s28 + $0xd98] sm:$0xff]  ;;  %v7917_v42 = vld [vmem:[%s8105_s28 + $0xd80] sm:$0xff] }
 0x19c   : > { %5150 = vmatpush.bf16.msra.mxu3 %v7899_v18  ;;  %v4899_v39 = vadd.f32 %v4898_v37, %v4886_v36  ;;  %v7928_v18 = vld [vmem:[%s8105_s28 + $0xdd8] sm:$0xff]  ;;  %v1337_v36 = vld [vmem:[#allocation1 + $0x2d] sm:$0xff] }
 0x19d   : > { %5112 = vmatpush.bf16.msra.mxu0 %v7874_v19  ;;  %v1339_v37 = vld [vmem:[#allocation1 + $0x3f] sm:$0xff] }
 0x19e   : > { %5125 = vmatpush.bf16.msra.mxu1 %v7882_v20 }
 0x19f   : > { %5138 = vmatpush.bf16.msra.mxu2 %v7890_v21 }
 0x1a0   : > { %5151 = vmatpush.bf16.msra.mxu3 %v7898_v22 }
 0x1a1   : > { %5113 = vmatpush.bf16.msra.mxu0 %v7873_v25  ;;  %v4887_v49 = vpop.f32.mrf.mxu2  ;;  %v7911_v25 = vld [vmem:[%s8105_s28 + $0xd50] sm:$0xff] }
 0x1a2   : > { %5126 = vmatpush.bf16.msra.mxu1 %v7881_v26  ;;  %v4900_v50 = vpop.f32.mrf.mxu3  ;;  %v7947_v49 = vld [vmem:[%s8105_s28 + $0xe70] sm:$0xff] }
 0x1a3   : > { %5139 = vmatpush.bf16.msra.mxu2 %v7889_v28  ;;  %v7927_v28 = vld [vmem:[%s8105_s28 + $0xdd0] sm:$0xff] }
 0x1a4   : > { %5152 = vmatpush.bf16.msra.mxu3 %v7897_v29  ;;  %v7902_v29 = vld [vmem:[%s8105_s28 + $0xd08] sm:$0xff]  ;;  %v7955_v50 = vld [vmem:[%s8105_s28 + $0xeb0] sm:$0xff] }
 0x1a5   : > { %5114 = vmatpush.bf16.msra.mxu0 %v7872_v31  ;;  %v7918_v31 = vld [vmem:[%s8105_s28 + $0xd88] sm:$0xff] }
 0x1a6   : > { %5127 = vmatpush.bf16.msra.mxu1 %v7880_v32  ;;  %v7926_v32 = vld [vmem:[%s8105_s28 + $0xdc8] sm:$0xff] }
 0x1a7   : > { %5140 = vmatpush.bf16.msra.mxu2 %v7888_v33  ;;  %v1336_v33 = vld [vmem:[#allocation1 + $0x24] sm:$0xff] }
 0x1a8   : > { %5153 = vmatpush.bf16.msra.mxu3 %v7896_v34  ;;  %v1338_v34 = vld [vmem:[#allocation1 + $0x36] sm:$0xff] }
 0x1a9   : > { %5115 = vmatpush.bf16.msra.mxu0 %v7871_v40  ;;  %v7901_v40 = vld [vmem:[%s8105_s28 + $0xd00] sm:$0xff] }
 0x1aa   : > { %5128 = vmatpush.bf16.msra.mxu1 %v7879_v41  ;;  %v7909_v41 = vld [vmem:[%s8105_s28 + $0xd40] sm:$0xff] }
 0x1ab   : > { %5141 = vmatpush.bf16.msra.mxu2 %v7887_v43  ;;  %v7925_v43 = vld [vmem:[%s8105_s28 + $0xdc0] sm:$0xff] }
 0x1ac   : > { %5154 = vmatpush.bf16.msra.mxu3 %v7895_v44  ;;  %v7940_v44 = vld [vmem:[%s8105_s28 + $0xe38] sm:$0xff] }
 0x1ad   : > { %5116 = vmatpush.bf16.msra.mxu0 %v7870_v45  ;;  %v7948_v45 = vld [vmem:[%s8105_s28 + $0xe78] sm:$0xff] }
 0x1ae   : > { %5129 = vmatpush.bf16.msra.mxu1 %v7878_v46  ;;  %v7956_v46 = vld [vmem:[%s8105_s28 + $0xeb8] sm:$0xff] }
 0x1af   : > { %5142 = vmatpush.bf16.msra.mxu2 %v7886_v47  ;;  %v7964_v47 = vld [vmem:[%s8105_s28 + $0xef8] sm:$0xff] }
 0x1b0   : > { %5155 = vmatpush.bf16.msra.mxu3 %v7894_v48  ;;  %v7939_v48 = vld [vmem:[%s8105_s28 + $0xe30] sm:$0xff] }
 0x1b1   : > { %5117 = vmatpush.bf16.msra.mxu0 %v7869_v51  ;;  %v4911_v7 = vpop.f32.mrf.mxu0  ;;  %v7963_v51 = vld [vmem:[%s8105_s28 + $0xef0] sm:$0xff] }
 0x1b2   : > { %5130 = vmatpush.bf16.msra.mxu1 %v7877_v52  ;;  %v4912_v8 = vadd.f32 %v4911_v7, %v4899_v39  ;;  %v4924_v11 = vpop.f32.mrf.mxu1  ;;  %v245_v39 = vld [vmem:[%s8100_s24 + $0x38] sm:$0xff]  ;;  %v7938_v52 = vld [vmem:[%s8105_s28 + $0xe28] sm:$0xff] }
 0x1b3   : > { %5143 = vmatpush.bf16.msra.mxu2 %v7885_v53  ;;  %1341 = vst [vmem:[#allocation1] ss:$9 sm:$0xff] %v245_v39  ;;  %v7946_v53 = vld [vmem:[%s8105_s28 + $0xe68] sm:$0xff] }
 0x1b4   : > { %5156 = vmatpush.bf16.msra.mxu3 %v7893_v54  ;;  %5118 = vmatmul.bf16.vlgmr.msra.gmra.mxu0 %v1332_v59  ;;  %v4925_v14 = vadd.f32 %v4924_v11, %v4912_v8  ;;  %v7954_v54 = vld [vmem:[%s8105_s28 + $0xea8] sm:$0xff]  ;;  %v7945_v59 = vld [vmem:[%s8105_s28 + $0xe60] sm:$0xff] }
 0x1b5   : > { %5162 = vmatpush.bf16.msrb.mxu0 %v7908_v55  ;;  %5131 = vmatmul.bf16.vlgmr.msra.gmra.mxu1 %v1333_v61  ;;  %v7962_v55 = vld [vmem:[%s8105_s28 + $0xee8] sm:$0xff]  ;;  %v7953_v61 = vld [vmem:[%s8105_s28 + $0xea0] sm:$0xff] }
 0x1b6   : > { %5175 = vmatpush.bf16.msrb.mxu1 %v7916_v56  ;;  %5144 = vmatmul.bf16.vlgmr.msra.gmra.mxu2 %v1334_v60  ;;  %v7994_v39 = vld [vmem:[%s8105_s28 + $0xfe8] sm:$0xff] }
 0x1b7   : > { %5188 = vmatpush.bf16.msrb.mxu2 %v7924_v57  ;;  %5157 = vmatmul.bf16.vlgmr.msra.gmra.mxu3 %v1335_v62  ;;  %v7961_v62 = vld [vmem:[%s8105_s28 + $0xee0] sm:$0xff] }
 0x1b8   : > { %5201 = vmatpush.bf16.msrb.mxu3 %v7932_v58  ;;  %v7937_v58 = vld [vmem:[%s8105_s28 + $0xe20] sm:$0xff] }
 0x1b9   : > { %5163 = vmatpush.bf16.msrb.mxu0 %v7907_v63  ;;  %v4937_v19 = vpop.f32.mrf.mxu2  ;;  %v4913_v22 = vpop.f32.mrf.mxu0 }
 0x1ba   : > { %5176 = vmatpush.bf16.msrb.mxu1 %v7915_v0  ;;  %v4938_v20 = vadd.f32 %v4937_v19, %v4925_v14  ;;  %v4950_v21 = vpop.f32.mrf.mxu3  ;;  %v4926_v26 = vpop.f32.mrf.mxu1  ;;  %v7936_v0 = vld [vmem:[%s8105_s28 + $0xe18] sm:$0xff]  ;;  %v7934_v14 = vld [vmem:[%s8105_s28 + $0xe08] sm:$0xff]  ;;  %v7949_v22 = vld [vmem:[%s8105_s28 + $0xe80] sm:$0xff] }
 0x1bb   : > { %5189 = vmatpush.bf16.msrb.mxu2 %v7923_v1  ;;  %v7944_v1 = vld [vmem:[%s8105_s28 + $0xe58] sm:$0xff] }
 0x1bc   : > { %5202 = vmatpush.bf16.msrb.mxu3 %v7931_v2  ;;  %v8563_v23 = vadd.f32 %v4950_v21, %v4938_v20  ;;  %v7952_v2 = vld [vmem:[%s8105_s28 + $0xe98] sm:$0xff]  ;;  %v7933_v20 = vld [vmem:[%s8105_s28 + $0xe00] sm:$0xff] }
 0x1bd   : > { %5164 = vmatpush.bf16.msrb.mxu0 %v7906_v3  ;;  %v7960_v3 = vld [vmem:[%s8105_s28 + $0xed8] sm:$0xff]  ;;  %v7941_v21 = vld [vmem:[%s8105_s28 + $0xe40] sm:$0xff] }
 0x1be   : > { %5177 = vmatpush.bf16.msrb.mxu1 %v7914_v4  ;;  %v7988_v26 = vld [vmem:[%s8105_s28 + $0xfb8] sm:$0xff] }
 0x1bf   : > { %5190 = vmatpush.bf16.msrb.mxu2 %v7922_v5 }
 0x1c0   : > { %5203 = vmatpush.bf16.msrb.mxu3 %v7930_v6 }
 0x1c1   : > { %5165 = vmatpush.bf16.msrb.mxu0 %v7905_v9  ;;  %v4939_v35 = vpop.f32.mrf.mxu2  ;;  %v7935_v9 = vld [vmem:[%s8105_s28 + $0xe10] sm:$0xff] }
 0x1c2   : > { %5178 = vmatpush.bf16.msrb.mxu1 %v7913_v10  ;;  %v4952_v38 = vpop.f32.mrf.mxu3  ;;  %v7943_v10 = vld [vmem:[%s8105_s28 + $0xe50] sm:$0xff] }
 0x1c3   : > { %5191 = vmatpush.bf16.msrb.mxu2 %v7921_v12  ;;  %v7951_v12 = vld [vmem:[%s8105_s28 + $0xe90] sm:$0xff]  ;;  %v7986_v38 = vld [vmem:[%s8105_s28 + $0xfa8] sm:$0xff] }
 0x1c4   : > { %5204 = vmatpush.bf16.msrb.mxu3 %v7929_v13  ;;  %v7959_v13 = vld [vmem:[%s8105_s28 + $0xed0] sm:$0xff] }
 0x1c5   : > { %5166 = vmatpush.bf16.msrb.mxu0 %v7904_v15  ;;  %v7942_v15 = vld [vmem:[%s8105_s28 + $0xe48] sm:$0xff]  ;;  %v7995_v35 = vld [vmem:[%s8105_s28 + $0xff0] sm:$0xff] }
 0x1c6   : > { %5179 = vmatpush.bf16.msrb.mxu1 %v7912_v16  ;;  %v7950_v16 = vld [vmem:[%s8105_s28 + $0xe88] sm:$0xff] }
 0x1c7   : > { %5192 = vmatpush.bf16.msrb.mxu2 %v7920_v17  ;;  %v7958_v17 = vld [vmem:[%s8105_s28 + $0xec8] sm:$0xff] }
 0x1c8   : > { %5205 = vmatpush.bf16.msrb.mxu3 %v7928_v18 }
 0x1c9   : > { %5167 = vmatpush.bf16.msrb.mxu0 %v7903_v24  ;;  %v7972_v24 = vld [vmem:[%s8105_s28 + $0xf38] sm:$0xff] }
 0x1ca   : > { %5180 = vmatpush.bf16.msrb.mxu1 %v7911_v25  ;;  %v7980_v25 = vld [vmem:[%s8105_s28 + $0xf78] sm:$0xff] }
 0x1cb   : > { %5193 = vmatpush.bf16.msrb.mxu2 %v7919_v27  ;;  %v7996_v27 = vld [vmem:[%s8105_s28 + $0xff8] sm:$0xff] }
 0x1cc   : > { %5206 = vmatpush.bf16.msrb.mxu3 %v7927_v28  ;;  %v1342_v28 = vld [vmem:[#allocation1] sm:$0xff] }
 0x1cd   : > { %5168 = vmatpush.bf16.msrb.mxu0 %v7902_v29  ;;  %v1344_v29 = vld [vmem:[#allocation1 + $0x12] sm:$0xff] }
 0x1ce   : > { %5181 = vmatpush.bf16.msrb.mxu1 %v7910_v30  ;;  %v1343_v30 = vld [vmem:[#allocation1 + $0x9] sm:$0xff] }
 0x1cf   : > { %5194 = vmatpush.bf16.msrb.mxu2 %v7918_v31  ;;  %v1345_v31 = vld [vmem:[#allocation1 + $0x1b] sm:$0xff] }
 0x1d0   : > { %5207 = vmatpush.bf16.msrb.mxu3 %v7926_v32  ;;  %v7971_v32 = vld [vmem:[%s8105_s28 + $0xf30] sm:$0xff] }
 0x1d1   : > { %5169 = vmatpush.bf16.msrb.mxu0 %v7901_v40  ;;  %v4963_v56 = vpop.f32.mrf.mxu0 }
 0x1d2   : > { %5182 = vmatpush.bf16.msrb.mxu1 %v7909_v41  ;;  %v4964_v57 = vadd.f32 %v4963_v56, %v8563_v23  ;;  %v4976_v60 = vpop.f32.mrf.mxu1  ;;  %v7957_v23 = vld [vmem:[%s8105_s28 + $0xec0] sm:$0xff] }
 0x1d3   : > { %5195 = vmatpush.bf16.msrb.mxu2 %v7917_v42  ;;  %v7969_v42 = vld [vmem:[%s8105_s28 + $0xf20] sm:$0xff] }
 0x1d4   : > { %5208 = vmatpush.bf16.msrb.mxu3 %v7925_v43  ;;  %5170 = vmatmul.bf16.vlgmr.msrb.gmra.mxu0 %v1336_v33  ;;  %v4977_v63 = vadd.f32 %v4976_v60, %v4964_v57  ;;  %v7979_v33 = vld [vmem:[%s8105_s28 + $0xf70] sm:$0xff]  ;;  %v7977_v43 = vld [vmem:[%s8105_s28 + $0xf60] sm:$0xff] }
 0x1d5   : > { %5214 = vmatpush.bf16.msra.mxu0 %v7940_v44  ;;  %5183 = vmatmul.bf16.vlgmr.msrb.gmra.mxu1 %v1337_v36  ;;  %v7970_v36 = vld [vmem:[%s8105_s28 + $0xf28] sm:$0xff]  ;;  %v7967_v57 = vld [vmem:[%s8105_s28 + $0xf10] sm:$0xff] }
 0x1d6   : > { %5227 = vmatpush.bf16.msra.mxu1 %v7948_v45  ;;  %5196 = vmatmul.bf16.vlgmr.msrb.gmra.mxu2 %v1338_v34  ;;  %v7987_v34 = vld [vmem:[%s8105_s28 + $0xfb0] sm:$0xff]  ;;  %v7985_v45 = vld [vmem:[%s8105_s28 + $0xfa0] sm:$0xff] }
 0x1d7   : > { %5240 = vmatpush.bf16.msra.mxu2 %v7956_v46  ;;  %5209 = vmatmul.bf16.vlgmr.msrb.gmra.mxu3 %v1339_v37  ;;  %v7978_v37 = vld [vmem:[%s8105_s28 + $0xf68] sm:$0xff]  ;;  %v7993_v46 = vld [vmem:[%s8105_s28 + $0xfe0] sm:$0xff]  ;;  %v7983_v60 = vld [vmem:[%s8105_s28 + $0xf90] sm:$0xff] }
 0x1d8   : > { %5253 = vmatpush.bf16.msra.mxu3 %v7964_v47 }
 0x1d9   : > { %5215 = vmatpush.bf16.msra.mxu0 %v7939_v48  ;;  %v4989_v4 = vpop.f32.mrf.mxu2  ;;  %v4965_v7 = vpop.f32.mrf.mxu0  ;;  %v7968_v48 = vld [vmem:[%s8105_s28 + $0xf18] sm:$0xff] }
 0x1da   : > { %5228 = vmatpush.bf16.msra.mxu1 %v7947_v49  ;;  %v4990_v5 = vadd.f32 %v4989_v4, %v4977_v63  ;;  %v5002_v6 = vpop.f32.mrf.mxu3  ;;  %v4978_v11 = vpop.f32.mrf.mxu1  ;;  %v7976_v49 = vld [vmem:[%s8105_s28 + $0xf58] sm:$0xff]  ;;  %v7974_v63 = vld [vmem:[%s8105_s28 + $0xf48] sm:$0xff]  ;;  %v7965_v4 = vld [vmem:[%s8105_s28 + $0xf00] sm:$0xff] }
 0x1db   : > { %5241 = vmatpush.bf16.msra.mxu2 %v7955_v50  ;;  %v7984_v50 = vld [vmem:[%s8105_s28 + $0xf98] sm:$0xff]  ;;  %v7989_v7 = vld [vmem:[%s8105_s28 + $0xfc0] sm:$0xff] }
 0x1dc   : > { %5254 = vmatpush.bf16.msra.mxu3 %v7963_v51  ;;  %v5003_v8 = vadd.f32 %v5002_v6, %v4990_v5  ;;  %v7992_v51 = vld [vmem:[%s8105_s28 + $0xfd8] sm:$0xff]  ;;  %v7973_v5 = vld [vmem:[%s8105_s28 + $0xf40] sm:$0xff] }
 0x1dd   : > { %5216 = vmatpush.bf16.msra.mxu0 %v7938_v52  ;;  %v7981_v6 = vld [vmem:[%s8105_s28 + $0xf80] sm:$0xff] }
 0x1de   : > { %5229 = vmatpush.bf16.msra.mxu1 %v7946_v53  ;;  %v1349_v11 = vld [vmem:[#allocation1 + $0x3f] sm:$0xff] }
 0x1df   : > { %5242 = vmatpush.bf16.msra.mxu2 %v7954_v54 }
 0x1e0   : > { %5255 = vmatpush.bf16.msra.mxu3 %v7962_v55 }
 0x1e1   : > { %5217 = vmatpush.bf16.msra.mxu0 %v7937_v58  ;;  %v4991_v18 = vpop.f32.mrf.mxu2  ;;  %v7975_v58 = vld [vmem:[%s8105_s28 + $0xf50] sm:$0xff] }
 0x1e2   : > { %5230 = vmatpush.bf16.msra.mxu1 %v7945_v59  ;;  %v5004_v19 = vpop.f32.mrf.mxu3 }
 0x1e3   : > { %5243 = vmatpush.bf16.msra.mxu2 %v7953_v61  ;;  %v7991_v61 = vld [vmem:[%s8105_s28 + $0xfd0] sm:$0xff] }
 0x1e4   : > { %5256 = vmatpush.bf16.msra.mxu3 %v7961_v62  ;;  %v7966_v62 = vld [vmem:[%s8105_s28 + $0xf08] sm:$0xff] }
 0x1e5   : > { %5218 = vmatpush.bf16.msra.mxu0 %v7936_v0  ;;  %v7982_v0 = vld [vmem:[%s8105_s28 + $0xf88] sm:$0xff] }
 0x1e6   : > { %5231 = vmatpush.bf16.msra.mxu1 %v7944_v1  ;;  %v7990_v1 = vld [vmem:[%s8105_s28 + $0xfc8] sm:$0xff] }
 0x1e7   : > { %5244 = vmatpush.bf16.msra.mxu2 %v7952_v2 }
 0x1e8   : > { %5257 = vmatpush.bf16.msra.mxu3 %v7960_v3 }
 0x1e9   : > { %5219 = vmatpush.bf16.msra.mxu0 %v7935_v9  ;;  %v1347_v9 = vld [vmem:[#allocation1 + $0x2d] sm:$0xff] }
 0x1ea   : > { %5232 = vmatpush.bf16.msra.mxu1 %v7943_v10  ;;  %v1348_v10 = vld [vmem:[#allocation1 + $0x36] sm:$0xff] }
 0x1eb   : > { %5245 = vmatpush.bf16.msra.mxu2 %v7951_v12 }
 0x1ec   : > { %5258 = vmatpush.bf16.msra.mxu3 %v7959_v13 }
 0x1ed   : > { %5220 = vmatpush.bf16.msra.mxu0 %v7934_v14 }
 0x1ee   : > { %5233 = vmatpush.bf16.msra.mxu1 %v7942_v15 }
 0x1ef   : > { %5246 = vmatpush.bf16.msra.mxu2 %v7950_v16 }
 0x1f0   : > { %5259 = vmatpush.bf16.msra.mxu3 %v7958_v17 }
 0x1f1   : > { %5221 = vmatpush.bf16.msra.mxu0 %v7933_v20  ;;  %v5015_v40 = vpop.f32.mrf.mxu0 }
 0x1f2   : > { %5234 = vmatpush.bf16.msra.mxu1 %v7941_v21  ;;  %v5016_v41 = vadd.f32 %v5015_v40, %v5003_v8  ;;  %v5028_v44 = vpop.f32.mrf.mxu1  ;;  %v1346_v8 = vld [vmem:[#allocation1 + $0x24] sm:$0xff] }
 0x1f3   : > { %5247 = vmatpush.bf16.msra.mxu2 %v7949_v22 }
 0x1f4   : > { %5260 = vmatpush.bf16.msra.mxu3 %v7957_v23  ;;  %5222 = vmatmul.bf16.vlgmr.msra.gmra.mxu0 %v1342_v28  ;;  %v5029_v47 = vadd.f32 %v5028_v44, %v5016_v41 }
 0x1f5   : > { %5266 = vmatpush.bf16.msrb.mxu0 %v7972_v24  ;;  %5235 = vmatmul.bf16.vlgmr.msra.gmra.mxu1 %v1343_v30 }
 0x1f6   : > { %5279 = vmatpush.bf16.msrb.mxu1 %v7980_v25  ;;  %5248 = vmatmul.bf16.vlgmr.msra.gmra.mxu2 %v1344_v29 }
 0x1f7   : > { %5292 = vmatpush.bf16.msrb.mxu2 %v7988_v26  ;;  %5261 = vmatmul.bf16.vlgmr.msra.gmra.mxu3 %v1345_v31 }
 0x1f8   : > { %5305 = vmatpush.bf16.msrb.mxu3 %v7996_v27 }
 0x1f9   : > { %5267 = vmatpush.bf16.msrb.mxu0 %v7971_v32  ;;  %v5041_v52 = vpop.f32.mrf.mxu2  ;;  %v5017_v55 = vpop.f32.mrf.mxu0 }
 0x1fa   : > { %5280 = vmatpush.bf16.msrb.mxu1 %v7979_v33  ;;  %v5042_v53 = vadd.f32 %v5041_v52, %v5029_v47  ;;  %v5054_v54 = vpop.f32.mrf.mxu3  ;;  %v5030_v59 = vpop.f32.mrf.mxu1 }
 0x1fb   : > { %5293 = vmatpush.bf16.msrb.mxu2 %v7987_v34 }
 0x1fc   : > { %5306 = vmatpush.bf16.msrb.mxu3 %v7995_v35  ;;  %v5055_v56 = vadd.f32 %v5054_v54, %v5042_v53 }
 0x1fd   : > { %5268 = vmatpush.bf16.msrb.mxu0 %v7970_v36 }
 0x1fe   : > { %5281 = vmatpush.bf16.msrb.mxu1 %v7978_v37 }
 0x1ff   : > { %5294 = vmatpush.bf16.msrb.mxu2 %v7986_v38 }
 0x200   : > { %5307 = vmatpush.bf16.msrb.mxu3 %v7994_v39 }
 0x201   : > { %5269 = vmatpush.bf16.msrb.mxu0 %v7969_v42  ;;  %v5043_v2 = vpop.f32.mrf.mxu2 }
 0x202   : > { %5282 = vmatpush.bf16.msrb.mxu1 %v7977_v43  ;;  %v5056_v3 = vpop.f32.mrf.mxu3 }
 0x203   : > { %5295 = vmatpush.bf16.msrb.mxu2 %v7985_v45 }
 0x204   : > { %5308 = vmatpush.bf16.msrb.mxu3 %v7993_v46 }
 0x205   : > { %5270 = vmatpush.bf16.msrb.mxu0 %v7968_v48 }
 0x206   : > { %5283 = vmatpush.bf16.msrb.mxu1 %v7976_v49 }
 0x207   : > { %5296 = vmatpush.bf16.msrb.mxu2 %v7984_v50 }
 0x208   : > { %5309 = vmatpush.bf16.msrb.mxu3 %v7992_v51 }
 0x209   : > { %5271 = vmatpush.bf16.msrb.mxu0 %v7967_v57 }
 0x20a   : > { %5284 = vmatpush.bf16.msrb.mxu1 %v7975_v58 }
 0x20b   : > { %5297 = vmatpush.bf16.msrb.mxu2 %v7983_v60 }
 0x20c   : > { %5310 = vmatpush.bf16.msrb.mxu3 %v7991_v61 }
 0x20d   : > { %5272 = vmatpush.bf16.msrb.mxu0 %v7966_v62 }
 0x20e   : > { %5285 = vmatpush.bf16.msrb.mxu1 %v7974_v63 }
 0x20f   : > { %5298 = vmatpush.bf16.msrb.mxu2 %v7982_v0 }
 0x210   : > { %5311 = vmatpush.bf16.msrb.mxu3 %v7990_v1 }
 0x211   : > { %5273 = vmatpush.bf16.msrb.mxu0 %v7965_v4  ;;  %v5067_v12 = vpop.f32.mrf.mxu0 }
 0x212   : > { %5286 = vmatpush.bf16.msrb.mxu1 %v7973_v5  ;;  %v5068_v13 = vadd.f32 %v5067_v12, %v5055_v56  ;;  %v5080_v14 = vpop.f32.mrf.mxu1  ;;  %v237_v5 = vld [vmem:[#allocation2] sm:$0x1] }
 0x213   : > { %5299 = vmatpush.bf16.msrb.mxu2 %v7981_v6 }
 0x214   : > { %5312 = vmatpush.bf16.msrb.mxu3 %v7989_v7  ;;  %5274 = vmatmul.bf16.vlgmr.msrb.gmra.mxu0 %v1346_v8  ;;  %v5081_v15 = vadd.f32 %v5080_v14, %v5068_v13 }
 0x215   : > { %5287 = vmatmul.bf16.vlgmr.msrb.gmra.mxu1 %v1347_v9 }
 0x216   : > { %5300 = vmatmul.bf16.vlgmr.msrb.gmra.mxu2 %v1348_v10 }
 0x217   : > { %5313 = vmatmul.bf16.vlgmr.msrb.gmra.mxu3 %v1349_v11 }
 0x219   : > { %v5093_v16 = vpop.f32.mrf.mxu2  ;;  %v5069_v19 = vpop.f32.mrf.mxu0 }
 0x21a   : > { %v5094_v17 = vadd.f32 %v5093_v16, %v5081_v15  ;;  %v5106_v18 = vpop.f32.mrf.mxu3  ;;  %v5082_v21 = vpop.f32.mrf.mxu1 }
 0x21c   : > { %v5107_v20 = vadd.f32 %v5106_v18, %v5094_v17 }
 0x221   : > { %v5095_v22 = vpop.f32.mrf.mxu2 }
 0x222   : > { %v5108_v23 = vpop.f32.mrf.mxu3 }
 0x231   : > { %v5119_v24 = vpop.f32.mrf.mxu0 }
 0x232   : > { %v5120_v25 = vadd.f32 %v5119_v24, %v5107_v20  ;;  %v5132_v26 = vpop.f32.mrf.mxu1 }
 0x234   : > { %v5133_v27 = vadd.f32 %v5132_v26, %v5120_v25 }
 0x239   : > { %v5145_v28 = vpop.f32.mrf.mxu2  ;;  %v5121_v31 = vpop.f32.mrf.mxu0 }
 0x23a   : > { %v5146_v29 = vadd.f32 %v5145_v28, %v5133_v27  ;;  %v5158_v30 = vpop.f32.mrf.mxu3  ;;  %v5134_v33 = vpop.f32.mrf.mxu1 }
 0x23c   : > { %v5159_v32 = vadd.f32 %v5158_v30, %v5146_v29 }
 0x241   : > { %v5147_v34 = vpop.f32.mrf.mxu2 }
 0x242   : > { %v5160_v35 = vpop.f32.mrf.mxu3 }
 0x251   : > { %v5171_v36 = vpop.f32.mrf.mxu0 }
 0x252   : > { %v5184_v37 = vpop.f32.mrf.mxu1  ;;  %v5172_v47 = vadd.f32 %v5171_v36, %v5159_v32 }
 0x254   : > { %v5185_v51 = vadd.f32 %v5184_v37, %v5172_v47 }
 0x259   : > { %v5197_v38 = vpop.f32.mrf.mxu2  ;;  %v5173_v40 = vpop.f32.mrf.mxu0 }
 0x25a   : > { %v5210_v39 = vpop.f32.mrf.mxu3  ;;  %v5186_v41 = vpop.f32.mrf.mxu1  ;;  %v5198_v52 = vadd.f32 %v5197_v38, %v5185_v51 }
 0x25c   : > { %v5211_v55 = vadd.f32 %v5210_v39, %v5198_v52 }
 0x261   : > { %v5199_v42 = vpop.f32.mrf.mxu2 }
 0x262   : > { %v5212_v43 = vpop.f32.mrf.mxu3 }
 0x271   : > { %v5223_v44 = vpop.f32.mrf.mxu0 }
 0x272   : > { %v5236_v45 = vpop.f32.mrf.mxu1  ;;  %v5224_v56 = vadd.f32 %v5223_v44, %v5211_v55 }
 0x274   : > { %v5237_v57 = vadd.f32 %v5236_v45, %v5224_v56 }
 0x279   : > { %v5249_v46 = vpop.f32.mrf.mxu2  ;;  %v5225_v49 = vpop.f32.mrf.mxu0 }
 0x27a   : > { %v5262_v48 = vpop.f32.mrf.mxu3  ;;  %v5238_v50 = vpop.f32.mrf.mxu1  ;;  %v5250_v58 = vadd.f32 %v5249_v46, %v5237_v57 }
 0x27c   : > { %v5263_v59 = vadd.f32 %v5262_v48, %v5250_v58 }
 0x281   : > { %v5251_v53 = vpop.f32.mrf.mxu2 }
 0x282   : > { %v5264_v54 = vpop.f32.mrf.mxu3 }
 0x291   : > { %v5275_v60 = vpop.f32.mrf.mxu0 }
 0x292   : > { %v5288_v61 = vpop.f32.mrf.mxu1  ;;  %v5276_v62 = vadd.f32 %v5275_v60, %v5263_v59 }
 0x294   : > { %v5289_v63 = vadd.f32 %v5288_v61, %v5276_v62 }
 0x299   : > { %v5301_v0 = vpop.f32.mrf.mxu2  ;;  %v5277_v3 = vpop.f32.mrf.mxu0 }
 0x29a   : > { %v5314_v1 = vpop.f32.mrf.mxu3  ;;  %v5302_v2 = vadd.f32 %v5301_v0, %v5289_v63  ;;  %v5290_v4 = vpop.f32.mrf.mxu1 }
 0x29c   : > { %v5315_v6 = vadd.f32 %v5314_v1, %v5302_v2 }
 0x29e   : > { %v5318_v7 = vadd.f32 %v5315_v6, %v237_v5  ;;  %5323 = sbr.rel (%p7480_p6) target bundleno = 836 (0x344), region = 48 }
 0x2a0   : > { %5319 = vst [vmem:[#allocation2] sm:$0x1] %v5318_v7 }
 0x2a1   : > { %v5303_v8 = vpop.f32.mrf.mxu2 }
 0x2a2   : > { %v5316_v9 = vpop.f32.mrf.mxu3 }
 0x2a3   : > { %v5343_v10 = vld [vmem:[%s8708_s3 + $0x78] sm:$0xff]  ;;  %v5342_v11 = vld [vmem:[%s8708_s3 + $0x70] sm:$0xff]  ;;  %v5341_v12 = vld [vmem:[%s8708_s3 + $0x68] sm:$0xff]  ;;  %vm5365_vm0 = vcmask 8192  }
 0x2a4   : > { %5345 = vmatpush.msra.mxu0 %v5343_v10  ;;  %v5340_v13 = vld [vmem:[%s8708_s3 + $0x60] sm:$0xff]  ;;  %v5339_v14 = vld [vmem:[%s8708_s3 + $0x58] sm:$0xff]  ;;  %v5338_v15 = vld [vmem:[%s8708_s3 + $0x50] sm:$0xff] }
 0x2a5   : > { %v5337_v16 = vld [vmem:[%s8708_s3 + $0x48] sm:$0xff]  ;;  %v5336_v17 = vld [vmem:[%s8708_s3 + $0x40] sm:$0xff]  ;;  %v5335_v18 = vld [vmem:[%s8708_s3 + $0x38] sm:$0xff] }
 0x2a6   : > { %5346 = vmatpush.msra.mxu0 %v5342_v11  ;;  %v5334_v19 = vld [vmem:[%s8708_s3 + $0x30] sm:$0xff]  ;;  %v5333_v20 = vld [vmem:[%s8708_s3 + $0x28] sm:$0xff]  ;;  %v5332_v21 = vld [vmem:[%s8708_s3 + $0x20] sm:$0xff] }
 0x2a7   : > { %v5324_v22 = vld [vmem:[#allocation2] sm:$0x1]  ;;  %v5325_v23 = vld [vmem:[%s8707_s2] sm:$0x1]  ;;  %v5331_v24 = vld [vmem:[%s8708_s3 + $0x18] sm:$0xff] }
 0x2a8   : > { %5347 = vmatpush.msra.mxu0 %v5341_v12  ;;  %v5330_v25 = vld [vmem:[%s8708_s3 + $0x10] sm:$0xff]  ;;  %v5326_v26 = vadd.f32 %v5325_v23, %v5324_v22  ;;  %v5329_v27 = vld [vmem:[%s8708_s3 + $0x8] sm:$0xff]  ;;  %v5328_v28 = vld [vmem:[%s8708_s3] sm:$0xff] }
 0x2a9   : > { %v5344_v30 = vld [vmem:[%s8709_s4] sm:$0x1] }
 0x2aa   : > { %5348 = vmatpush.msra.mxu0 %v5340_v13  ;;  %v5327_v29 = vmax.f32 %v5326_v26, 0.0 }
 0x2ac   : > { %5349 = vmatpush.msra.mxu0 %v5339_v14 }
 0x2ae   : > { %5350 = vmatpush.msra.mxu0 %v5338_v15 }
 0x2b0   : > { %5351 = vmatpush.msra.mxu0 %v5337_v16 }
 0x2b2   : > { %5352 = vmatpush.msra.mxu0 %v5336_v17 }
 0x2b4   : > { %5353 = vmatpush.msra.mxu0 %v5335_v18 }
 0x2b6   : > { %5354 = vmatpush.msra.mxu0 %v5334_v19 }
 0x2b8   : > { %5355 = vmatpush.msra.mxu0 %v5333_v20 }
 0x2ba   : > { %5356 = vmatpush.msra.mxu0 %v5332_v21 }
 0x2bc   : > { %5357 = vmatpush.msra.mxu0 %v5331_v24 }
 0x2be   : > { %5358 = vmatpush.msra.mxu0 %v5330_v25 }
 0x2c0   : > { %5359 = vmatpush.msra.mxu0 %v5329_v27 }
 0x2c2   : > { %5360 = vmatpush.msra.mxu0 %v5328_v28 }
 0x2c3   : > { %5361 = vmatmul.f32.vlgmr.msra.gmra.mxu0 %v5327_v29 }
 0x340   : > { %v5362_v31 = vpop.f32.mrf.mxu0 }
 0x341   : > { %v5363_v32 = vadd.f32 %v5362_v31, %v5344_v30 }
 0x343   : > { %5366 = vst.msk [vmem:[#allocation3] sm:$0x1] %vm5365_vm0, %v5363_v32 }
 0x344 PF: > { %p8001_p7 = scmp.eq.s32.totalorder %s8091_s19, 7  ;;  %s8054_s17 = smov [#allocation3]  }
 0x345   : > { %s5373_s20 = sshll.u32 %s8054_s17, 4  ;;  %s5375_s23 = sshll.u32 %s8710_s5, 4  ;;  %s5374_s20 = int_to_ptr.vmem [resolvable:$true] %s5373_s20  ;;  %s5376_s23 = int_to_ptr.hbm [resolvable:$true] %s5375_s23 }
 0x346   : > { %7998 = dma.vmem_to_hbm [thread:$0]  (%p8001_p7), %s5374_s20, 16, %s5376_s23, [#allocation4]  }
 0x347   : > { %8046 = dma.done.wait (%p8001_p7), [#allocation4], 16  }
 0x348   : > { %8048 = vsyncadd (%p8001_p7), [#allocation4], 4294967280 }
 0x349 PF: > { %s16_s18 = sadd.s32 1, %s8051_s18  }
 0x34a   : > { %p13_p8 = scmp.ge.s32.totalorder %s16_s18, 10  }
 0x34c   :  { %15 = sbr.rel (!%p13_p8) target bundleno = 1 (0x1), region = 78 }
 0x351   :  { %5389 = vsyncpa [#allocation4], 1 }
 0x352   :  { %5391 = vsyncpa [#allocation4 + $0x1], 1 }

</bundles_post_ra>
